<compile_context>
chip_gen: v7x
topology: tpu7x:2x2x1
jax: 0.10.0
libtpu: 0.0.40
codegen_flags: <defaults>
</compile_context>

<pallas_src>
import functools
import math

import jax
import jax.numpy as jnp
from jax.experimental import pallas as pl
from jax.experimental.pallas import tpu as pltpu


def _round_up(n, m):
    return (n + m - 1) // m * m


# ----------------------------------------------------------------------------
# In-kernel helpers.
# ----------------------------------------------------------------------------
def _cheb_stacked_basis(v, lap, K):
    """[T_0 v | T_1 v | ... | T_{K-1} v] stacked on the feature axis.

    v: (Np, D) in the MXU dtype, lap: (Np, Np).  The Chebyshev recurrence
    T_k = 2 L T_{k-1} - T_{k-2} is accumulated in f32; the stacked basis is
    emitted in the MXU dtype for the single fused matmul that follows.
    Note: state round-trips through bf16 per order; error grows with K and
    rnn_depth (validated at K=2, depth=2 under 5e-2 tolerance).
    """
    if K == 1:
        return v
    terms = [v]
    t_prev = v.astype(jnp.float32)
    t_cur = jnp.dot(lap, v, preferred_element_type=jnp.float32)
    terms.append(t_cur.astype(v.dtype))
    for _ in range(2, K):
        t_new = 2.0 * jnp.dot(lap, t_cur.astype(v.dtype),
                              preferred_element_type=jnp.float32) - t_prev
        terms.append(t_new.astype(v.dtype))
        t_prev, t_cur = t_cur, t_new
    return jnp.concatenate(terms, axis=1)


# ----------------------------------------------------------------------------
# Pallas kernel: whole GConvLSTM cell (rnn_depth steps) + ReLU/Linear head.
# Everything fits in VMEM for these shapes, so a single grid-less invocation
# is used; all matmuls hit the MXU, gate math runs on the VPU/EUP.
# ----------------------------------------------------------------------------
def _rgn_kernel(lap_ref, x_ref, h0_ref, c0_ref,
                wxf_ref, whf_ref, bias_ref, wc_ref,
                l1w_ref, l1b_ref, l2w_ref, l2b_ref,
                y_ref, h_ref, c_ref, *, K, rnn_depth, dim):
    D = dim                               # padded hidden dim (multiple of 128)
    lap = lap_ref[...]                    # (Np, Np)        mxu dtype (bf16)
    x = x_ref[...]                        # (Np, F)         mxu dtype
    h = h0_ref[...]                       # (Np, D)         f32 state
    c = c0_ref[...]                       # (Np, D)         f32 state
    whf = whf_ref[...]                    # (K*D, 4*D)      mxu dtype
    bias = bias_ref[...]                  # (1, 4*D)        f32 (pre-summed)
    # Peephole weights, loaded once (hoisted out of the recurrence).
    wc_i = wc_ref[0:1, :]
    wc_f = wc_ref[1:2, :]
    wc_o = wc_ref[2:3, :]
    mxu_dt = lap.dtype

    # x-side ChebConv + all biases: loop-invariant -> computed exactly once
    # as a single stacked-basis matmul (Np, K*F) @ (K*F, 4*D).
    tx = _cheb_stacked_basis(x, lap, K)
    cx_pre = jnp.dot(tx, wxf_ref[...], preferred_element_type=jnp.float32) + bias

    def step(h, c):
        # Gate order along the 4*D axis: [input | forget | cell cand | output].
        # D is a multiple of 128 so every slice below is lane-aligned (no XLU
        # relayouts in the hot loop).
        th = _cheb_stacked_basis(h.astype(mxu_dt), lap, K)       # (Np, K*D)
        pre = cx_pre + jnp.dot(th, whf, preferred_element_type=jnp.float32)
        i_g = jax.nn.sigmoid(pre[:, 0 * D:1 * D] + wc_i * c)
        f_g = jax.nn.sigmoid(pre[:, 1 * D:2 * D] + wc_f * c)
        t_g = jnp.tanh(pre[:, 2 * D:3 * D])
        c_new = f_g * c + i_g * t_g
        o_g = jax.nn.sigmoid(pre[:, 3 * D:4 * D] + wc_o * c_new)
        h_new = o_g * jnp.tanh(c_new)
        return h_new, c_new

    if rnn_depth <= 8:
        # Unrolled: LLO scheduler hides step-i gate math (EUP/VPU) under the
        # MXU pushes of step i+1.
        for _ in range(rnn_depth):
            h, c = step(h, c)
    else:
        # Deep recurrence: fori_loop bounds live ranges / compile time; keep a
        # 2x unroll so consecutive bodies still overlap.
        h, c = jax.lax.fori_loop(0, rnn_depth, lambda _, hc: step(*hc), (h, c),
                                 unroll=2)

    # Head: ReLU -> Linear(D,D) -> ReLU -> Linear(D, OUT_pad).  bf16 operands
    # (f32 accumulation); the output width is padded to 128 so the store is
    # lane-dense (sliced back in the wrapper).
    xr = jnp.maximum(h, 0.0).astype(mxu_dt)
    y1 = jnp.dot(xr, l1w_ref[...], preferred_element_type=jnp.float32) + l1b_ref[...]
    y1 = jnp.maximum(y1, 0.0).astype(mxu_dt)
    y_ref[...] = jnp.dot(y1, l2w_ref[...], preferred_element_type=jnp.float32) + l2b_ref[...]
    h_ref[...] = h
    c_ref[...] = c


# ----------------------------------------------------------------------------
# Glue: build the dense scaled Laplacian exactly as PyG ChebConv (sym norm,
# lambda_max defaulting to 2.0):  L_hat = -D^{-1/2} A D^{-1/2}, zero diagonal.
# Returned transposed so that `L_hat @ x` matches PyG's source->target flow,
# and cast to the MXU dtype inside the builder (no separate f32 N^2 pass).
# ----------------------------------------------------------------------------
# TODO(synk): the sparse edge scatter (edge_index -> dense L_hat) stays in
# plain JAX glue; data-dependent scatter has no clean single-kernel Pallas
# equivalent.
def build_scaled_laplacian(edge_index, edge_weight, num_nodes,
                           out_dtype=jnp.float32):
    src, dst = edge_index[0], edge_index[1]
    w = jnp.where(src != dst, edge_weight.astype(jnp.float32), 0.0)  # drop self-loops
    A = jnp.zeros((num_nodes, num_nodes), jnp.float32).at[src, dst].add(w)
    deg = A.sum(axis=1)
    dinv = jnp.where(deg > 0, jax.lax.rsqrt(jnp.maximum(deg, 1e-30)), 0.0)
    L = -(dinv[:, None] * A * dinv[None, :])
    return L.T.astype(out_dtype)                                      # propagation matrix


def _pack_params(params, d_pad, out_pad, mxu_dtype):
    """Gate-fuse weights, pre-sum biases, pad hidden/head dims to `d_pad`/`out_pad`."""
    wx, wh = params["wx"], params["wh"]          # (4,K,F,D) / (4,K,D,D)
    _, K, F, D = wx.shape
    pd = d_pad - D
    out = params["l2w"].shape[-1]
    po = out_pad - out
    # wxf[k*F+f, g*Dp+d] = wx[g,k,f,d]  -> single (Np,K*F)@(K*F,4*Dp) x-side matmul
    wxf = jnp.transpose(wx, (1, 2, 0, 3))                    # (K, F, 4, D)
    wxf = jnp.pad(wxf, ((0, 0), (0, 0), (0, 0), (0, pd)))
    wxf = wxf.reshape(K * F, 4 * d_pad).astype(mxu_dtype)
    # whf[k*Dp+dh, g*Dp+d] = wh[g,k,dh,d] -> single (Np,K*Dp)@(K*Dp,4*Dp) matmul.
    # (With D padded to 128, K*Dp stays a multiple of 128 -> full MXU loads.)
    whf = jnp.transpose(wh, (1, 2, 0, 3))                    # (K, D, 4, D)
    whf = jnp.pad(whf, ((0, 0), (0, pd), (0, 0), (0, pd)))
    whf = whf.reshape(K * d_pad, 4 * d_pad).astype(mxu_dtype)
    # Fold bx + bh + gate bias into one (1, 4*Dp) f32 bias (zero in padded cols).
    bias = params["bx"] + params["bh"] + params["bg"]        # (4, D)
    bias = jnp.pad(bias, ((0, 0), (0, pd))).reshape(1, 4 * d_pad).astype(jnp.float32)
    wc = jnp.pad(params["wc"], ((0, 0), (0, pd))).astype(jnp.float32)
    l1w = jnp.pad(params["l1w"], ((0, pd), (0, pd))).astype(mxu_dtype)
    l1b = jnp.pad(params["l1b"].reshape(1, D), ((0, 0), (0, pd))).astype(jnp.float32)
    l2w = jnp.pad(params["l2w"], ((0, pd), (0, po))).astype(mxu_dtype)
    l2b = jnp.pad(params["l2b"].reshape(1, out), ((0, 0), (0, po))).astype(jnp.float32)
    return wxf, whf, bias, wc, l1w, l1b, l2w, l2b


def _vmem_limit_bytes(in_bytes, out_bytes, scratch_bytes):
    """Generation-aware scoped-VMEM budget (v7x has 64 MiB/TC, v5e/v6e 128)."""
    try:
        cap = int(getattr(pltpu.get_tpu_info(), "vmem_capacity_bytes"))
    except Exception:
        cap = 64 * 2 ** 20          # conservative fallback (fits every gen)
    headroom = 8 * 2 ** 20
    need = int(1.25 * (in_bytes + out_bytes + scratch_bytes))
    return int(max(16 * 2 ** 20, min(cap - headroom, max(need, 32 * 2 ** 20))))


def recurrent_graph_net(x, edge_index, edge_attr, params, h=None, c=None, *,
                        K, rnn_depth, mxu_dtype=jnp.bfloat16):
    N, F = x.shape
    D = params["wh"].shape[-1]
    OUT = params["l2w"].shape[-1]
    # Pad the node dim to 128: satisfies bf16 sublane packing (16) and keeps
    # lap's lane (last) dim dense, so lap loads / matmuls are unmasked.  The
    # over-pad vs. 16 costs at most 127 extra rows of lap (negligible at
    # large N, one MXU pass at small N).  Hidden / head dims padded to 128 so
    # gate slices and the output store are lane-aligned.
    N_pad = _round_up(N, 128)
    D_pad = _round_up(D, 128)
    OUT_pad = _round_up(OUT, 128)

    lap = build_scaled_laplacian(edge_index, edge_attr.reshape(-1), N_pad, mxu_dtype)
    # TODO(synk): x's F (lookback) is left lane-sparse; the x-side ChebConv is
    # loop-invariant and computed once, so padding F buys nothing measurable.
    x_p = jnp.zeros((N_pad, F), mxu_dtype).at[:N].set(x.astype(mxu_dtype))
    # NOTE: padded node ROWS develop nonzero h/c (sigmoid(bias) != 0) but lap
    # has zero columns for padded nodes and outputs are sliced to [:N, :D], so
    # nothing leaks into real nodes.  Padded feature COLUMNS stay exactly zero
    # (all padded weights/biases are zero).
    h_p = jnp.zeros((N_pad, D_pad), jnp.float32)
    c_p = jnp.zeros((N_pad, D_pad), jnp.float32)
    if h is not None:
        h_p = h_p.at[:N, :D].set(h.astype(jnp.float32))
    if c is not None:
        c_p = c_p.at[:N, :D].set(c.astype(jnp.float32))

    wxf, whf, bias, wc, l1w, l1b, l2w, l2b = _pack_params(params, D_pad, OUT_pad, mxu_dtype)

    args = (lap, x_p, h_p, c_p, wxf, whf, bias, wc, l1w, l1b, l2w, l2b)
    out_shapes = (jax.ShapeDtypeStruct((N_pad, OUT_pad), jnp.float32),
                  jax.ShapeDtypeStruct((N_pad, D_pad), jnp.float32),
                  jax.ShapeDtypeStruct((N_pad, D_pad), jnp.float32))

    # VMEM accounting: grid-less call is single-buffered (no 2x factor);
    # in-kernel intermediates counted explicitly.
    in_bytes = sum(int(a.size) * a.dtype.itemsize for a in args)
    out_bytes = sum(math.prod(s.shape) * jnp.dtype(s.dtype).itemsize
                    for s in out_shapes)
    mxu_isz = jnp.dtype(mxu_dtype).itemsize
    scratch_est = (
        N_pad * K * D_pad * mxu_isz            # stacked bf16 h-basis
        + N_pad * K * F * mxu_isz              # stacked bf16 x-basis (one-off)
        + 2 * N_pad * 4 * D_pad * 4            # cx_pre + per-step pre-acts (f32)
        + 3 * N_pad * D_pad * 4                # Chebyshev T_{k-2},T_{k-1},T_k (f32)
        + 6 * N_pad * D_pad * 4                # i,f,g,o,c_new,h_new (f32)
        + N_pad * (D_pad + OUT_pad) * 4        # head intermediates
    )
    vmem_limit = _vmem_limit_bytes(in_bytes, out_bytes, scratch_est)

    vmem = pl.BlockSpec(memory_space=pltpu.MemorySpace.VMEM)
    kernel = functools.partial(_rgn_kernel, K=K, rnn_depth=rnn_depth, dim=D_pad)
    # TODO(synk): for N large enough that 2*N_pad^2 bf16 + weights exceed the
    # per-TC budget (v7x ~4.5-5k nodes), stream lap row-blocks with
    # pltpu.emit_pipeline / pl.Buffered(2) and keep only h/c/weights resident.
    # TODO(synk): on v7x a row-split across the 2 TensorCores (core_map +
    # VMEM_SHARED h exchange per rnn step) would ~2x MXU throughput; the
    # recurrence couples all nodes through lap so it needs a per-step h swap.
    # TODO(synk): at tiny N (e.g. the demo's 16 nodes) the call is fixed
    # overhead bound; batching many graphs block-diagonally along the node
    # axis is the only lever there and belongs in the caller.
    y, h_out, c_out = pl.pallas_call(
        kernel,
        out_shape=out_shapes,
        in_specs=[vmem] * len(args),
        out_specs=(vmem, vmem, vmem),
        compiler_params=pltpu.CompilerParams(vmem_limit_bytes=vmem_limit),
    )(*args)
    return y[:N, :OUT], h_out[:N, :D], c_out[:N, :D]


# ----------------------------------------------------------------------------
# Deterministic synthetic parameter init (shapes follow GConvLSTM + 2 Linears).
# Linear weights are stored pre-transposed: (in, out), so kernel does x @ W.
# ----------------------------------------------------------------------------
def init_params(key, f_in, dim, out, K):
    ks = jax.random.split(key, 8)
    s_x = 1.0 / jnp.sqrt(jnp.float32(f_in))
    s_h = 1.0 / jnp.sqrt(jnp.float32(dim))
    return dict(
        wx=jax.random.normal(ks[0], (4, K, f_in, dim), jnp.float32) * s_x,
        bx=jax.random.normal(ks[1], (4, dim), jnp.float32) * 0.1,
        wh=jax.random.normal(ks[2], (4, K, dim, dim), jnp.float32) * s_h,
        bh=jax.random.normal(ks[3], (4, dim), jnp.float32) * 0.1,
        wc=jax.random.normal(ks[4], (3, dim), jnp.float32) * 0.1,
        bg=jax.random.normal(ks[5], (4, dim), jnp.float32) * 0.1,
        l1w=jax.random.normal(ks[6], (dim, dim), jnp.float32) * s_h,
        l1b=jnp.zeros((1, dim), jnp.float32),
        l2w=jax.random.normal(ks[7], (dim, out), jnp.float32) * s_h,
        l2b=jnp.zeros((1, out), jnp.float32),
    )


# ----------------------------------------------------------------------------
# Pure-JAX f32 reference (per-gate, unfused ChebConv) for correctness check.
# ----------------------------------------------------------------------------
def _cheb_conv_ref(x, lap, w_of_k, bias, K):
    z = jnp.dot(x, w_of_k(0), preferred_element_type=jnp.float32)
    if K > 1:
        tx_prev = x
        tx = jnp.dot(lap, x, preferred_element_type=jnp.float32)
        z = z + jnp.dot(tx, w_of_k(1), preferred_element_type=jnp.float32)
        for k in range(2, K):
            tx_new = 2.0 * jnp.dot(lap, tx, preferred_element_type=jnp.float32) - tx_prev
            z = z + jnp.dot(tx_new, w_of_k(k), preferred_element_type=jnp.float32)
            tx_prev, tx = tx, tx_new
    return z + bias


def reference_forward(x, lap, params, K, rnn_depth):
    N = x.shape[0]
    D = params["wh"].shape[-1]
    h = jnp.zeros((N, D), jnp.float32)
    c = jnp.zeros((N, D), jnp.float32)
    wx, bx, wh, bh = params["wx"], params["bx"], params["wh"], params["bh"]
    wc, bg = params["wc"], params["bg"]
    for _ in range(rnn_depth):
        cx = [_cheb_conv_ref(x, lap, (lambda k, g=g: wx[g, k]), bx[g], K) for g in range(4)]
        ch = [_cheb_conv_ref(h, lap, (lambda k, g=g: wh[g, k]), bh[g], K) for g in range(4)]
        i_g = jax.nn.sigmoid(cx[0] + ch[0] + wc[0:1] * c + bg[0:1])
        f_g = jax.nn.sigmoid(cx[1] + ch[1] + wc[1:2] * c + bg[1:2])
        t_g = jnp.tanh(cx[2] + ch[2] + bg[2:3])
        c = f_g * c + i_g * t_g
        o_g = jax.nn.sigmoid(cx[3] + ch[3] + wc[2:3] * c + bg[3:4])
        h = o_g * jnp.tanh(c)
    xr = jnp.maximum(h, 0.0)
    y1 = jnp.maximum(xr @ params["l1w"] + params["l1b"], 0.0)
    y = y1 @ params["l2w"] + params["l2b"]
    return y, h, c


if __name__ == "__main__":
    # Small shapes consistent with the module: N nodes, lookback input feats,
    # hidden dim, output_size=1 (module default), Chebyshev filter_size K.
    N, LOOKBACK, DIM, OUT, K, RNN_DEPTH, E = 16, 8, 128, 1, 2, 2, 48

    key = jax.random.PRNGKey(0)
    k_x, k_ei, k_ea, k_p = jax.random.split(key, 4)
    x = jax.random.normal(k_x, (N, LOOKBACK), jnp.float32)
    edge_index = jax.random.randint(k_ei, (2, E), 0, N, dtype=jnp.int32)
    edge_attr = jax.random.uniform(k_ea, (E, 1), jnp.float32, minval=0.1, maxval=1.0)
    params = init_params(k_p, LOOKBACK, DIM, OUT, K)

    y, h, c = recurrent_graph_net(x, edge_index, edge_attr, params,
                                  K=K, rnn_depth=RNN_DEPTH)
    jax.block_until_ready((y, h, c))

    # Sanity check against the pure-f32 JAX reference.  Tolerance accounts for
    # bf16 MXU operands (accumulation and gate math remain f32).
    lap = build_scaled_laplacian(edge_index, edge_attr.reshape(-1), N)
    y_ref, h_ref, c_ref = reference_forward(x, lap, params, K, RNN_DEPTH)
    assert jnp.allclose(y, y_ref, atol=5e-2, rtol=5e-2)
    assert jnp.allclose(h, h_ref, atol=5e-2, rtol=5e-2)
    assert jnp.allclose(c, c_ref, atol=5e-2, rtol=5e-2)

    print("KERNEL_OK")
</pallas_src>

<mosaic_0001>
module attributes {stable_mosaic.version = 11 : i64} {
  func.func @_rgn_kernel(%arg0: memref<128x128xbf16, #tpu.memory_space<vmem>>, %arg1: memref<128x8xbf16, #tpu.memory_space<vmem>>, %arg2: memref<128x128xf32, #tpu.memory_space<vmem>>, %arg3: memref<128x128xf32, #tpu.memory_space<vmem>>, %arg4: memref<16x512xbf16, #tpu.memory_space<vmem>>, %arg5: memref<256x512xbf16, #tpu.memory_space<vmem>>, %arg6: memref<1x512xf32, #tpu.memory_space<vmem>>, %arg7: memref<3x128xf32, #tpu.memory_space<vmem>>, %arg8: memref<128x128xbf16, #tpu.memory_space<vmem>>, %arg9: memref<1x128xf32, #tpu.memory_space<vmem>>, %arg10: memref<128x128xbf16, #tpu.memory_space<vmem>>, %arg11: memref<1x128xf32, #tpu.memory_space<vmem>>, %arg12: memref<128x128xf32, #tpu.memory_space<vmem>>, %arg13: memref<128x128xf32, #tpu.memory_space<vmem>>, %arg14: memref<128x128xf32, #tpu.memory_space<vmem>>) attributes {dimension_semantics = [], scalar_prefetch = 0 : i64, scratch_operands = 0 : i64, tpu.core_type = #tpu.core_type<tc>} {
    %c0 = arith.constant 0 : index
    %c0_0 = arith.constant 0 : index
    %0 = vector.load %arg0[%c0, %c0_0] : memref<128x128xbf16, #tpu.memory_space<vmem>>, vector<128x128xbf16>
    %c0_1 = arith.constant 0 : index
    %c0_2 = arith.constant 0 : index
    %1 = vector.load %arg1[%c0_1, %c0_2] : memref<128x8xbf16, #tpu.memory_space<vmem>>, vector<128x8xbf16>
    %c0_3 = arith.constant 0 : index
    %c0_4 = arith.constant 0 : index
    %2 = vector.load %arg2[%c0_3, %c0_4] : memref<128x128xf32, #tpu.memory_space<vmem>>, vector<128x128xf32>
    %c0_5 = arith.constant 0 : index
    %c0_6 = arith.constant 0 : index
    %3 = vector.load %arg3[%c0_5, %c0_6] : memref<128x128xf32, #tpu.memory_space<vmem>>, vector<128x128xf32>
    %c0_7 = arith.constant 0 : index
    %c0_8 = arith.constant 0 : index
    %4 = vector.load %arg5[%c0_7, %c0_8] : memref<256x512xbf16, #tpu.memory_space<vmem>>, vector<256x512xbf16>
    %c0_9 = arith.constant 0 : index
    %c0_10 = arith.constant 0 : index
    %5 = vector.load %arg6[%c0_9, %c0_10] : memref<1x512xf32, #tpu.memory_space<vmem>>, vector<1x512xf32>
    %c0_11 = arith.constant 0 : index
    %c0_12 = arith.constant 0 : index
    %6 = vector.load %arg7[%c0_11, %c0_12] : memref<3x128xf32, #tpu.memory_space<vmem>>, vector<1x128xf32>
    %c1 = arith.constant 1 : index
    %c0_13 = arith.constant 0 : index
    %7 = vector.load %arg7[%c1, %c0_13] : memref<3x128xf32, #tpu.memory_space<vmem>>, vector<1x128xf32>
    %c2 = arith.constant 2 : index
    %c0_14 = arith.constant 0 : index
    %8 = vector.load %arg7[%c2, %c0_14] : memref<3x128xf32, #tpu.memory_space<vmem>>, vector<1x128xf32>
    %cst = arith.constant dense<0.000000e+00> : vector<128x8xf32>
    %9 = tpu.matmul %0, %1, %cst {dimension_numbers = #tpu.dot_dimension_numbers<[1], [0], [0], [1], [0, 0, 1, 1], [], []>} : vector<128x128xbf16>, vector<128x8xbf16>, vector<128x8xf32> -> vector<128x8xf32>
    %10 = arith.truncf %9 : vector<128x8xf32> to vector<128x8xbf16>
    %11 = tpu.concatenate %1, %10 in 1 : vector<128x8xbf16>, vector<128x8xbf16> -> vector<128x16xbf16>
    %c0_15 = arith.constant 0 : index
    %c0_16 = arith.constant 0 : index
    %12 = vector.load %arg4[%c0_15, %c0_16] : memref<16x512xbf16, #tpu.memory_space<vmem>>, vector<16x512xbf16>
    %cst_17 = arith.constant dense<0.000000e+00> : vector<128x512xf32>
    %13 = tpu.matmul %11, %12, %cst_17 {dimension_numbers = #tpu.dot_dimension_numbers<[1], [0], [0], [1], [0, 0, 1, 1], [], []>} : vector<128x16xbf16>, vector<16x512xbf16>, vector<128x512xf32> -> vector<128x512xf32>
    %14 = vector.broadcast %5 : vector<1x512xf32> to vector<128x512xf32>
    %15 = arith.addf %13, %14 : vector<128x512xf32>
    %16 = arith.truncf %2 : vector<128x128xf32> to vector<128x128xbf16>
    %cst_18 = arith.constant dense<0.000000e+00> : vector<128x128xf32>
    %17 = tpu.matmul %0, %16, %cst_18 {dimension_numbers = #tpu.dot_dimension_numbers<[1], [0], [0], [1], [0, 0, 1, 1], [], []>} : vector<128x128xbf16>, vector<128x128xbf16>, vector<128x128xf32> -> vector<128x128xf32>
    %18 = arith.truncf %17 : vector<128x128xf32> to vector<128x128xbf16>
    %19 = tpu.concatenate %16, %18 in 1 : vector<128x128xbf16>, vector<128x128xbf16> -> vector<128x256xbf16>
    %cst_19 = arith.constant dense<0.000000e+00> : vector<128x512xf32>
    %20 = tpu.matmul %19, %4, %cst_19 {dimension_numbers = #tpu.dot_dimension_numbers<[1], [0], [0], [1], [0, 0, 1, 1], [], []>} : vector<128x256xbf16>, vector<256x512xbf16>, vector<128x512xf32> -> vector<128x512xf32>
    %21 = arith.addf %15, %20 : vector<128x512xf32>
    %22 = vector.extract_strided_slice %21 {offsets = [0, 0], sizes = [128, 128], strides = [1, 1]} : vector<128x512xf32> to vector<128x128xf32>
    %23 = vector.broadcast %6 : vector<1x128xf32> to vector<128x128xf32>
    %24 = arith.mulf %23, %3 : vector<128x128xf32>
    %25 = arith.addf %22, %24 : vector<128x128xf32>
    %26 = arith.negf %25 : vector<128x128xf32>
    %27 = math.exp %26 : vector<128x128xf32>
    %cst_20 = arith.constant 1.000000e+00 : f32
    %28 = vector.broadcast %cst_20 : f32 to vector<128x128xf32>
    %29 = arith.addf %28, %27 : vector<128x128xf32>
    %30 = arith.divf %28, %29 : vector<128x128xf32>
    %31 = vector.extract_strided_slice %21 {offsets = [0, 128], sizes = [128, 128], strides = [1, 1]} : vector<128x512xf32> to vector<128x128xf32>
    %32 = vector.broadcast %7 : vector<1x128xf32> to vector<128x128xf32>
    %33 = arith.mulf %32, %3 : vector<128x128xf32>
    %34 = arith.addf %31, %33 : vector<128x128xf32>
    %35 = arith.negf %34 : vector<128x128xf32>
    %36 = math.exp %35 : vector<128x128xf32>
    %cst_21 = arith.constant 1.000000e+00 : f32
    %37 = vector.broadcast %cst_21 : f32 to vector<128x128xf32>
    %38 = arith.addf %37, %36 : vector<128x128xf32>
    %39 = arith.divf %37, %38 : vector<128x128xf32>
    %40 = vector.extract_strided_slice %21 {offsets = [0, 256], sizes = [128, 128], strides = [1, 1]} : vector<128x512xf32> to vector<128x128xf32>
    %41 = math.tanh %40 : vector<128x128xf32>
    %42 = arith.mulf %39, %3 : vector<128x128xf32>
    %43 = arith.mulf %30, %41 : vector<128x128xf32>
    %44 = arith.addf %42, %43 : vector<128x128xf32>
    %45 = vector.extract_strided_slice %21 {offsets = [0, 384], sizes = [128, 128], strides = [1, 1]} : vector<128x512xf32> to vector<128x128xf32>
    %46 = vector.broadcast %8 : vector<1x128xf32> to vector<128x128xf32>
    %47 = arith.mulf %46, %44 : vector<128x128xf32>
    %48 = arith.addf %45, %47 : vector<128x128xf32>
    %49 = arith.negf %48 : vector<128x128xf32>
    %50 = math.exp %49 : vector<128x128xf32>
    %cst_22 = arith.constant 1.000000e+00 : f32
    %51 = vector.broadcast %cst_22 : f32 to vector<128x128xf32>
    %52 = arith.addf %51, %50 : vector<128x128xf32>
    %53 = arith.divf %51, %52 : vector<128x128xf32>
    %54 = math.tanh %44 : vector<128x128xf32>
    %55 = arith.mulf %53, %54 : vector<128x128xf32>
    %56 = arith.truncf %55 : vector<128x128xf32> to vector<128x128xbf16>
    %cst_23 = arith.constant dense<0.000000e+00> : vector<128x128xf32>
    %57 = tpu.matmul %0, %56, %cst_23 {dimension_numbers = #tpu.dot_dimension_numbers<[1], [0], [0], [1], [0, 0, 1, 1], [], []>} : vector<128x128xbf16>, vector<128x128xbf16>, vector<128x128xf32> -> vector<128x128xf32>
    %58 = arith.truncf %57 : vector<128x128xf32> to vector<128x128xbf16>
    %59 = tpu.concatenate %56, %58 in 1 : vector<128x128xbf16>, vector<128x128xbf16> -> vector<128x256xbf16>
    %cst_24 = arith.constant dense<0.000000e+00> : vector<128x512xf32>
    %60 = tpu.matmul %59, %4, %cst_24 {dimension_numbers = #tpu.dot_dimension_numbers<[1], [0], [0], [1], [0, 0, 1, 1], [], []>} : vector<128x256xbf16>, vector<256x512xbf16>, vector<128x512xf32> -> vector<128x512xf32>
    %61 = arith.addf %15, %60 : vector<128x512xf32>
    %62 = vector.extract_strided_slice %61 {offsets = [0, 0], sizes = [128, 128], strides = [1, 1]} : vector<128x512xf32> to vector<128x128xf32>
    %63 = vector.broadcast %6 : vector<1x128xf32> to vector<128x128xf32>
    %64 = arith.mulf %63, %44 : vector<128x128xf32>
    %65 = arith.addf %62, %64 : vector<128x128xf32>
    %66 = arith.negf %65 : vector<128x128xf32>
    %67 = math.exp %66 : vector<128x128xf32>
    %cst_25 = arith.constant 1.000000e+00 : f32
    %68 = vector.broadcast %cst_25 : f32 to vector<128x128xf32>
    %69 = arith.addf %68, %67 : vector<128x128xf32>
    %70 = arith.divf %68, %69 : vector<128x128xf32>
    %71 = vector.extract_strided_slice %61 {offsets = [0, 128], sizes = [128, 128], strides = [1, 1]} : vector<128x512xf32> to vector<128x128xf32>
    %72 = vector.broadcast %7 : vector<1x128xf32> to vector<128x128xf32>
    %73 = arith.mulf %72, %44 : vector<128x128xf32>
    %74 = arith.addf %71, %73 : vector<128x128xf32>
    %75 = arith.negf %74 : vector<128x128xf32>
    %76 = math.exp %75 : vector<128x128xf32>
    %cst_26 = arith.constant 1.000000e+00 : f32
    %77 = vector.broadcast %cst_26 : f32 to vector<128x128xf32>
    %78 = arith.addf %77, %76 : vector<128x128xf32>
    %79 = arith.divf %77, %78 : vector<128x128xf32>
    %80 = vector.extract_strided_slice %61 {offsets = [0, 256], sizes = [128, 128], strides = [1, 1]} : vector<128x512xf32> to vector<128x128xf32>
    %81 = math.tanh %80 : vector<128x128xf32>
    %82 = arith.mulf %79, %44 : vector<128x128xf32>
    %83 = arith.mulf %70, %81 : vector<128x128xf32>
    %84 = arith.addf %82, %83 : vector<128x128xf32>
    %85 = vector.extract_strided_slice %61 {offsets = [0, 384], sizes = [128, 128], strides = [1, 1]} : vector<128x512xf32> to vector<128x128xf32>
    %86 = vector.broadcast %8 : vector<1x128xf32> to vector<128x128xf32>
    %87 = arith.mulf %86, %84 : vector<128x128xf32>
    %88 = arith.addf %85, %87 : vector<128x128xf32>
    %89 = arith.negf %88 : vector<128x128xf32>
    %90 = math.exp %89 : vector<128x128xf32>
    %cst_27 = arith.constant 1.000000e+00 : f32
    %91 = vector.broadcast %cst_27 : f32 to vector<128x128xf32>
    %92 = arith.addf %91, %90 : vector<128x128xf32>
    %93 = arith.divf %91, %92 : vector<128x128xf32>
    %94 = math.tanh %84 : vector<128x128xf32>
    %95 = arith.mulf %93, %94 : vector<128x128xf32>
    %cst_28 = arith.constant 0.000000e+00 : f32
    %96 = vector.broadcast %cst_28 : f32 to vector<128x128xf32>
    %97 = arith.maximumf %95, %96 : vector<128x128xf32>
    %98 = arith.truncf %97 : vector<128x128xf32> to vector<128x128xbf16>
    %c0_29 = arith.constant 0 : index
    %c0_30 = arith.constant 0 : index
    %99 = vector.load %arg8[%c0_29, %c0_30] : memref<128x128xbf16, #tpu.memory_space<vmem>>, vector<128x128xbf16>
    %cst_31 = arith.constant dense<0.000000e+00> : vector<128x128xf32>
    %100 = tpu.matmul %98, %99, %cst_31 {dimension_numbers = #tpu.dot_dimension_numbers<[1], [0], [0], [1], [0, 0, 1, 1], [], []>} : vector<128x128xbf16>, vector<128x128xbf16>, vector<128x128xf32> -> vector<128x128xf32>
    %c0_32 = arith.constant 0 : index
    %c0_33 = arith.constant 0 : index
    %101 = vector.load %arg9[%c0_32, %c0_33] : memref<1x128xf32, #tpu.memory_space<vmem>>, vector<1x128xf32>
    %102 = vector.broadcast %101 : vector<1x128xf32> to vector<128x128xf32>
    %103 = arith.addf %100, %102 : vector<128x128xf32>
    %cst_34 = arith.constant 0.000000e+00 : f32
    %104 = vector.broadcast %cst_34 : f32 to vector<128x128xf32>
    %105 = arith.maximumf %103, %104 : vector<128x128xf32>
    %106 = arith.truncf %105 : vector<128x128xf32> to vector<128x128xbf16>
    %c0_35 = arith.constant 0 : index
    %c0_36 = arith.constant 0 : index
    %107 = vector.load %arg10[%c0_35, %c0_36] : memref<128x128xbf16, #tpu.memory_space<vmem>>, vector<128x128xbf16>
    %cst_37 = arith.constant dense<0.000000e+00> : vector<128x128xf32>
    %108 = tpu.matmul %106, %107, %cst_37 {dimension_numbers = #tpu.dot_dimension_numbers<[1], [0], [0], [1], [0, 0, 1, 1], [], []>} : vector<128x128xbf16>, vector<128x128xbf16>, vector<128x128xf32> -> vector<128x128xf32>
    %c0_38 = arith.constant 0 : index
    %c0_39 = arith.constant 0 : index
    %109 = vector.load %arg11[%c0_38, %c0_39] : memref<1x128xf32, #tpu.memory_space<vmem>>, vector<1x128xf32>
    %110 = vector.broadcast %109 : vector<1x128xf32> to vector<128x128xf32>
    %111 = arith.addf %108, %110 : vector<128x128xf32>
    %c0_40 = arith.constant 0 : index
    %c0_41 = arith.constant 0 : index
    %112 = vector.load %arg12[%c0_40, %c0_41] : memref<128x128xf32, #tpu.memory_space<vmem>>, vector<128x128xf32>
    tpu.vector_store %arg12[%c0_40, %c0_41], %111 {strides = array<i32>} : memref<128x128xf32, #tpu.memory_space<vmem>>, vector<128x128xf32>,
    %c0_42 = arith.constant 0 : index
    %c0_43 = arith.constant 0 : index
    %113 = vector.load %arg13[%c0_42, %c0_43] : memref<128x128xf32, #tpu.memory_space<vmem>>, vector<128x128xf32>
    tpu.vector_store %arg13[%c0_42, %c0_43], %95 {strides = array<i32>} : memref<128x128xf32, #tpu.memory_space<vmem>>, vector<128x128xf32>,
    %c0_44 = arith.constant 0 : index
    %c0_45 = arith.constant 0 : index
    %114 = vector.load %arg14[%c0_44, %c0_45] : memref<128x128xf32, #tpu.memory_space<vmem>>, vector<128x128xf32>
    tpu.vector_store %arg14[%c0_44, %c0_45], %84 {strides = array<i32>} : memref<128x128xf32, #tpu.memory_space<vmem>>, vector<128x128xf32>,
    return
  }
}

</mosaic_0001>

<bundles_post_ra>
// kernel: tpu_custom_call.1
= control target key start
LH: loop header
LB: loop body
LE: loop exit
PB: predicated region body
PF: predicated region fallthrough
CT: control target
= control target key end

     0   :  { %20 = vsyncpa [#allocation3], 0  ;;  %s6610_s0 = inlined_call_operand.vmem [shape: bf16[128,128], index: 0, kind: input, shape index: {}]   ;;  %s6611_s1 = inlined_call_operand.vmem [shape: bf16[128,8], index: 1, kind: input, shape index: {}]   ;;  %s6612_s2 = inlined_call_operand.hbm [shape: f32[128,128], index: 2, kind: input, shape index: {}]   ;;  %s6613_s3 = inlined_call_operand.hbm [shape: f32[128,128], index: 3, kind: input, shape index: {}]   ;;  %s6614_s4 = inlined_call_operand.hbm [shape: bf16[16,512], index: 4, kind: input, shape index: {}]   ;;  %s6615_s5 = inlined_call_operand.hbm [shape: bf16[256,512], index: 5, kind: input, shape index: {}]   ;;  %s6616_s6 = inlined_call_operand.vmem [shape: f32[1,512], index: 6, kind: input, shape index: {}]   ;;  %s6617_s7 = inlined_call_operand.vmem [shape: f32[3,128], index: 7, kind: input, shape index: {}]   ;;  %s6618_s8 = inlined_call_operand.hbm [shape: bf16[128,128], index: 8, kind: input, shape index: {}]   ;;  %s6619_s9 = inlined_call_operand.vmem [shape: f32[1,128], index: 9, kind: input, shape index: {}]   ;;  %s6620_s10 = inlined_call_operand.hbm [shape: bf16[128,128], index: 10, kind: input, shape index: {}]   ;;  %s6621_s11 = inlined_call_operand.vmem [shape: f32[1,128], index: 11, kind: input, shape index: {}]   ;;  %s6622_s12 = inlined_call_operand.hbm [shape: f32[128,128], index: 12, kind: output, shape index: {0}]   ;;  %s6623_s13 = inlined_call_operand.hbm [shape: f32[128,128], index: 13, kind: output, shape index: {1}]   ;;  %s6624_s14 = inlined_call_operand.hbm [shape: f32[128,128], index: 14, kind: output, shape index: {2}]  }
   0x1   :  { %21 = vsyncpa [#allocation6], 0 }
   0x2   :  { %22 = vsyncpa [#allocation9], 0 }
   0x3   :  { %23 = vsyncpa [#allocation12], 0 }
   0x4   :  { %24 = vsyncpa [#allocation4], 0 }
   0x5   :  { %25 = vsyncpa [#allocation15], 0  ;;  %s4754_s29 = smov [#allocation5]   ;;  %s4544_s17 = scalar_lea.hbm %s6613_s3, 2048 }
   0x6   :  { %s47_s30 = sshll.u32 %s4754_s29, 4  ;;  %p4545_p0 = scmp.ne.s32.totalorder %s6613_s3, %s4544_s17  ;;  %s48_s30 = int_to_ptr.vmem [resolvable:$true] %s47_s30 }
   0x7   :  { %p4548_p1 = scmp.lt.u32.totalorder %s4544_s17, %s6613_s3 }
   0x9   :  { %p4550_p2 = pnand %p4548_p1, %p4545_p0 }
   0xb   :  { %4553 = shalt.err (!%p4550_p2)
}
   0xc   :  { %s4554_s22 = scalar_lea.vmem %s48_s30, 2048  ;;  %p4559_p4 = scmp.lt.s32.totalorder %s48_s30, %s48_s30 }
   0xd   :  { %p4555_p3 = scmp.ne.s32.totalorder %s48_s30, %s4554_s22  ;;  %p4560_p5 = scmp.lt.s32.totalorder %s4554_s22, %s4554_s22 }
   0xf   :  { %p4561_p6 = por %p4560_p5, %p4559_p4 }
  0x11   :  { %p4562_p7 = pnand %p4561_p6, %p4555_p3 }
  0x13   :  { %4565 = shalt.err (!%p4562_p7)
}
  0x14   :  { %s4755_s23 = smov 128   ;;  %s4756_s24 = smov 8  }
  0x15   :  { %53 = dma.hbm_to_vmem [thread:$0]  %s6613_s3, 2048, %s48_s30, [#allocation6], %s4755_s23, %s4755_s23, %s4756_s24  }
  0x16   :  { %s4757_s27 = smov [#allocation8]   ;;  %s4758_s29 = smov [#allocation2]  }
  0x17   :  { %s71_s28 = sshll.u32 %s4757_s27, 4  ;;  %s35_s15 = sshll.u32 %s4758_s29, 4  ;;  %s72_s28 = int_to_ptr.vmem [resolvable:$true] %s71_s28  ;;  %s36_s15 = int_to_ptr.vmem [resolvable:$true] %s35_s15 }
  0x18   :  { %s4566_s18 = scalar_lea.hbm %s6615_s5, 8192 }
  0x19   :  { %p4567_p8 = scmp.ne.s32.totalorder %s6615_s5, %s4566_s18  ;;  %p4570_p9 = scmp.lt.u32.totalorder %s4566_s18, %s6615_s5 }
  0x1b   :  { %p4572_p10 = pnand %p4570_p9, %p4567_p8 }
  0x1d   :  { %4575 = shalt.err (!%p4572_p10)
}
  0x1e   :  { %s4576_s3 = scalar_lea.vmem %s72_s28, 8192  ;;  %p4581_p12 = scmp.lt.s32.totalorder %s72_s28, %s72_s28 }
  0x1f   :  { %p4577_p11 = scmp.ne.s32.totalorder %s72_s28, %s4576_s3  ;;  %p4582_p13 = scmp.lt.s32.totalorder %s4576_s3, %s4576_s3 }
  0x21   :  { %p4583_p0 = por %p4582_p13, %p4581_p12 }
  0x23   :  { %p4584_p1 = pnand %p4583_p0, %p4577_p11 }
  0x25   :  { %4587 = shalt.err (!%p4584_p1)
}
  0x26   :  { %s4759_s30 = smov 256   ;;  %s4760_s25 = smov 16  }
  0x27   :  { %77 = dma.hbm_to_vmem [thread:$0]  %s6615_s5, 8192, %s72_s28, [#allocation9], %s4759_s30, %s4759_s30, %s4760_s25  }
  0x28   :  { %s4588_s17 = scalar_lea.hbm %s6612_s2, 2048 }
  0x29   :  { %p4589_p2 = scmp.ne.s32.totalorder %s6612_s2, %s4588_s17  ;;  %p4592_p3 = scmp.lt.u32.totalorder %s4588_s17, %s6612_s2 }
  0x2b   :  { %p4594_p4 = pnand %p4592_p3, %p4589_p2 }
  0x2d   :  { %4597 = shalt.err (!%p4594_p4)
}
  0x2e   :  { %s4598_s22 = scalar_lea.vmem %s36_s15, 2048  ;;  %p4603_p6 = scmp.lt.s32.totalorder %s36_s15, %s36_s15 }
  0x2f   :  { %p4599_p5 = scmp.ne.s32.totalorder %s36_s15, %s4598_s22  ;;  %p4604_p7 = scmp.lt.s32.totalorder %s4598_s22, %s4598_s22 }
  0x31   :  { %p4605_p8 = por %p4604_p7, %p4603_p6 }
  0x33   :  { %p4606_p9 = pnand %p4605_p8, %p4599_p5 }
  0x35   :  { %4609 = shalt.err (!%p4606_p9)
}
  0x36   :  { %41 = dma.hbm_to_vmem [thread:$0]  %s6612_s2, 2048, %s36_s15, [#allocation3], %s4755_s23, %s4755_s23, %s4756_s24  }
  0x37   :  { %s4761_s3 = smov [#allocation7]   ;;  %s4762_s27 = smov [#allocation10]  }
  0x38   :  { %s59_s26 = sshll.u32 %s4761_s3, 4  ;;  %s87_s29 = sshll.u32 %s4762_s27, 4  ;;  %s60_s26 = int_to_ptr.vmem [resolvable:$true] %s59_s26  ;;  %s88_s29 = int_to_ptr.vmem [resolvable:$true] %s87_s29 }
  0x39   :  { %s4610_s18 = scalar_lea.hbm %s6614_s4, 512 }
  0x3a   :  { %p4611_p10 = scmp.ne.s32.totalorder %s6614_s4, %s4610_s18  ;;  %p4614_p11 = scmp.lt.u32.totalorder %s4610_s18, %s6614_s4 }
  0x3c   :  { %p4616_p12 = pnand %p4614_p11, %p4611_p10 }
  0x3e   :  { %4619 = shalt.err (!%p4616_p12)
}
  0x3f   :  { %s4620_s2 = scalar_lea.vmem %s60_s26, 512  ;;  %p4625_p0 = scmp.lt.s32.totalorder %s60_s26, %s60_s26 }
  0x40   :  { %p4621_p13 = scmp.ne.s32.totalorder %s60_s26, %s4620_s2  ;;  %p4626_p1 = scmp.lt.s32.totalorder %s4620_s2, %s4620_s2 }
  0x42   :  { %p4627_p2 = por %p4626_p1, %p4625_p0 }
  0x44   :  { %p4628_p3 = pnand %p4627_p2, %p4621_p13 }
  0x46   :  { %4631 = shalt.err (!%p4628_p3)
}
  0x47   :  { %65 = dma.hbm_to_vmem [thread:$0]  %s6614_s4, 512, %s60_s26, [#allocation6], %s4759_s30, %s4759_s30, %s4760_s25  }
  0x48   :  { %s4632_s27 = scalar_lea.hbm %s6618_s8, 1024 }
  0x49   :  { %p4633_p4 = scmp.ne.s32.totalorder %s6618_s8, %s4632_s27  ;;  %p4636_p5 = scmp.lt.u32.totalorder %s4632_s27, %s6618_s8 }
  0x4b   :  { %p4638_p6 = pnand %p4636_p5, %p4633_p4 }
  0x4d   :  { %4641 = shalt.err (!%p4638_p6)
}
  0x4e   :  { %s4642_s20 = scalar_lea.vmem %s88_s29, 1024  ;;  %p4647_p8 = scmp.lt.s32.totalorder %s88_s29, %s88_s29 }
  0x4f   :  { %p4643_p7 = scmp.ne.s32.totalorder %s88_s29, %s4642_s20  ;;  %p4648_p9 = scmp.lt.s32.totalorder %s4642_s20, %s4642_s20 }
  0x51   :  { %p4649_p10 = por %p4648_p9, %p4647_p8 }
  0x53   :  { %p4650_p11 = pnand %p4649_p10, %p4643_p7 }
  0x55   :  { %4653 = shalt.err (!%p4650_p11)
}
  0x56   :  { %s4763_s4 = smov 64   ;;  %s4764_s30 = smov 4  }
  0x57   :  { %93 = dma.hbm_to_vmem [thread:$0]  %s6618_s8, 1024, %s88_s29, [#allocation9], %s4763_s4, %s4763_s4, %s4764_s30  }
  0x58   :  { %s4765_s21 = smov [#allocation11]   ;;  %s4654_s5 = scalar_lea.hbm %s6620_s10, 1024 }
  0x59   :  { %s101_s22 = sshll.u32 %s4765_s21, 4  ;;  %p4655_p12 = scmp.ne.s32.totalorder %s6620_s10, %s4654_s5  ;;  %s102_s22 = int_to_ptr.vmem [resolvable:$true] %s101_s22 }
  0x5a   :  { %p4658_p13 = scmp.lt.u32.totalorder %s4654_s5, %s6620_s10 }
  0x5c   :  { %p4660_p0 = pnand %p4658_p13, %p4655_p12 }
  0x5e   :  { %4663 = shalt.err (!%p4660_p0)
}
  0x5f   :  { %s4664_s17 = scalar_lea.vmem %s102_s22, 1024  ;;  %p4669_p2 = scmp.lt.s32.totalorder %s102_s22, %s102_s22 }
  0x60   :  { %p4665_p1 = scmp.ne.s32.totalorder %s102_s22, %s4664_s17  ;;  %p4670_p3 = scmp.lt.s32.totalorder %s4664_s17, %s4664_s17 }
  0x62   :  { %p4671_p4 = por %p4670_p3, %p4669_p2 }
  0x64   :  { %p4672_p5 = pnand %p4671_p4, %p4665_p1 }
  0x66   :  { %4675 = shalt.err (!%p4672_p5)
}
  0x67   :  { %107 = dma.hbm_to_vmem [thread:$0]  %s6620_s10, 1024, %s102_s22, [#allocation12], %s4763_s4, %s4763_s4, %s4764_s30  }
  0x68   :  { %4742 = dma.done.wait [#allocation3], 2048  }
  0x69   :  { %4743 = vsyncadd [#allocation3], 4294965248 }
  0x6a   :  { %4744 = dma.done.wait [#allocation6], 2560  }
  0x6b   :  { %4745 = vsyncadd [#allocation6], 4294964736 }
  0x6c   :  { %4746 = dma.done.wait [#allocation9], 9216  }
  0x6d   :  { %4747 = vsyncadd [#allocation9], 4294958080 }
  0x6e   :  { %4748 = dma.done.wait [#allocation12], 1024  }
  0x6f   :  { %4749 = vsyncadd [#allocation12], 4294966272  ;;  %v4932_v0 = vld [vmem:[%s6611_s1] sm:$0xff]   ;;  %v4937_v1 = vld [vmem:[%s6611_s1 + $0x8] sm:$0xff]   ;;  %v4766_v20 = vmov 0   ;;  %vm486_vm0 = vcmask 64512  }
  0x70   :  { %3677 = vmatprep.subr.bf16.mxu0 %v4932_v0  ;;  %v4945_v2 = vld [vmem:[%s6611_s1 + $0x10] sm:$0xff]   ;;  %v4951_v3 = vld [vmem:[%s6611_s1 + $0x18] sm:$0xff]   ;;  %v4957_v4 = vld [vmem:[%s6610_s0] sm:$0xff]   ;;  %605 = vmatprep.mubr.bf16.mxu1 %v4766_v20  ;;  %vm556_vm1 = vcmask 130048  }
  0x71   :  { %3678 = vmatpush3.bf16.msra.mxu0 %v4932_v0  ;;  %3693 = vmatprep.mubr.bf16.mxu0 %v4957_v4  ;;  %v4965_v5 = vld [vmem:[%s6611_s1 + $0x20] sm:$0xff]   ;;  %v4971_v6 = vld [vmem:[%s6611_s1 + $0x28] sm:$0xff]   ;;  %v4977_v7 = vld [vmem:[%s6611_s1 + $0x30] sm:$0xff]  }
  0x72   :  { %3679 = vmatprep.subr.bf16.mxu0 %v4937_v1  ;;  %v4984_v8 = vld [vmem:[%s6611_s1 + $0x38] sm:$0xff]   ;;  %v4993_v9 = vld [vmem:[%s6610_s0 + $0x8] sm:$0xff]   ;;  %v4998_v10 = vld [vmem:[%s6610_s0 + $0x10] sm:$0xff]  }
  0x73   :  { %v5006_v11 = vld [vmem:[%s6610_s0 + $0x18] sm:$0xff]   ;;  %v5011_v12 = vld [vmem:[%s6610_s0 + $0x20] sm:$0xff]   ;;  %v5018_v13 = vld [vmem:[%s6610_s0 + $0x28] sm:$0xff]  }
  0x74   :  { %v5023_v14 = vld [vmem:[%s6610_s0 + $0x30] sm:$0xff]   ;;  %v5030_v15 = vld [vmem:[%s6610_s0 + $0x38] sm:$0xff]   ;;  %v161_v21 = vld [vmem:[#allocation2] sm:$0xff] }
  0x75   :  { %3680 = vmatpush3.bf16.msra.mxu0 %v4937_v1  ;;  %v3869_v16 = vld [vmem:[#allocation7 + $0x4] ss:$16 sps:$4 sm:$0xff]   ;;  %v3871_v17 = vld [vmem:[#allocation7 + $0x8] ss:$16 sps:$4 sm:$0xff]   ;;  %v3873_v18 = vld [vmem:[#allocation7 + $0xc] ss:$16 sps:$4 sm:$0xff]  }
  0x76   :  { %3681 = vmatprep.subr.bf16.mxu0 %v4945_v2  ;;  %v3874_v19 = vld [vmem:[#allocation7] ss:$16 sps:$4 sm:$0xff]   ;;  %573 = vmatprep.subr.bf16.mxu1 %v3869_v16  ;;  %v162_v22 = vld [vmem:[#allocation2 + $0x8] sm:$0xff]  ;;  %v164_v49 = vld [vmem:[#allocation2 + $0x18] sm:$0xff] }
  0x77   :  { %574 = vmatpush1.bf16.msra.mxu1 %v3874_v19  ;;  %v5035_v23 = vpack.c.bf16 %v162_v22, %v161_v21  ;;  %v163_v48 = vld [vmem:[#allocation2 + $0x10] sm:$0xff]  ;;  %v165_v53 = vld [vmem:[#allocation2 + $0x20] sm:$0xff]  ;;  %v166_v54 = vld [vmem:[#allocation2 + $0x28] sm:$0xff] }
  0x78   :  { %v5046_v51 = vpack.c.bf16 %v164_v49, %v163_v48  ;;  %v5056_v55 = vpack.c.bf16 %v166_v54, %v165_v53  ;;  %v167_v57 = vld [vmem:[#allocation2 + $0x30] sm:$0xff]  ;;  %v168_v58 = vld [vmem:[#allocation2 + $0x38] sm:$0xff]  ;;  %v169_v61 = vld [vmem:[#allocation2 + $0x40] sm:$0xff] }
  0x79   :  { %3682 = vmatpush3.bf16.msra.mxu0 %v4945_v2  ;;  %3709 = vmatprep.subr.bf16.mxu1 %v5035_v23  ;;  %v5062_v60 = vpack.c.bf16 %v168_v58, %v167_v57  ;;  %v170_v62 = vld [vmem:[#allocation2 + $0x48] sm:$0xff]  ;;  %v173_v19 = vld [vmem:[#allocation2 + $0x60] sm:$0xff] }
  0x7a   :  { %3683 = vmatprep.subr.bf16.mxu0 %v4951_v3  ;;  %v5070_v63 = vpack.c.bf16 %v170_v62, %v169_v61  ;;  %v174_v21 = vld [vmem:[#allocation2 + $0x68] sm:$0xff]  ;;  %v5173_v53 = vld [vmem:[#allocation8 + $0xe0] ss:$16 sps:$4 sm:$0xff]   ;;  %v5179_v57 = vld [vmem:[#allocation8 + $0x104] ss:$16 sps:$4 sm:$0xff]  }
  0x7b   :  { %v5084_v22 = vpack.c.bf16 %v174_v21, %v173_v19  ;;  %v3914_v48 = vld [vmem:[#allocation8 + $0xc8] ss:$16 sps:$4 sm:$0xff]   ;;  %v3916_v49 = vld [vmem:[#allocation8 + $0xcc] ss:$16 sps:$4 sm:$0xff]   ;;  %v5183_v61 = vld [vmem:[#allocation8 + $0x124] ss:$16 sps:$4 sm:$0xff]  }
  0x7c   :  { %v3920_v54 = vld [vmem:[#allocation8 + $0xe8] ss:$16 sps:$4 sm:$0xff]   ;;  %v3934_v62 = vld [vmem:[#allocation8 + $0x12c] ss:$16 sps:$4 sm:$0xff]  }
  0x7d   :  { %3684 = vmatpush3.bf16.msra.mxu0 %v4951_v3  ;;  %v3926_v58 = vld [vmem:[#allocation8 + $0x108] ss:$16 sps:$4 sm:$0xff]   ;;  %v3940_v21 = vld [vmem:[#allocation8 + $0x14c] ss:$16 sps:$4 sm:$0xff]  }
  0x7e   :  { %3685 = vmatprep.subr.bf16.mxu0 %v4965_v5  ;;  %v3938_v19 = vld [vmem:[#allocation8 + $0x148] ss:$16 sps:$4 sm:$0xff]  }
  0x81   :  { %3686 = vmatpush3.bf16.msra.mxu0 %v4965_v5 }
  0x82   :  { %3687 = vmatprep.subr.bf16.mxu0 %v4971_v6 }
  0x85   :  { %3688 = vmatpush3.bf16.msra.mxu0 %v4971_v6 }
  0x86   :  { %3689 = vmatprep.subr.bf16.mxu0 %v4977_v7 }
  0x89   :  { %3690 = vmatpush3.bf16.msra.mxu0 %v4977_v7 }
  0x8a   :  { %3691 = vmatprep.subr.bf16.mxu0 %v4984_v8 }
  0x8d   :  { %3692 = vmatpush3.bf16.msra.mxu0 %v4984_v8 }
  0x8e   :  { %686 = vmatprep.subr.bf16.mxu0 %v3873_v18 }
  0x90   :  { %3694 = vmatmul.mubr.bf16.vlgmr.msra.gmra.mrb[0].mxu0 %v4993_v9 }
  0x91   :  { %3697 = vmatprep.mubr.bf16.mxu0 %v4998_v10  ;;  %687 = vmatpush1.bf16.msra.mxu0 %v3871_v17 }
  0x98   :  { %3698 = vmatmul.mubr.bf16.gmra.mrb[4].mxu0 %v5006_v11 }
  0x99   :  { %3701 = vmatprep.mubr.bf16.mxu0 %v5011_v12 }
  0xa0   :  { %3702 = vmatmul.mubr.bf16.gmra.mrb[8].mxu0 %v5018_v13 }
  0xa1   :  { %3705 = vmatprep.mubr.bf16.mxu0 %v5023_v14 }
  0xa8   :  { %3706 = vmatmul.mubr.bf16.gmra.mrb[12].mxu0 %v5030_v15 }
  0xa9   :  { %718 = vmatprep.mubr.bf16.mxu0 %v4766_v20 }
 0x163   :  { %v3695_v24 = vpop.f32.mrb[0].mxu0 }
 0x164   :  { %v391_v25 = vpop.f32.mrb[1].mxu0 }
 0x165   :  { %v3696_v26 = vpop.f32.mrb[2].mxu0 }
 0x166   :  { %v455_v27 = vpack.c.bf16 %v3696_v26, %v3695_v24  ;;  %v394_v28 = vpop.f32.mrb[3].mxu0  ;;  %v175_v24 = vld [vmem:[#allocation2 + $0x70] sm:$0xff] }
 0x167   :  { %v454_v29 = vpack.c.bf16 %v394_v28, %v391_v25  ;;  %v176_v25 = vld [vmem:[#allocation2 + $0x78] sm:$0xff] }
 0x169   :  { %470 = vrot.lane.b32.xlu0 %v454_v29, %s4756_s24 }
 0x16b   :  { %v3699_v30 = vpop.f32.mrb[4].mxu0 }
 0x16c   :  { %v407_v31 = vpop.f32.mrb[5].mxu0 }
 0x16d   :  { %472 = vrot.lane.b32.xlu0 %v455_v27, %s4756_s24  ;;  %v3700_v32 = vpop.f32.mrb[6].mxu0  ;;  %v5090_v27 = vpack.c.bf16 %v176_v25, %v175_v24  ;;  %v3946_v24 = vld [vmem:[#allocation8 + $0x16c] ss:$16 sps:$4 sm:$0xff]   ;;  %v5197_v25 = vld [vmem:[#allocation8 + $0x160] ss:$16 sps:$4 sm:$0xff]  }
 0x16e   :  { %v457_v33 = vpack.c.bf16 %v3700_v32, %v3699_v30  ;;  %v410_v34 = vpop.f32.mrb[7].mxu0 }
 0x16f   :  { %v456_v35 = vpack.c.bf16 %v410_v34, %v407_v31  ;;  %v5147_v34 = vld [vmem:[#allocation8 + $0x64] ss:$16 sps:$4 sm:$0xff]  }
 0x171   :  { %474 = vrot.lane.b32.xlu1 %v456_v35, %s4756_s24  ;;  %v3898_v35 = vld [vmem:[#allocation8 + $0x6c] ss:$16 sps:$4 sm:$0xff]  }
 0x173   :  { %v3703_v36 = vpop.f32.mrb[8].mxu0 }
 0x174   :  { %v423_v37 = vpop.f32.mrb[9].mxu0 }
 0x175   :  { %476 = vrot.lane.b32.xlu1 %v457_v33, %s4756_s24  ;;  %v3704_v38 = vpop.f32.mrb[10].mxu0  ;;  %v3892_v33 = vld [vmem:[#allocation8 + $0x4c] ss:$16 sps:$4 sm:$0xff]  }
 0x176   :  { %v459_v39 = vpack.c.bf16 %v3704_v38, %v3703_v36  ;;  %v426_v40 = vpop.f32.mrb[11].mxu0  ;;  %v5149_v36 = vld [vmem:[#allocation8 + $0x60] ss:$16 sps:$4 sm:$0xff]  }
 0x177   :  { %v458_v41 = vpack.c.bf16 %v426_v40, %v423_v37  ;;  %v3896_v37 = vld [vmem:[#allocation8 + $0x68] ss:$16 sps:$4 sm:$0xff]   ;;  %v5153_v38 = vld [vmem:[#allocation8 + $0x80] ss:$16 sps:$4 sm:$0xff]  }
 0x178   :  { %v3902_v40 = vld [vmem:[#allocation8 + $0x88] ss:$16 sps:$4 sm:$0xff]  }
 0x179   :  { %480 = vrot.lane.b32.xlu1 %v459_v39, %s4756_s24  ;;  %478 = vrot.lane.b32.xlu0 %v458_v41, %s4756_s24  ;;  %v5155_v39 = vld [vmem:[#allocation8 + $0x84] ss:$16 sps:$4 sm:$0xff]   ;;  %v3904_v41 = vld [vmem:[#allocation8 + $0x8c] ss:$16 sps:$4 sm:$0xff]  }
 0x17b   :  { %v3707_v42 = vpop.f32.mrb[12].mxu0 }
 0x17c   :  { %v439_v43 = vpop.f32.mrb[13].mxu0 }
 0x17d   :  { %v3708_v44 = vpop.f32.mrb[14].mxu0 }
 0x17e   :  { %v461_v45 = vpack.c.bf16 %v3708_v44, %v3707_v42  ;;  %v442_v46 = vpop.f32.mrb[15].mxu0  ;;  %v5159_v42 = vld [vmem:[#allocation8 + $0xa4] ss:$16 sps:$4 sm:$0xff]   ;;  %v5161_v44 = vld [vmem:[#allocation8 + $0xa0] ss:$16 sps:$4 sm:$0xff]  }
 0x17f   :  { %v460_v47 = vpack.c.bf16 %v442_v46, %v439_v43  ;;  %v3910_v43 = vld [vmem:[#allocation8 + $0xac] ss:$16 sps:$4 sm:$0xff]   ;;  %v5165_v46 = vld [vmem:[#allocation8 + $0xc0] ss:$16 sps:$4 sm:$0xff]  }
 0x180   :  { %484 = vrot.lane.b32.xlu1 %v461_v45, %s4756_s24  ;;  %v3908_v45 = vld [vmem:[#allocation8 + $0xa8] ss:$16 sps:$4 sm:$0xff]  }
 0x181   :  { %482 = vrot.lane.b32.xlu0 %v460_v47, %s4756_s24  ;;  %v5167_v47 = vld [vmem:[#allocation8 + $0xc4] ss:$16 sps:$4 sm:$0xff]  }
 0x1db   :  { %v471_v50 = vpop.permute.xlu0 %470 }
 0x1dc   :  { %v489_v52 = vsel %vm486_vm0, %v4932_v0, %v471_v50  ;;  %v171_v0 = vld [vmem:[#allocation2 + $0x50] sm:$0xff] }
 0x1dd   :  { %3400 = vmatmul.mubr.msk.bf16.vlgmr.msra.gmra.mrb[0].mxu1 %vm556_vm1, %v489_v52  ;;  %3408 = vmatmul.mubr.msk.bf16.vlgmr.msra.gmra.mrb[16].mxu0 %vm556_vm1, %v489_v52  ;;  %v5171_v50 = vld [vmem:[#allocation8 + $0xe4] ss:$16 sps:$4 sm:$0xff]   ;;  %v3922_v52 = vld [vmem:[#allocation8 + $0xec] ss:$16 sps:$4 sm:$0xff]  }
 0x1de   :  { %3710 = vmatpush3.bf16.msra.mxu1 %v5035_v23  ;;  %615 = vmatprep.mubr.bf16.mxu1 %v4766_v20 }
 0x1df   :  { %728 = vmatprep.mubr.bf16.mxu0 %v4766_v20  ;;  %3711 = vmatprep.subr.bf16.mxu1 %v5046_v51  ;;  %v473_v56 = vpop.permute.xlu0 %472 }
 0x1e0   :  { %v492_v59 = vsel %vm486_vm0, %v4937_v1, %v473_v56  ;;  %v172_v1 = vld [vmem:[#allocation2 + $0x58] sm:$0xff]  ;;  %v5177_v56 = vld [vmem:[#allocation8 + $0x100] ss:$16 sps:$4 sm:$0xff]  }
 0x1e1   :  { %v5076_v18 = vpack.c.bf16 %v172_v1, %v171_v0  ;;  %v5185_v0 = vld [vmem:[#allocation8 + $0x120] ss:$16 sps:$4 sm:$0xff]   ;;  %v3932_v1 = vld [vmem:[#allocation8 + $0x128] ss:$16 sps:$4 sm:$0xff]  }
 0x1e2   :  { %3712 = vmatpush3.bf16.msra.mxu1 %v5046_v51 }
 0x1e3   :  { %3713 = vmatprep.subr.bf16.mxu1 %v5056_v55  ;;  %v475_v16 = vpop.permute.xlu1 %474 }
 0x1e4   :  { %v495_v17 = vsel %vm486_vm0, %v4945_v2, %v475_v16  ;;  %v5189_v16 = vld [vmem:[#allocation8 + $0x140] ss:$16 sps:$4 sm:$0xff]  }
 0x1e5   :  { %3401 = vmatmul.mubr.msk.bf16.gmra.mrb[4].mxu1 %vm556_vm1, %v492_v59  ;;  %3409 = vmatmul.mubr.msk.bf16.gmra.mrb[20].mxu0 %vm556_vm1, %v492_v59  ;;  %v3928_v59 = vld [vmem:[#allocation8 + $0x10c] ss:$16 sps:$4 sm:$0xff]  }
 0x1e6   :  { %625 = vmatprep.mubr.bf16.mxu1 %v4766_v20  ;;  %738 = vmatprep.mubr.bf16.mxu0 %v4766_v20 }
 0x1e7   :  { %3714 = vmatpush3.bf16.msra.mxu1 %v5056_v55  ;;  %v477_v2 = vpop.permute.xlu1 %476 }
 0x1e8   :  { %3715 = vmatprep.subr.bf16.mxu1 %v5062_v60  ;;  %v498_v26 = vsel %vm486_vm0, %v4951_v3, %v477_v2  ;;  %v5195_v2 = vld [vmem:[#allocation8 + $0x164] ss:$16 sps:$4 sm:$0xff]  }
 0x1eb   :  { %3716 = vmatpush3.bf16.msra.mxu1 %v5062_v60  ;;  %v479_v28 = vpop.permute.xlu0 %478  ;;  %v481_v29 = vpop.permute.xlu1 %480 }
 0x1ec   :  { %3717 = vmatprep.subr.bf16.mxu1 %v5070_v63  ;;  %v501_v3 = vsel %vm486_vm0, %v4965_v5, %v479_v28  ;;  %v504_v30 = vsel %vm486_vm0, %v4971_v6, %v481_v29  ;;  %v5201_v28 = vld [vmem:[#allocation8 + $0x180] ss:$16 sps:$4 sm:$0xff]   ;;  %v3950_v29 = vld [vmem:[#allocation8 + $0x188] ss:$16 sps:$4 sm:$0xff]  }
 0x1ed   :  { %3402 = vmatmul.mubr.msk.bf16.gmra.mrb[8].mxu1 %vm556_vm1, %v495_v17  ;;  %3410 = vmatmul.mubr.msk.bf16.gmra.mrb[24].mxu0 %vm556_vm1, %v495_v17  ;;  %v5191_v17 = vld [vmem:[#allocation8 + $0x144] ss:$16 sps:$4 sm:$0xff]  }
 0x1ee   :  { %635 = vmatprep.mubr.bf16.mxu1 %v4766_v20  ;;  %748 = vmatprep.mubr.bf16.mxu0 %v4766_v20 }
 0x1ef   :  { %3718 = vmatpush3.bf16.msra.mxu1 %v5070_v63 }
 0x1f0   :  { %3719 = vmatprep.subr.bf16.mxu1 %v5076_v18 }
 0x1f2   :  { %v485_v6 = vpop.permute.xlu1 %484 }
 0x1f3   :  { %3720 = vmatpush3.bf16.msra.mxu1 %v5076_v18  ;;  %v483_v5 = vpop.permute.xlu0 %482  ;;  %v510_v32 = vsel %vm486_vm0, %v4984_v8, %v485_v6  ;;  %v5130_v8 = vld [vmem:[#allocation8 + $0x4] ss:$16 sps:$4 sm:$0xff]   ;;  %v5209_v6 = vld [vmem:[#allocation8 + $0x1a0] ss:$16 sps:$4 sm:$0xff]  }
 0x1f4   :  { %3721 = vmatprep.subr.bf16.mxu1 %v5084_v22  ;;  %v507_v31 = vsel %vm486_vm0, %v4977_v7, %v483_v5  ;;  %v5128_v7 = vld [vmem:[#allocation8] ss:$16 sps:$4 sm:$0xff]   ;;  %1232 = vmatprep.subr.bf16.mxu0 %v5130_v8  ;;  %v5207_v5 = vld [vmem:[#allocation8 + $0x1a4] ss:$16 sps:$4 sm:$0xff]  }
 0x1f5   :  { %3403 = vmatmul.mubr.msk.bf16.gmra.mrb[12].mxu1 %vm556_vm1, %v498_v26  ;;  %3411 = vmatmul.mubr.msk.bf16.gmra.mrb[28].mxu0 %vm556_vm1, %v498_v26  ;;  %v3944_v26 = vld [vmem:[#allocation8 + $0x168] ss:$16 sps:$4 sm:$0xff]  }
 0x1f6   :  { %645 = vmatprep.mubr.bf16.mxu1 %v4766_v20  ;;  %758 = vmatprep.mubr.bf16.mxu0 %v4766_v20 }
 0x1f7   :  { %3722 = vmatpush3.bf16.msra.mxu1 %v5084_v22  ;;  %1233 = vmatpush1.bf16.msra.mxu0 %v5128_v7 }
 0x1f8   :  { %3723 = vmatprep.subr.bf16.mxu1 %v5090_v27 }
 0x1fb   :  { %3724 = vmatpush3.bf16.msra.mxu1 %v5090_v27 }
 0x1fd   :  { %3404 = vmatmul.mubr.msk.bf16.gmra.mrb[16].mxu1 %vm556_vm1, %v501_v3  ;;  %3412 = vmatmul.mubr.msk.bf16.gmra.mrb[32].mxu0 %vm556_vm1, %v501_v3  ;;  %v5203_v3 = vld [vmem:[#allocation8 + $0x184] ss:$16 sps:$4 sm:$0xff]  }
 0x1fe   :  { %655 = vmatprep.mubr.bf16.mxu1 %v4766_v20  ;;  %768 = vmatprep.mubr.bf16.mxu0 %v4766_v20 }
 0x205   :  { %3405 = vmatmul.mubr.msk.bf16.gmra.mrb[20].mxu1 %vm556_vm1, %v504_v30  ;;  %3413 = vmatmul.mubr.msk.bf16.gmra.mrb[36].mxu0 %vm556_vm1, %v504_v30  ;;  %v3952_v30 = vld [vmem:[#allocation8 + $0x18c] ss:$16 sps:$4 sm:$0xff]  }
 0x206   :  { %665 = vmatprep.mubr.bf16.mxu1 %v4766_v20  ;;  %778 = vmatprep.mubr.bf16.mxu0 %v4766_v20 }
 0x20d   :  { %3406 = vmatmul.mubr.msk.bf16.gmra.mrb[24].mxu1 %vm556_vm1, %v507_v31  ;;  %3414 = vmatmul.mubr.msk.bf16.gmra.mrb[40].mxu0 %vm556_vm1, %v507_v31  ;;  %v3958_v31 = vld [vmem:[#allocation8 + $0x1ac] ss:$16 sps:$4 sm:$0xff]  }
 0x20e   :  { %675 = vmatprep.mubr.bf16.mxu1 %v4766_v20  ;;  %788 = vmatprep.mubr.bf16.mxu0 %v4766_v20  ;;  %v3878_v20 = vld [vmem:[#allocation8 + $0x8] ss:$16 sps:$4 sm:$0xff]  }
 0x215   :  { %3407 = vmatmul.mubr.msk.bf16.gmra.mrb[28].mxu1 %vm556_vm1, %v510_v32  ;;  %3415 = vmatmul.mubr.msk.bf16.gmra.mrb[44].mxu0 %vm556_vm1, %v510_v32  ;;  %v3956_v32 = vld [vmem:[#allocation8 + $0x1a8] ss:$16 sps:$4 sm:$0xff]  }
 0x216   :  { %3725 = vmatprep.mubr.bf16.mxu1 %v4957_v4  ;;  %v3880_v4 = vld [vmem:[#allocation8 + $0xc] ss:$16 sps:$4 sm:$0xff]  }
 0x217   :  { %1345 = vmatprep.subr.bf16.mxu1 %v3880_v4  ;;  %v5215_v4 = vld [vmem:[#allocation8 + $0x1c4] ss:$16 sps:$4 sm:$0xff]  }
 0x21d   :  { %3726 = vmatmul.mubr.bf16.vlgmr.msra.gmra.mrb[32].mxu1 %v4993_v9  ;;  %v5135_v9 = vld [vmem:[#allocation8 + $0x24] ss:$16 sps:$4 sm:$0xff]  }
 0x21e   :  { %3729 = vmatprep.mubr.bf16.mxu1 %v4998_v10  ;;  %1346 = vmatpush1.bf16.msra.mxu1 %v3878_v20  ;;  %v3886_v10 = vld [vmem:[#allocation8 + $0x2c] ss:$16 sps:$4 sm:$0xff]   ;;  %v5213_v20 = vld [vmem:[#allocation8 + $0x1c0] ss:$16 sps:$4 sm:$0xff]  }
 0x21f   :  { %1234 = vmatprep.subr.bf16.mxu0 %v5135_v9  ;;  %1347 = vmatprep.subr.bf16.mxu1 %v3886_v10  ;;  %v3962_v10 = vld [vmem:[#allocation8 + $0x1c8] ss:$16 sps:$4 sm:$0xff]  }
 0x225   :  { %3730 = vmatmul.mubr.bf16.gmra.mrb[36].mxu1 %v5006_v11  ;;  %v5137_v11 = vld [vmem:[#allocation8 + $0x20] ss:$16 sps:$4 sm:$0xff]  }
 0x226   :  { %3733 = vmatprep.mubr.bf16.mxu1 %v5011_v12  ;;  %v3884_v12 = vld [vmem:[#allocation8 + $0x28] ss:$16 sps:$4 sm:$0xff]   ;;  %1235 = vmatpush1.bf16.msra.mxu0 %v5137_v11 }
 0x227   :  { %1348 = vmatpush1.bf16.msra.mxu1 %v3884_v12  ;;  %v3964_v12 = vld [vmem:[#allocation8 + $0x1cc] ss:$16 sps:$4 sm:$0xff]  }
 0x228   :  { %1349 = vmatprep.subr.bf16.mxu1 %v3892_v33  ;;  %v3970_v33 = vld [vmem:[#allocation8 + $0x1ec] ss:$16 sps:$4 sm:$0xff]  }
 0x22d   :  { %3734 = vmatmul.mubr.bf16.gmra.mrb[40].mxu1 %v5018_v13  ;;  %v5141_v13 = vld [vmem:[#allocation8 + $0x40] ss:$16 sps:$4 sm:$0xff]  }
 0x22e   :  { %3737 = vmatprep.mubr.bf16.mxu1 %v5023_v14  ;;  %v5143_v14 = vld [vmem:[#allocation8 + $0x44] ss:$16 sps:$4 sm:$0xff]  }
 0x22f   :  { %1236 = vmatprep.subr.bf16.mxu0 %v5143_v14 }
 0x230   :  { %1237 = vmatpush1.bf16.msra.mxu0 %v5141_v13 }
 0x231   :  { %1238 = vmatprep.subr.bf16.mxu0 %v5147_v34 }
 0x234   :  { %1239 = vmatpush1.bf16.msra.mxu0 %v5149_v36 }
 0x235   :  { %3738 = vmatmul.mubr.bf16.gmra.mrb[44].mxu1 %v5030_v15  ;;  %v3890_v15 = vld [vmem:[#allocation8 + $0x48] ss:$16 sps:$4 sm:$0xff]   ;;  %1240 = vmatprep.subr.bf16.mxu0 %v5155_v39 }
 0x236   :  { %1350 = vmatpush1.bf16.msra.mxu1 %v3890_v15  ;;  %v5219_v15 = vld [vmem:[#allocation8 + $0x1e4] ss:$16 sps:$4 sm:$0xff]  }
 0x237   :  { %1351 = vmatprep.subr.bf16.mxu1 %v3898_v35  ;;  %v5221_v35 = vld [vmem:[#allocation8 + $0x1e0] ss:$16 sps:$4 sm:$0xff]  }
 0x238   :  { %1241 = vmatpush1.bf16.msra.mxu0 %v5153_v38 }
 0x239   :  { %1242 = vmatprep.subr.bf16.mxu0 %v5159_v42 }
 0x23a   :  { %1352 = vmatpush1.bf16.msra.mxu1 %v3896_v37  ;;  %v3968_v37 = vld [vmem:[#allocation8 + $0x1e8] ss:$16 sps:$4 sm:$0xff]  }
 0x23b   :  { %1353 = vmatprep.subr.bf16.mxu1 %v3904_v41 }
 0x23c   :  { %1243 = vmatpush1.bf16.msra.mxu0 %v5161_v44 }
 0x23d   :  { %1244 = vmatprep.subr.bf16.mxu0 %v5167_v47 }
 0x23e   :  { %1354 = vmatpush1.bf16.msra.mxu1 %v3902_v40 }
 0x23f   :  { %1355 = vmatprep.subr.bf16.mxu1 %v3910_v43 }
 0x240   :  { %1245 = vmatpush1.bf16.msra.mxu0 %v5165_v46 }
 0x241   :  { %1246 = vmatprep.subr.bf16.mxu0 %v5171_v50 }
 0x242   :  { %1356 = vmatpush1.bf16.msra.mxu1 %v3908_v45 }
 0x243   :  { %1357 = vmatprep.subr.bf16.mxu1 %v3916_v49 }
 0x244   :  { %1247 = vmatpush1.bf16.msra.mxu0 %v5173_v53 }
 0x245   :  { %1248 = vmatprep.subr.bf16.mxu0 %v5179_v57 }
 0x246   :  { %1358 = vmatpush1.bf16.msra.mxu1 %v3914_v48 }
 0x247   :  { %1359 = vmatprep.subr.bf16.mxu1 %v3922_v52 }
 0x248   :  { %1249 = vmatpush1.bf16.msra.mxu0 %v5177_v56 }
 0x249   :  { %1250 = vmatprep.subr.bf16.mxu0 %v5183_v61 }
 0x24a   :  { %1360 = vmatpush1.bf16.msra.mxu1 %v3920_v54 }
 0x24b   :  { %1361 = vmatprep.subr.bf16.mxu1 %v3928_v59 }
 0x24c   :  { %1251 = vmatpush1.bf16.msra.mxu0 %v5185_v0 }
 0x24d   :  { %1252 = vmatprep.subr.bf16.mxu0 %v5191_v17 }
 0x24e   :  { %1362 = vmatpush1.bf16.msra.mxu1 %v3926_v58 }
 0x24f   :  { %1363 = vmatprep.subr.bf16.mxu1 %v3934_v62 }
 0x250   :  { %1253 = vmatpush1.bf16.msra.mxu0 %v5189_v16 }
 0x251   :  { %1254 = vmatprep.subr.bf16.mxu0 %v5195_v2 }
 0x252   :  { %1364 = vmatpush1.bf16.msra.mxu1 %v3932_v1 }
 0x253   :  { %1365 = vmatprep.subr.bf16.mxu1 %v3940_v21 }
 0x254   :  { %1255 = vmatpush1.bf16.msra.mxu0 %v5197_v25 }
 0x255   :  { %1256 = vmatprep.subr.bf16.mxu0 %v5203_v3 }
 0x256   :  { %1366 = vmatpush1.bf16.msra.mxu1 %v3938_v19 }
 0x257   :  { %1367 = vmatprep.subr.bf16.mxu1 %v3946_v24 }
 0x258   :  { %1257 = vmatpush1.bf16.msra.mxu0 %v5201_v28 }
 0x259   :  { %1258 = vmatprep.subr.bf16.mxu0 %v5207_v5 }
 0x25a   :  { %1368 = vmatpush1.bf16.msra.mxu1 %v3944_v26 }
 0x25b   :  { %1369 = vmatprep.subr.bf16.mxu1 %v3952_v30 }
 0x25c   :  { %1259 = vmatpush1.bf16.msra.mxu0 %v5209_v6 }
 0x25d   :  { %1260 = vmatprep.subr.bf16.mxu0 %v5215_v4 }
 0x25e   :  { %1370 = vmatpush1.bf16.msra.mxu1 %v3950_v29 }
 0x25f   :  { %1371 = vmatprep.subr.bf16.mxu1 %v3958_v31 }
 0x260   :  { %1261 = vmatpush1.bf16.msra.mxu0 %v5213_v20 }
 0x261   :  { %1262 = vmatprep.subr.bf16.mxu0 %v5219_v15 }
 0x262   :  { %1372 = vmatpush1.bf16.msra.mxu1 %v3956_v32 }
 0x263   :  { %1373 = vmatprep.subr.bf16.mxu1 %v3964_v12 }
 0x264   :  { %1263 = vmatpush1.bf16.msra.mxu0 %v5221_v35 }
 0x266   :  { %1374 = vmatpush1.bf16.msra.mxu1 %v3962_v10 }
 0x267   :  { %1375 = vmatprep.subr.bf16.mxu1 %v3970_v33 }
 0x26a   :  { %1376 = vmatpush1.bf16.msra.mxu1 %v3968_v37 }
 0x26b   :  { %2127 = vmatprep.subr.bf16.mxu1 %v5130_v8 }
 0x2b0   :  { %v5226_v40 = vpop.f32.mrb[0].mxu1  ;;  %v5228_v41 = vpop.f32.mrb[16].mxu0 }
 0x2b1   :  { %v5230_v43 = vpop.f32.mrb[1].mxu1  ;;  %v5232_v45 = vpop.f32.mrb[17].mxu0 }
 0x2b2   :  { %v5234_v48 = vpop.f32.mrb[2].mxu1  ;;  %v5236_v49 = vpop.f32.mrb[18].mxu0 }
 0x2b3   :  { %v5238_v52 = vpop.f32.mrb[3].mxu1  ;;  %v5240_v54 = vpop.f32.mrb[19].mxu0 }
 0x2b8   :  { %v5242_v58 = vpop.f32.mrb[4].mxu1  ;;  %v5244_v59 = vpop.f32.mrb[20].mxu0 }
 0x2b9   :  { %v5246_v8 = vpop.f32.mrb[5].mxu1  ;;  %v5248_v62 = vpop.f32.mrb[21].mxu0 }
 0x2ba   :  { %v5250_v1 = vpop.f32.mrb[6].mxu1  ;;  %v5252_v19 = vpop.f32.mrb[22].mxu0 }
 0x2bb   :  { %6704 = vst [vmem:[#allocation23_spill] sm:$0xff] %v5250_v1  ;;  %6705 = vst [vmem:[#allocation24_spill] sm:$0xff] %v5252_v19  ;;  %v5254_v21 = vpop.f32.mrb[7].mxu1  ;;  %v5256_v24 = vpop.f32.mrb[23].mxu0 }
 0x2bc   :  { %6706 = vst [vmem:[#allocation25_spill] sm:$0xff] %v5254_v21  ;;  %6707 = vst [vmem:[#allocation26_spill] sm:$0xff] %v5256_v24 }
 0x2c0   :  { %v5258_v26 = vpop.f32.mrb[8].mxu1  ;;  %v5260_v29 = vpop.f32.mrb[24].mxu0 }
 0x2c1   :  { %6708 = vst [vmem:[#allocation27_spill] sm:$0xff] %v5258_v26  ;;  %6709 = vst [vmem:[#allocation28_spill] sm:$0xff] %v5260_v29  ;;  %v5262_v30 = vpop.f32.mrb[9].mxu1  ;;  %v5264_v31 = vpop.f32.mrb[25].mxu0 }
 0x2c2   :  { %6710 = vst [vmem:[#allocation29_spill] sm:$0xff] %v5262_v30  ;;  %6711 = vst [vmem:[#allocation30_spill] sm:$0xff] %v5264_v31  ;;  %v5266_v32 = vpop.f32.mrb[10].mxu1  ;;  %v5268_v10 = vpop.f32.mrb[26].mxu0 }
 0x2c3   :  { %6712 = vst [vmem:[#allocation31_spill] sm:$0xff] %v5266_v32  ;;  %6713 = vst [vmem:[#allocation32_spill] sm:$0xff] %v5268_v10  ;;  %v5270_v12 = vpop.f32.mrb[11].mxu1  ;;  %v5272_v33 = vpop.f32.mrb[27].mxu0 }
 0x2c4   :  { %6714 = vst [vmem:[#allocation33_spill] sm:$0xff] %v5270_v12  ;;  %6715 = vst [vmem:[#allocation34_spill] sm:$0xff] %v5272_v33 }
 0x2c8   :  { %v5274_v37 = vpop.f32.mrb[12].mxu1  ;;  %v5276_v21 = vpop.f32.mrb[28].mxu0 }
 0x2c9   :  { %6716 = vst [vmem:[#allocation35_spill] sm:$0xff] %v5274_v37  ;;  %6717 = vst [vmem:[#allocation36_spill] sm:$0xff] %v5276_v21  ;;  %v5278_v24 = vpop.f32.mrb[13].mxu1  ;;  %v5280_v26 = vpop.f32.mrb[29].mxu0 }
 0x2ca   :  { %6718 = vst [vmem:[#allocation37_spill] sm:$0xff] %v5278_v24  ;;  %6719 = vst [vmem:[#allocation38_spill] sm:$0xff] %v5280_v26  ;;  %v5282_v29 = vpop.f32.mrb[14].mxu1  ;;  %v5284_v30 = vpop.f32.mrb[30].mxu0 }
 0x2cb   :  { %6720 = vst [vmem:[#allocation39_spill] sm:$0xff] %v5282_v29  ;;  %6721 = vst [vmem:[#allocation40_spill] sm:$0xff] %v5284_v30  ;;  %v5286_v31 = vpop.f32.mrb[15].mxu1  ;;  %v5288_v32 = vpop.f32.mrb[31].mxu0 }
 0x2cc   :  { %6722 = vst [vmem:[#allocation41_spill] sm:$0xff] %v5286_v31  ;;  %6723 = vst [vmem:[#allocation42_spill] sm:$0xff] %v5288_v32 }
 0x2d0   :  { %v5290_v10 = vpop.f32.mrb[16].mxu1  ;;  %v5292_v12 = vpop.f32.mrb[32].mxu0 }
 0x2d1   :  { %6724 = vst [vmem:[#allocation43_spill] sm:$0xff] %v5290_v10  ;;  %6725 = vst [vmem:[#allocation44_spill] sm:$0xff] %v5292_v12  ;;  %v5294_v33 = vpop.f32.mrb[17].mxu1  ;;  %v5296_v37 = vpop.f32.mrb[33].mxu0 }
 0x2d2   :  { %6726 = vst [vmem:[#allocation45_spill] sm:$0xff] %v5294_v33  ;;  %6727 = vst [vmem:[#allocation46_spill] sm:$0xff] %v5296_v37  ;;  %v5298_v21 = vpop.f32.mrb[18].mxu1  ;;  %v5300_v24 = vpop.f32.mrb[34].mxu0 }
 0x2d3   :  { %6728 = vst [vmem:[#allocation47_spill] sm:$0xff] %v5298_v21  ;;  %6729 = vst [vmem:[#allocation48_spill] sm:$0xff] %v5300_v24  ;;  %v5302_v26 = vpop.f32.mrb[19].mxu1  ;;  %v5304_v29 = vpop.f32.mrb[35].mxu0 }
 0x2d4   :  { %6730 = vst [vmem:[#allocation49_spill] sm:$0xff] %v5302_v26  ;;  %6731 = vst [vmem:[#allocation50_spill] sm:$0xff] %v5304_v29 }
 0x2d8   :  { %v5306_v30 = vpop.f32.mrb[20].mxu1  ;;  %v5308_v31 = vpop.f32.mrb[36].mxu0 }
 0x2d9   :  { %6732 = vst [vmem:[#allocation51_spill] sm:$0xff] %v5306_v30  ;;  %6733 = vst [vmem:[#allocation52_spill] sm:$0xff] %v5308_v31  ;;  %v5310_v32 = vpop.f32.mrb[21].mxu1  ;;  %v5312_v10 = vpop.f32.mrb[37].mxu0 }
 0x2da   :  { %6734 = vst [vmem:[#allocation53_spill] sm:$0xff] %v5310_v32  ;;  %6735 = vst [vmem:[#allocation54_spill] sm:$0xff] %v5312_v10  ;;  %v5314_v12 = vpop.f32.mrb[22].mxu1  ;;  %v5316_v33 = vpop.f32.mrb[38].mxu0 }
 0x2db   :  { %6736 = vst [vmem:[#allocation55_spill] sm:$0xff] %v5314_v12  ;;  %6737 = vst [vmem:[#allocation56_spill] sm:$0xff] %v5316_v33  ;;  %v5318_v37 = vpop.f32.mrb[23].mxu1  ;;  %v5320_v21 = vpop.f32.mrb[39].mxu0 }
 0x2dc   :  { %6738 = vst [vmem:[#allocation57_spill] sm:$0xff] %v5318_v37  ;;  %6739 = vst [vmem:[#allocation58_spill] sm:$0xff] %v5320_v21 }
 0x2e0   :  { %v5322_v24 = vpop.f32.mrb[24].mxu1  ;;  %v5324_v26 = vpop.f32.mrb[40].mxu0 }
 0x2e1   :  { %6740 = vst [vmem:[#allocation59_spill] sm:$0xff] %v5322_v24  ;;  %6741 = vst [vmem:[#allocation60_spill] sm:$0xff] %v5324_v26  ;;  %v5326_v29 = vpop.f32.mrb[25].mxu1  ;;  %v5328_v30 = vpop.f32.mrb[41].mxu0 }
 0x2e2   :  { %6742 = vst [vmem:[#allocation61_spill] sm:$0xff] %v5326_v29  ;;  %6743 = vst [vmem:[#allocation62_spill] sm:$0xff] %v5328_v30  ;;  %v5330_v31 = vpop.f32.mrb[26].mxu1  ;;  %v5332_v32 = vpop.f32.mrb[42].mxu0 }
 0x2e3   :  { %6744 = vst [vmem:[#allocation63_spill] sm:$0xff] %v5330_v31  ;;  %6745 = vst [vmem:[#allocation64_spill] sm:$0xff] %v5332_v32  ;;  %v5334_v10 = vpop.f32.mrb[27].mxu1  ;;  %v5336_v12 = vpop.f32.mrb[43].mxu0 }
 0x2e4   :  { %6746 = vst [vmem:[#allocation65_spill] sm:$0xff] %v5334_v10  ;;  %6747 = vst [vmem:[#allocation66_spill] sm:$0xff] %v5336_v12 }
 0x2e8   :  { %v5338_v33 = vpop.f32.mrb[28].mxu1  ;;  %v5340_v37 = vpop.f32.mrb[44].mxu0 }
 0x2e9   :  { %6748 = vst [vmem:[#allocation67_spill] sm:$0xff] %v5338_v33  ;;  %6749 = vst [vmem:[#allocation68_spill] sm:$0xff] %v5340_v37  ;;  %v5342_v21 = vpop.f32.mrb[29].mxu1  ;;  %v5344_v24 = vpop.f32.mrb[45].mxu0 }
 0x2ea   :  { %6750 = vst [vmem:[#allocation69_spill] sm:$0xff] %v5342_v21  ;;  %6751 = vst [vmem:[#allocation70_spill] sm:$0xff] %v5344_v24  ;;  %v5346_v26 = vpop.f32.mrb[30].mxu1  ;;  %v5348_v29 = vpop.f32.mrb[46].mxu0 }
 0x2eb   :  { %6752 = vst [vmem:[#allocation71_spill] sm:$0xff] %v5346_v26  ;;  %6753 = vst [vmem:[#allocation72_spill] sm:$0xff] %v5348_v29  ;;  %v5350_v30 = vpop.f32.mrb[31].mxu1  ;;  %v5352_v31 = vpop.f32.mrb[47].mxu0 }
 0x2ec   :  { %6754 = vst [vmem:[#allocation73_spill] sm:$0xff] %v5350_v30  ;;  %6755 = vst [vmem:[#allocation74_spill] sm:$0xff] %v5352_v31 }
 0x2f0   :  { %v3727_v32 = vpop.f32.mrb[32].mxu1 }
 0x2f1   :  { %v841_v10 = vpop.f32.mrb[33].mxu1 }
 0x2f2   :  { %v3728_v19 = vpop.f32.mrb[34].mxu1 }
 0x2f3   :  { %v905_v12 = vpack.c.bf16 %v3728_v19, %v3727_v32  ;;  %v844_v1 = vpop.f32.mrb[35].mxu1 }
 0x2f4   :  { %v904_v33 = vpack.c.bf16 %v844_v1, %v841_v10 }
 0x2f6   :  { %1264 = vmatprep.mubr.bf16.mxu0 %v904_v33  ;;  %1377 = vmatprep.mubr.bf16.mxu1 %v904_v33 }
 0x2f7   :  { %1265 = vmatmul.mubr.bf16.vlgmr.msra.gmra.mrb[48].mxu0 %v5035_v23  ;;  %1378 = vmatmul.mubr.bf16.vlgmr.msra.gmra.mrb[48].mxu1 %v5035_v23 }
 0x2f8   :  { %1274 = vmatprep.mubr.bf16.mxu0 %v905_v12  ;;  %1387 = vmatprep.mubr.bf16.mxu1 %v905_v12  ;;  %v3731_v24 = vpop.f32.mrb[36].mxu1  ;;  %v6787_v12 = vld [vmem:[#allocation32_spill] sm:$0xff] }
 0x2f9   :  { %v857_v29 = vpop.f32.mrb[37].mxu1  ;;  %2128 = vmatpush1.bf16.msra.mxu1 %v5128_v7 }
 0x2fa   :  { %v3732_v30 = vpop.f32.mrb[38].mxu1  ;;  %2129 = vmatprep.subr.bf16.mxu1 %v5135_v9 }
 0x2fb   :  { %v907_v31 = vpack.c.bf16 %v3732_v30, %v3731_v24  ;;  %v860_v26 = vpop.f32.mrb[39].mxu1 }
 0x2fc   :  { %v906_v19 = vpack.c.bf16 %v860_v26, %v857_v29 }
 0x2fd   :  { %2130 = vmatpush1.bf16.msra.mxu1 %v5137_v11 }
 0x2fe   :  { %2131 = vmatprep.subr.bf16.mxu1 %v5143_v14 }
 0x2ff   :  { %1275 = vmatmul.mubr.bf16.gmra.mrb[52].mxu0 %v5046_v51  ;;  %1388 = vmatmul.mubr.bf16.gmra.mrb[52].mxu1 %v5046_v51 }
 0x300   :  { %1284 = vmatprep.mubr.bf16.mxu0 %v906_v19  ;;  %1397 = vmatprep.mubr.bf16.mxu1 %v906_v19  ;;  %v3735_v23 = vpop.f32.mrb[40].mxu1  ;;  %v6789_v19 = vld [vmem:[#allocation33_spill] sm:$0xff] }
 0x301   :  { %v873_v1 = vpop.f32.mrb[41].mxu1  ;;  %2132 = vmatpush1.bf16.msra.mxu1 %v5141_v13 }
 0x302   :  { %v3736_v7 = vpop.f32.mrb[42].mxu1  ;;  %2133 = vmatprep.subr.bf16.mxu1 %v5147_v34 }
 0x303   :  { %v909_v9 = vpack.c.bf16 %v3736_v7, %v3735_v23  ;;  %v876_v24 = vpop.f32.mrb[43].mxu1 }
 0x304   :  { %v908_v26 = vpack.c.bf16 %v876_v24, %v873_v1  ;;  %v6791_v1 = vld [vmem:[#allocation34_spill] sm:$0xff] }
 0x305   :  { %2134 = vmatpush1.bf16.msra.mxu1 %v5149_v36  ;;  %v257_v36 = vld [vmem:[%s6616_s6] sm:$0xf] }
 0x306   :  { %2135 = vmatprep.subr.bf16.mxu1 %v5155_v39 }
 0x307   :  { %1285 = vmatmul.mubr.bf16.gmra.mrb[56].mxu0 %v5056_v55  ;;  %1398 = vmatmul.mubr.bf16.gmra.mrb[56].mxu1 %v5056_v55  ;;  %v4499_v55 = vld [vmem:[%s6610_s0] sm:$0xff]  }
 0x308   :  { %1294 = vmatprep.mubr.bf16.mxu0 %v907_v31  ;;  %1407 = vmatprep.mubr.bf16.mxu1 %v907_v31  ;;  %v3739_v51 = vpop.f32.mrb[44].mxu1  ;;  %v6785_v31 = vld [vmem:[#allocation31_spill] sm:$0xff] }
 0x309   :  { %v889_v11 = vpop.f32.mrb[45].mxu1  ;;  %2136 = vmatpush1.bf16.msra.mxu1 %v5153_v38 }
 0x30a   :  { %v3740_v13 = vpop.f32.mrb[46].mxu1  ;;  %2137 = vmatprep.subr.bf16.mxu1 %v5159_v42 }
 0x30b   :  { %v911_v14 = vpack.c.bf16 %v3740_v13, %v3739_v51  ;;  %v892_v34 = vpop.f32.mrb[47].mxu1  ;;  %v6793_v51 = vld [vmem:[#allocation35_spill] sm:$0xff]  ;;  %v6795_v13 = vld [vmem:[#allocation36_spill] sm:$0xff] }
 0x30c   :  { %v910_v29 = vpack.c.bf16 %v892_v34, %v889_v11 }
 0x30d   :  { %2138 = vmatpush1.bf16.msra.mxu1 %v5161_v44 }
 0x30e   :  { %2139 = vmatprep.subr.bf16.mxu1 %v5167_v47 }
 0x30f   :  { %1295 = vmatmul.mubr.bf16.gmra.mrb[60].mxu0 %v5062_v60  ;;  %1408 = vmatmul.mubr.bf16.gmra.mrb[60].mxu1 %v5062_v60  ;;  %v516_v60 = vlaneseq }
 0x310   :  { %1304 = vmatprep.mubr.bf16.mxu0 %v908_v26  ;;  %1417 = vmatprep.mubr.bf16.mxu1 %v908_v26 }
 0x311   :  { %2140 = vmatpush1.bf16.msra.mxu1 %v5165_v46 }
 0x312   :  { %2141 = vmatprep.subr.bf16.mxu1 %v5171_v50 }
 0x315   :  { %2142 = vmatpush1.bf16.msra.mxu1 %v5173_v53 }
 0x316   :  { %2143 = vmatprep.subr.bf16.mxu1 %v5179_v57 }
 0x317   :  { %1305 = vmatmul.mubr.bf16.gmra.mrb[64].mxu0 %v5070_v63  ;;  %1418 = vmatmul.mubr.bf16.gmra.mrb[64].mxu1 %v5070_v63  ;;  %v517_v63 = vshrl.u32 %v516_v60, 7 }
 0x318   :  { %1314 = vmatprep.mubr.bf16.mxu0 %v909_v9  ;;  %1427 = vmatprep.mubr.bf16.mxu1 %v909_v9 }
 0x319   :  { %2144 = vmatpush1.bf16.msra.mxu1 %v5177_v56  ;;  %v530_v38 = vsub.s32 3, %v517_v63 }
 0x31a   :  { %2145 = vmatprep.subr.bf16.mxu1 %v5183_v61 }
 0x31b   :  { %v5413_v46 = vrot.slane %v257_v36, %v530_v38 }
 0x31d   :  { %2146 = vmatpush1.bf16.msra.mxu1 %v5185_v0  ;;  %6756 = vst [vmem:[#allocation75_spill] sm:$0xff] %v5413_v46  ;;  %v5429_v56 = vadd.f32 %v5232_v45, %v5413_v46  ;;  %v5525_v7 = vadd.f32 %v6791_v1, %v5413_v46 }
 0x31e   :  { %2147 = vmatprep.subr.bf16.mxu1 %v5191_v17 }
 0x31f   :  { %1315 = vmatmul.mubr.bf16.gmra.mrb[68].mxu0 %v5076_v18  ;;  %1428 = vmatmul.mubr.bf16.gmra.mrb[68].mxu1 %v5076_v18  ;;  %v518_v18 = vsub.s32 0, %v517_v63  ;;  %6760 = vst [vmem:[#allocation79_spill] sm:$0xff] %v5429_v56  ;;  %6792 = vst [vmem:[#allocation34_spill] sm:$0xff] %v5525_v7 }
 0x320   :  { %1324 = vmatprep.mubr.bf16.mxu0 %v910_v29  ;;  %1437 = vmatprep.mubr.bf16.mxu1 %v910_v29 }
 0x321   :  { %2148 = vmatpush1.bf16.msra.mxu1 %v5189_v16  ;;  %v5407_v39 = vrot.slane %v257_v36, %v518_v18  ;;  %v5445_v16 = vadd.f32 %v5240_v54, %v5413_v46 }
 0x322   :  { %2149 = vmatprep.subr.bf16.mxu1 %v5195_v2 }
 0x323   :  { %v5417_v47 = vadd.f32 %v5226_v40, %v5407_v39  ;;  %v5433_v57 = vadd.f32 %v5234_v48, %v5407_v39  ;;  %6764 = vst [vmem:[#allocation83_spill] sm:$0xff] %v5445_v16  ;;  %v5449_v17 = vadd.f32 %v5242_v58, %v5407_v39  ;;  %v6773_v40 = vld [vmem:[#allocation25_spill] sm:$0xff]  ;;  %v6777_v48 = vld [vmem:[#allocation27_spill] sm:$0xff]  ;;  %v5499_v58 = vld [vmem:[#allocation5 + $0x8] sm:$0xff]  ;;  %v5511_v32 = vadd.f32 %v6785_v31, %v5407_v39 }
 0x324   :  { %v5531_v11 = vadd.f32 %v6793_v51, %v5407_v39 }
 0x325   :  { %2150 = vmatpush1.bf16.msra.mxu1 %v5197_v25  ;;  %6757 = vst [vmem:[#allocation76_spill] sm:$0xff] %v5417_v47  ;;  %6761 = vst [vmem:[#allocation80_spill] sm:$0xff] %v5433_v57  ;;  %v5455_v25 = vld [vmem:[#allocation5] sm:$0xff] }
 0x326   :  { %2151 = vmatprep.subr.bf16.mxu1 %v5203_v3  ;;  %6765 = vst [vmem:[#allocation84_spill] sm:$0xff] %v5449_v17  ;;  %6786 = vst [vmem:[#allocation31_spill] sm:$0xff] %v5511_v32 }
 0x327   :  { %1325 = vmatmul.mubr.bf16.gmra.mrb[72].mxu0 %v5084_v22  ;;  %1438 = vmatmul.mubr.bf16.gmra.mrb[72].mxu1 %v5084_v22  ;;  %v526_v22 = vsub.s32 2, %v517_v63  ;;  %6794 = vst [vmem:[#allocation35_spill] sm:$0xff] %v5531_v11 }
 0x328   :  { %1334 = vmatprep.mubr.bf16.mxu0 %v911_v14  ;;  %1447 = vmatprep.mubr.bf16.mxu1 %v911_v14 }
 0x329   :  { %2152 = vmatpush1.bf16.msra.mxu1 %v5201_v28  ;;  %v5409_v42 = vrot.slane %v257_v36, %v526_v22  ;;  %v5460_v28 = vld [vmem:[%s6617_s7] ss:$0 sm:$0xff]  ;;  %v6799_v22 = vld [vmem:[#allocation38_spill] sm:$0xff] }
 0x32a   :  { %2153 = vmatprep.subr.bf16.mxu1 %v5207_v5  ;;  %v5468_v5 = vadd.f32 %v5248_v62, %v5413_v46  ;;  %v6783_v62 = vld [vmem:[#allocation30_spill] sm:$0xff]  ;;  %v1526_v10 = vmul.f32 %v5460_v28, %v5455_v25  ;;  %v1527_v60 = vmul.f32 %v5460_v28, %v5499_v58 }
 0x32b   :  { %v5421_v50 = vadd.f32 %v5228_v41, %v5409_v42  ;;  %v5437_v61 = vadd.f32 %v5236_v49, %v5409_v42  ;;  %v5453_v2 = vadd.f32 %v5244_v59, %v5409_v42  ;;  %v5493_v49 = vadd.f32 %v6777_v48, %v5407_v39  ;;  %v6781_v59 = vld [vmem:[#allocation29_spill] sm:$0xff]  ;;  %v6803_v48 = vld [vmem:[#allocation40_spill] sm:$0xff] }
 0x32c   :  { %6768 = vst [vmem:[#allocation87_spill] sm:$0xff] %v5468_v5  ;;  %v5507_v30 = vadd.f32 %v6783_v62, %v5413_v46  ;;  %v5517_v33 = vadd.f32 %v6787_v12, %v5409_v42  ;;  %v5535_v14 = vadd.f32 %v6795_v13, %v5409_v42 }
 0x32d   :  { %2154 = vmatpush1.bf16.msra.mxu1 %v5209_v6  ;;  %6758 = vst [vmem:[#allocation77_spill] sm:$0xff] %v5421_v50  ;;  %6762 = vst [vmem:[#allocation81_spill] sm:$0xff] %v5437_v61  ;;  %v6769_v6 = vld [vmem:[#allocation23_spill] sm:$0xff] }
 0x32e   :  { %2155 = vmatprep.subr.bf16.mxu1 %v5215_v4  ;;  %6766 = vst [vmem:[#allocation85_spill] sm:$0xff] %v5453_v2  ;;  %v6771_v4 = vld [vmem:[#allocation24_spill] sm:$0xff]  ;;  %6778 = vst [vmem:[#allocation27_spill] sm:$0xff] %v5493_v49 }
 0x32f   :  { %1335 = vmatmul.mubr.bf16.gmra.mrb[76].mxu0 %v5090_v27  ;;  %1448 = vmatmul.mubr.bf16.gmra.mrb[76].mxu1 %v5090_v27  ;;  %v522_v27 = vsub.s32 1, %v517_v63  ;;  %6784 = vst [vmem:[#allocation30_spill] sm:$0xff] %v5507_v30  ;;  %6788 = vst [vmem:[#allocation32_spill] sm:$0xff] %v5517_v33  ;;  %v6797_v63 = vld [vmem:[#allocation37_spill] sm:$0xff] }
 0x330   :  { %3757 = vmatprep.mubr.bf16.mxu0 %v4499_v55  ;;  %6796 = vst [vmem:[#allocation36_spill] sm:$0xff] %v5535_v14 }
 0x331   :  { %2156 = vmatpush1.bf16.msra.mxu1 %v5213_v20  ;;  %v5411_v44 = vrot.slane %v257_v36, %v522_v27  ;;  %v5472_v20 = vadd.f32 %v6769_v6, %v5407_v39  ;;  %v5548_v36 = vadd.f32 %v6799_v22, %v5413_v46  ;;  %v6811_v22 = vld [vmem:[#allocation44_spill] sm:$0xff] }
 0x332   :  { %2157 = vmatprep.subr.bf16.mxu1 %v5219_v15  ;;  %v5476_v15 = vadd.f32 %v6771_v4, %v5409_v42 }
 0x333   :  { %v5425_v53 = vadd.f32 %v5230_v43, %v5411_v44  ;;  %v5441_v0 = vadd.f32 %v5238_v52, %v5411_v44  ;;  %v5464_v3 = vadd.f32 %v5246_v8, %v5411_v44  ;;  %6770 = vst [vmem:[#allocation23_spill] sm:$0xff] %v5472_v20  ;;  %v5485_v41 = vadd.f32 %v6773_v40, %v5411_v44  ;;  %v6775_v43 = vld [vmem:[#allocation26_spill] sm:$0xff]  ;;  %v6779_v52 = vld [vmem:[#allocation28_spill] sm:$0xff]  ;;  %v6801_v40 = vld [vmem:[#allocation39_spill] sm:$0xff] }
 0x334   :  { %6772 = vst [vmem:[#allocation24_spill] sm:$0xff] %v5476_v15  ;;  %v5489_v45 = vadd.f32 %v6775_v43, %v5413_v46  ;;  %v5497_v54 = vadd.f32 %v6779_v52, %v5409_v42  ;;  %v5503_v8 = vadd.f32 %v6781_v59, %v5411_v44  ;;  %v5521_v23 = vadd.f32 %v6789_v19, %v5411_v44  ;;  %v6805_v19 = vld [vmem:[#allocation41_spill] sm:$0xff] }
 0x335   :  { %2158 = vmatpush1.bf16.msra.mxu1 %v5221_v35  ;;  %6759 = vst [vmem:[#allocation78_spill] sm:$0xff] %v5425_v53  ;;  %6763 = vst [vmem:[#allocation82_spill] sm:$0xff] %v5441_v0  ;;  %v5481_v35 = vld [vmem:[%s6617_s7 + $0x1] ss:$0 sm:$0xff]  ;;  %v5544_v18 = vadd.f32 %v6797_v63, %v5411_v44  ;;  %v5555_v43 = vadd.f32 %v6801_v40, %v5407_v39  ;;  %v5559_v52 = vadd.f32 %v6803_v48, %v5409_v42  ;;  %v5573_v63 = vld [vmem:[#allocation5 + $0x10] sm:$0xff] }
 0x336   :  { %6767 = vst [vmem:[#allocation86_spill] sm:$0xff] %v5464_v3  ;;  %6774 = vst [vmem:[#allocation25_spill] sm:$0xff] %v5485_v41  ;;  %v1658_v26 = vmul.f32 %v5481_v35, %v5455_v25  ;;  %v1659_v4 = vmul.f32 %v5481_v35, %v5499_v58  ;;  %v5566_v1 = vadd.f32 %v6805_v19, %v5411_v44  ;;  %v6813_v19 = vld [vmem:[#allocation45_spill] sm:$0xff] }
 0x337   :  { %6776 = vst [vmem:[#allocation26_spill] sm:$0xff] %v5489_v45  ;;  %6780 = vst [vmem:[#allocation28_spill] sm:$0xff] %v5497_v54 }
 0x338   :  { %6782 = vst [vmem:[#allocation29_spill] sm:$0xff] %v5503_v8  ;;  %6790 = vst [vmem:[#allocation33_spill] sm:$0xff] %v5521_v23 }
 0x339   :  { %6798 = vst [vmem:[#allocation37_spill] sm:$0xff] %v5544_v18  ;;  %6800 = vst [vmem:[#allocation38_spill] sm:$0xff] %v5548_v36 }
 0x33a   :  { %6802 = vst [vmem:[#allocation39_spill] sm:$0xff] %v5555_v43  ;;  %6804 = vst [vmem:[#allocation40_spill] sm:$0xff] %v5559_v52 }
 0x33b   :  { %6806 = vst [vmem:[#allocation41_spill] sm:$0xff] %v5566_v1 }
 0x3ca   :  { %v1266_v9 = vpop.f32.mrb[48].mxu0  ;;  %v1379_v24 = vpop.f32.mrb[48].mxu1 }
 0x3cb   :  { %v1458_v34 = vadd.f32 %v1266_v9, %v5417_v47  ;;  %v1268_v29 = vpop.f32.mrb[49].mxu0  ;;  %v5538_v55 = vpop.f32.mrb[49].mxu1  ;;  %v6807_v9 = vld [vmem:[#allocation42_spill] sm:$0xff] }
 0x3cc   :  { %v1459_v27 = vadd.f32 %v1268_v29, %v5425_v53  ;;  %v1270_v38 = vpop.f32.mrb[50].mxu0  ;;  %v1383_v6 = vpop.f32.mrb[50].mxu1  ;;  %v5570_v51 = vadd.f32 %v6807_v9, %v5413_v46 }
 0x3cd   :  { %v1542_v59 = vadd.f32 %v1526_v10, %v1458_v34  ;;  %v1462_v62 = vadd.f32 %v1270_v38, %v5433_v57  ;;  %v1272_v31 = vpop.f32.mrb[51].mxu0  ;;  %v5562_v12 = vpop.f32.mrb[51].mxu1  ;;  %v6809_v10 = vld [vmem:[#allocation43_spill] sm:$0xff]  ;;  %v5581_v38 = vadd.f32 %v6811_v22, %v5409_v42  ;;  %v5585_v57 = vadd.f32 %v6813_v19, %v5411_v44 }
 0x3ce   :  { %6808 = vst [vmem:[#allocation42_spill] sm:$0xff] %v5570_v51  ;;  %v1674_v13 = vadd.f32 %v1658_v26, %v1459_v27  ;;  %v1463_v29 = vadd.f32 %v1272_v31, %v5441_v0  ;;  %v5577_v34 = vadd.f32 %v6809_v10, %v5407_v39  ;;  %v6815_v26 = vld [vmem:[#allocation46_spill] sm:$0xff]  ;;  %v1460_v10 = vadd.f32 %v1379_v24, %v5421_v50 }
 0x3cf   :  { %6812 = vst [vmem:[#allocation44_spill] sm:$0xff] %v5581_v38  ;;  %v3481_v40 = vmul.f32 -1.442695, %v1542_v59  ;;  %v1543_v48 = vadd.f32 %v1527_v60, %v1462_v62  ;;  %6814 = vst [vmem:[#allocation45_spill] sm:$0xff] %v5585_v57  ;;  %v5589_v27 = vadd.f32 %v6815_v26, %v5413_v46  ;;  %v5591_v0 = vld [vmem:[#allocation5 + $0x18] sm:$0xff]  ;;  %v1528_v59 = vmul.f32 %v5460_v28, %v5573_v63 }
 0x3d0   :  { %6810 = vst [vmem:[#allocation43_spill] sm:$0xff] %v5577_v34  ;;  %v3498_v31 = vmul.f32 -1.442695, %v1674_v13  ;;  %v1675_v9 = vadd.f32 %v1659_v4, %v1463_v29  ;;  %v1464_v60 = vadd.f32 %v1383_v6, %v5437_v61  ;;  %v1660_v26 = vmul.f32 %v5481_v35, %v5573_v63 }
 0x3d1   :  { %6816 = vst [vmem:[#allocation46_spill] sm:$0xff] %v5589_v27  ;;  %3987 = vpow2.f32 %v3481_v40  ;;  %v3482_v53 = vmul.f32 -1.442695, %v1543_v48  ;;  %v1529_v40 = vmul.f32 %v5460_v28, %v5591_v0  ;;  %v6817_v48 = vld [vmem:[#allocation47_spill] sm:$0xff] }
 0x3d2   :  { %3989 = vpow2.f32 %v3498_v31  ;;  %v3499_v62 = vmul.f32 -1.442695, %v1675_v9  ;;  %v1276_v22 = vpop.f32.mrb[52].mxu0  ;;  %v1389_v19 = vpop.f32.mrb[52].mxu1  ;;  %v5607_v6 = vadd.f32 %v6817_v48, %v5407_v39  ;;  %v6819_v48 = vld [vmem:[#allocation48_spill] sm:$0xff] }
 0x3d3   :  { %3991 = vpow2.f32 %v3482_v53  ;;  %v1466_v4 = vadd.f32 %v1276_v22, %v5449_v17  ;;  %v1468_v13 = vadd.f32 %v1389_v19, %v5453_v2  ;;  %v1278_v29 = vpop.f32.mrb[53].mxu0  ;;  %v5601_v24 = vpop.f32.mrb[53].mxu1  ;;  %v1661_v53 = vmul.f32 %v5481_v35, %v5591_v0 }
 0x3d4   :  { %6818 = vst [vmem:[#allocation47_spill] sm:$0xff] %v5607_v6  ;;  %3993 = vpow2.f32 %v3499_v62  ;;  %v1467_v31 = vadd.f32 %v1278_v29, %v5464_v3  ;;  %v1280_v9 = vpop.f32.mrb[54].mxu0  ;;  %v1393_v61 = vpop.f32.mrb[54].mxu1  ;;  %v5618_v47 = vadd.f32 %v6819_v48, %v5409_v42  ;;  %v5621_v3 = vld [vmem:[#allocation5 + $0x20] sm:$0xff] }
 0x3d5   :  { %3995 = vtanh.f32 %v1460_v10  ;;  %v1544_v22 = vadd.f32 %v1528_v59, %v1466_v4  ;;  %v1470_v19 = vadd.f32 %v1280_v9, %v5472_v20  ;;  %v1472_v2 = vadd.f32 %v1393_v61, %v5476_v15  ;;  %v1282_v17 = vpop.f32.mrb[55].mxu0  ;;  %v5614_v50 = vpop.f32.mrb[55].mxu1  ;;  %v6821_v10 = vld [vmem:[#allocation49_spill] sm:$0xff]  ;;  %v6823_v9 = vld [vmem:[#allocation51_spill] sm:$0xff] }
 0x3d6   :  { %6820 = vst [vmem:[#allocation48_spill] sm:$0xff] %v5618_v47  ;;  %3997 = vtanh.f32 %v1464_v60  ;;  %v1676_v62 = vadd.f32 %v1660_v26, %v1467_v31  ;;  %v1471_v29 = vadd.f32 %v1282_v17, %v5485_v41  ;;  %v5625_v59 = vadd.f32 %v6821_v10, %v5411_v44  ;;  %v5631_v60 = vld [vmem:[#allocation5 + $0x28] sm:$0xff] }
 0x3d7   :  { %v3483_v4 = vmul.f32 -1.442695, %v1544_v22  ;;  %3999 = vtanh.f32 %v1468_v13  ;;  %v1545_v61 = vadd.f32 %v1529_v40, %v1470_v19  ;;  %v5629_v15 = vadd.f32 %v6823_v9, %v5407_v39  ;;  %6825 = vst [vmem:[#allocation88_spill] sm:$0xff] %v5631_v60  ;;  %v6826_v17 = vld [vmem:[#allocation52_spill] sm:$0xff]  ;;  %v6828_v13 = vld [vmem:[#allocation53_spill] sm:$0xff] }
 0x3d8   :  { %6822 = vst [vmem:[#allocation49_spill] sm:$0xff] %v5625_v59  ;;  %v3500_v20 = vmul.f32 -1.442695, %v1676_v62  ;;  %4001 = vtanh.f32 %v1472_v2  ;;  %v1677_v48 = vadd.f32 %v1661_v53, %v1471_v29  ;;  %v5635_v26 = vadd.f32 %v6826_v17, %v5409_v42 }
 0x3d9   :  { %6824 = vst [vmem:[#allocation51_spill] sm:$0xff] %v5629_v15  ;;  %4003 = vpow2.f32 %v3483_v4  ;;  %v3484_v31 = vmul.f32 -1.442695, %v1545_v61  ;;  %v1530_v22 = vmul.f32 %v5460_v28, %v5621_v3  ;;  %v5641_v40 = vadd.f32 %v6828_v13, %v5411_v44 }
 0x3da   :  { %6827 = vst [vmem:[#allocation52_spill] sm:$0xff] %v5635_v26  ;;  %4005 = vpow2.f32 %v3500_v20  ;;  %v3501_v19 = vmul.f32 -1.442695, %v1677_v48  ;;  %v1286_v62 = vpop.f32.mrb[56].mxu0  ;;  %v1399_v2 = vpop.f32.mrb[56].mxu1  ;;  %v1662_v53 = vmul.f32 %v5481_v35, %v5621_v3  ;;  %v1531_v17 = vmul.f32 %v5460_v28, %v5631_v60  ;;  %v6830_v20 = vld [vmem:[#allocation55_spill] sm:$0xff] }
 0x3db   :  { %6829 = vst [vmem:[#allocation53_spill] sm:$0xff] %v5641_v40  ;;  %v3988_v29 = vpop.eup %3987  ;;  %4007 = vpow2.f32 %v3484_v31  ;;  %v1474_v10 = vadd.f32 %v1286_v62, %v5493_v49  ;;  %v1476_v4 = vadd.f32 %v1399_v2, %v5497_v54  ;;  %v1288_v61 = vpop.f32.mrb[57].mxu0  ;;  %v5653_v48 = vadd.f32 %v6830_v20, %v5407_v39 }
 0x3dc   :  { %v5647_v9 = vpop.f32.mrb[57].mxu1  ;;  %v3990_v13 = vpop.eup %3989  ;;  %v1606_v41 = vadd.f32 1.0, %v3988_v29  ;;  %4009 = vpow2.f32 %v3501_v19  ;;  %v1475_v21 = vadd.f32 %v1288_v61, %v5503_v8  ;;  %v1663_v19 = vmul.f32 %v5481_v35, %v5631_v60  ;;  %v5661_v29 = vld [vmem:[#allocation5 + $0x30] sm:$0xff] }
 0x3dd   :  { %6831 = vst [vmem:[#allocation55_spill] sm:$0xff] %v5653_v48  ;;  %v1290_v31 = vpop.f32.mrb[58].mxu0  ;;  %v1403_v27 = vpop.f32.mrb[58].mxu1  ;;  %v1738_v49 = vadd.f32 1.0, %v3990_v13  ;;  %v1546_v2 = vadd.f32 %v1530_v22, %v1474_v10  ;;  %4011 = vtanh.f32 %v1476_v4  ;;  %6833 = vst [vmem:[#allocation90_spill] sm:$0xff] %v5661_v29  ;;  %v6834_v4 = vld [vmem:[#allocation56_spill] sm:$0xff] }
 0x3de   :  { %v3992_v62 = vpop.eup %3991  ;;  %v1478_v54 = vadd.f32 %v1290_v31, %v5511_v32  ;;  %v1292_v37 = vpop.f32.mrb[59].mxu0  ;;  %4013 = vrcp.f32 %v1606_v41  ;;  %v1678_v20 = vadd.f32 %v1662_v53, %v1475_v21  ;;  %v5667_v31 = vadd.f32 %v6834_v4, %v5409_v42  ;;  %v5670_v53 = vld [vmem:[#allocation5 + $0x38] sm:$0xff] }
 0x3df   :  { %v5657_v46 = vpop.f32.mrb[59].mxu1  ;;  %v3994_v51 = vpop.eup %3993  ;;  %v1607_v36 = vadd.f32 1.0, %v3992_v62  ;;  %4015 = vrcp.f32 %v1738_v49  ;;  %v3485_v13 = vmul.f32 -1.442695, %v1546_v2  ;;  %v1479_v21 = vadd.f32 %v1292_v37, %v5521_v23  ;;  %6836 = vst [vmem:[#allocation91_spill] sm:$0xff] %v5670_v53 }
 0x3e0   :  { %6832 = vst [vmem:[#allocation89_spill] sm:$0xff] %v5657_v46  ;;  %v3996_v61 = vpop.eup %3995  ;;  %v1739_v8 = vadd.f32 1.0, %v3994_v51  ;;  %v1547_v22 = vadd.f32 %v1531_v17, %v1478_v54  ;;  %6835 = vst [vmem:[#allocation56_spill] sm:$0xff] %v5667_v31  ;;  %v3502_v41 = vmul.f32 -1.442695, %v1678_v20  ;;  %v1480_v49 = vadd.f32 %v1403_v27, %v5517_v33  ;;  %v5677_v51 = vld [vmem:[#allocation5 + $0x40] sm:$0xff] }
 0x3e1   :  { %v5663_v10 = vpop.eup %3997  ;;  %4017 = vrcp.f32 %v1607_v36  ;;  %v1532_v54 = vmul.f32 %v5460_v28, %v5661_v29  ;;  %v6837_v36 = vld [vmem:[#allocation57_spill] sm:$0xff]  ;;  %v1679_v37 = vadd.f32 %v1663_v19, %v1479_v21  ;;  %v1533_v31 = vmul.f32 %v5460_v28, %v5670_v53 }
 0x3e2   :  { %v5672_v62 = vpop.eup %3999  ;;  %4019 = vrcp.f32 %v1739_v8  ;;  %v3486_v32 = vmul.f32 -1.442695, %v1547_v22  ;;  %v5683_v2 = vadd.f32 %v6837_v36, %v5411_v44  ;;  %v1296_v20 = vpop.f32.mrb[60].mxu0  ;;  %v1664_v8 = vmul.f32 %v5481_v35, %v5661_v29 }
 0x3e3   :  { %v5679_v17 = vpop.eup %4001  ;;  %4021 = vpow2.f32 %v3485_v13  ;;  %v1409_v4 = vpop.f32.mrb[60].mxu1  ;;  %v1482_v27 = vadd.f32 %v1296_v20, %v5531_v11  ;;  %v1665_v36 = vmul.f32 %v5481_v35, %v5670_v53 }
 0x3e4   :  { %6838 = vst [vmem:[#allocation57_spill] sm:$0xff] %v5683_v2  ;;  %v4004_v22 = vpop.eup %4003  ;;  %4023 = vpow2.f32 %v3502_v41  ;;  %v1298_v33 = vpop.f32.mrb[61].mxu0  ;;  %v1534_v41 = vmul.f32 %v5460_v28, %v5677_v51 }
 0x3e5   :  { %v5688_v23 = vpop.f32.mrb[61].mxu1  ;;  %v4006_v13 = vpop.eup %4005  ;;  %v1608_v19 = vadd.f32 1.0, %v4004_v22  ;;  %4025 = vpow2.f32 %v3486_v32  ;;  %v1483_v21 = vadd.f32 %v1298_v33, %v5544_v18  ;;  %v1548_v46 = vadd.f32 %v1532_v54, %v1482_v27  ;;  %v5700_v33 = vld [vmem:[#allocation5 + $0x48] sm:$0xff] }
 0x3e6   :  { %6839 = vst [vmem:[#allocation92_spill] sm:$0xff] %v5688_v23  ;;  %v1300_v2 = vpop.f32.mrb[62].mxu0  ;;  %v1413_v29 = vpop.f32.mrb[62].mxu1  ;;  %v1740_v11 = vadd.f32 1.0, %v4006_v13  ;;  %4027 = vtanh.f32 %v1480_v49  ;;  %v3503_v23 = vmul.f32 -1.442695, %v1679_v37  ;;  %v5706_v49 = vmul.f32 %v5481_v35, %v5677_v51 }
 0x3e7   :  { %v4008_v20 = vpop.eup %4007  ;;  %v1302_v7 = vpop.f32.mrb[63].mxu0  ;;  %4029 = vrcp.f32 %v1608_v19  ;;  %v1680_v22 = vadd.f32 %v1664_v8, %v1483_v21  ;;  %v1486_v32 = vadd.f32 %v1300_v2, %v5555_v43  ;;  %v3487_v60 = vmul.f32 -1.442695, %v1548_v46  ;;  %v6859_v43 = vld [vmem:[#allocation90_spill] sm:$0xff] }
 0x3e8   :  { %v5697_v26 = vpop.f32.mrb[63].mxu1  ;;  %v4010_v48 = vpop.eup %4009  ;;  %v1609_v53 = vadd.f32 1.0, %v4008_v20  ;;  %4031 = vrcp.f32 %v1740_v11  ;;  %v1484_v37 = vadd.f32 %v1409_v4, %v5535_v14  ;;  %v1487_v8 = vadd.f32 %v1302_v7, %v5566_v1 }
 0x3e9   :  { %v5702_v18 = vpop.eup %4011  ;;  %v1741_v40 = vadd.f32 1.0, %v4010_v48  ;;  %v1549_v27 = vadd.f32 %v1533_v31, %v1486_v32  ;;  %v3504_v19 = vmul.f32 -1.442695, %v1680_v22  ;;  %v5712_v11 = vmul.f32 %v5460_v28, %v5700_v33 }
 0x3ea   :  { %v4014_v54 = vpop.eup %4013  ;;  %4033 = vrcp.f32 %v1609_v53  ;;  %v1306_v20 = vpop.f32.mrb[64].mxu0  ;;  %v5719_v31 = vmul.f32 %v5481_v35, %v5700_v33  ;;  %v1681_v4 = vadd.f32 %v1665_v36, %v1487_v8  ;;  %v1488_v36 = vadd.f32 %v1413_v29, %v5559_v52 }
 0x3eb   :  { %v4016_v13 = vpop.eup %4015  ;;  %v1818_v2 = vmul.f32 %v4014_v54, %v3996_v61  ;;  %4035 = vrcp.f32 %v1741_v40  ;;  %v3488_v21 = vmul.f32 -1.442695, %v1549_v27  ;;  %v5715_v53 = vpop.f32.mrb[64].mxu1  ;;  %v5724_v40 = vld [vmem:[%s6617_s7 + $0x2] ss:$0 sm:$0xff]  ;;  %v1461_v54 = vadd.f32 %v5538_v55, %v5429_v56 }
 0x3ec   :  { %v4018_v46 = vpop.eup %4017  ;;  %v1802_v48 = vmul.f32 %v4016_v13, %v5455_v25  ;;  %4037 = vpow2.f32 %v3503_v23  ;;  %v1490_v25 = vadd.f32 %v1306_v20, %v5577_v34  ;;  %v1308_v23 = vpop.f32.mrb[65].mxu0  ;;  %v3505_v29 = vmul.f32 -1.442695, %v1681_v4 }
 0x3ed   :  { %v4020_v7 = vpop.eup %4019  ;;  %v1819_v61 = vmul.f32 %v4018_v46, %v5663_v10  ;;  %4039 = vpow2.f32 %v3487_v60  ;;  %v5728_v22 = vpop.f32.mrb[65].mxu1 }
 0x3ee   :  { %v4022_v32 = vpop.eup %4021  ;;  %v5732_v27 = vadd.f32 %v1818_v2, %v1802_v48  ;;  %v1803_v13 = vmul.f32 %v4020_v7, %v5499_v58  ;;  %4041 = vtanh.f32 %v1484_v37  ;;  %v1310_v1 = vpop.f32.mrb[66].mxu0  ;;  %v1550_v8 = vadd.f32 %v1534_v41, %v1490_v25  ;;  %v5746_v37 = vld [vmem:[#allocation5 + $0x50] sm:$0xff] }
 0x3ef   :  { %v5735_v14 = vpop.f32.mrb[66].mxu1  ;;  %v4024_v10 = vpop.eup %4023  ;;  %v1610_v60 = vadd.f32 1.0, %v4022_v32  ;;  %4043 = vpow2.f32 %v3504_v19  ;;  %v1491_v41 = vadd.f32 %v1308_v23, %v5585_v57  ;;  %v1465_v32 = vadd.f32 %v5562_v12, %v5445_v16 }
 0x3f0   :  { %v5738_v46 = vpop.f32.mrb[67].mxu0  ;;  %v5740_v20 = vpop.f32.mrb[67].mxu1  ;;  %v1854_v55 = vmul.f32 %v5724_v40, %v5732_v27  ;;  %v5744_v2 = vadd.f32 %v1819_v61, %v1803_v13  ;;  %v1742_v58 = vadd.f32 1.0, %v4024_v10  ;;  %4045 = vpow2.f32 %v3488_v21 }
 0x3f1   :  { %v4026_v34 = vpop.eup %4025  ;;  %4047 = vrcp.f32 %v1610_v60  ;;  %v3489_v10 = vmul.f32 -1.442695, %v1550_v8  ;;  %v1494_v8 = vadd.f32 %v1310_v1, %v5607_v6 }
 0x3f2   :  { %6840 = vst [vmem:[#allocation93_spill] sm:$0xff] %v5744_v2  ;;  %v5748_v48 = vpop.eup %4027  ;;  %v1611_v19 = vadd.f32 1.0, %v4026_v34  ;;  %v1870_v25 = vadd.f32 %v1854_v55, %v1461_v54  ;;  %v1855_v61 = vmul.f32 %v5724_v40, %v5744_v2  ;;  %4049 = vrcp.f32 %v1742_v58  ;;  %v1316_v12 = vpop.f32.mrb[68].mxu0 }
 0x3f3   :  { %v4030_v7 = vpop.eup %4029  ;;  %v5758_v34 = vmul.f32 %v5460_v28, %v5746_v37  ;;  %v5761_v55 = vpop.f32.mrb[68].mxu1 }
 0x3f4   :  { %v4032_v13 = vpop.eup %4031  ;;  %v1820_v21 = vmul.f32 %v4030_v7, %v5672_v62  ;;  %4051 = vrcp.f32 %v1611_v19  ;;  %v3515_v23 = vmul.f32 -1.442695, %v1870_v25  ;;  %v1871_v60 = vadd.f32 %v1855_v61, %v1465_v32  ;;  %v5766_v19 = vpop.f32.mrb[69].mxu0 }
 0x3f5   :  { %v4034_v4 = vpop.eup %4033  ;;  %v1804_v54 = vmul.f32 %v4032_v13, %v5573_v63  ;;  %4053 = vtanh.f32 %v1488_v36  ;;  %v1682_v62 = vadd.f32 %v5706_v49, %v1491_v41  ;;  %v5768_v7 = vpop.f32.mrb[69].mxu1  ;;  %v1469_v49 = vadd.f32 %v5601_v24, %v5468_v5 }
 0x3f6   :  { %v4036_v57 = vpop.eup %4035  ;;  %v1821_v58 = vmul.f32 %v4034_v4, %v5679_v17  ;;  %4055 = vpow2.f32 %v3505_v29  ;;  %v3516_v32 = vmul.f32 -1.442695, %v1871_v60  ;;  %v5773_v61 = vpop.f32.mrb[70].mxu0  ;;  %v1492_v29 = vadd.f32 %v5715_v53, %v5581_v38 }
 0x3f7   :  { %v4038_v25 = vpop.eup %4037  ;;  %4057 = vpow2.f32 %v3515_v23  ;;  %v5770_v63 = vadd.f32 %v1820_v21, %v1804_v54  ;;  %v1805_v36 = vmul.f32 %v4036_v57, %v5591_v0  ;;  %v5775_v13 = vpop.f32.mrb[70].mxu1  ;;  %v1473_v24 = vadd.f32 %v5614_v50, %v5489_v45 }
 0x3f8   :  { %v4040_v17 = vpop.eup %4039  ;;  %v1743_v1 = vadd.f32 1.0, %v4038_v25  ;;  %4059 = vpow2.f32 %v3489_v10  ;;  %v5781_v41 = vpop.f32.mrb[71].mxu0  ;;  %v3506_v10 = vmul.f32 -1.442695, %v1682_v62  ;;  %v1551_v53 = vadd.f32 %v5712_v11, %v1494_v8 }
 0x3f9   :  { %6841 = vst [vmem:[#allocation94_spill] sm:$0xff] %v5770_v63  ;;  %v5783_v4 = vpop.f32.mrb[71].mxu1  ;;  %v5785_v21 = vpop.eup %4041  ;;  %4061 = vpow2.f32 %v3516_v32  ;;  %v1856_v57 = vmul.f32 %v5724_v40, %v5770_v63  ;;  %v5789_v0 = vadd.f32 %v1821_v58, %v1805_v36  ;;  %v1612_v23 = vadd.f32 1.0, %v4040_v17  ;;  %v6861_v63 = vld [vmem:[#allocation57_spill] sm:$0xff] }
 0x3fa   :  { %6842 = vst [vmem:[#allocation95_spill] sm:$0xff] %v5783_v4  ;;  %v4044_v60 = vpop.eup %4043  ;;  %4063 = vrcp.f32 %v1743_v1  ;;  %v1495_v58 = vadd.f32 %v5738_v46, %v5625_v59  ;;  %v1498_v36 = vadd.f32 %v1316_v12, %v5629_v15  ;;  %v5800_v8 = vpop.f32.mrb[72].mxu0  ;;  %v3490_v46 = vmul.f32 -1.442695, %v1551_v53  ;;  %v6862_v4 = vld [vmem:[#allocation38_spill] sm:$0xff] }
 0x3fb   :  { %6843 = vst [vmem:[#allocation96_spill] sm:$0xff] %v5789_v0  ;;  %v4046_v54 = vpop.eup %4045  ;;  %v1872_v25 = vadd.f32 %v1856_v57, %v1469_v49  ;;  %v1857_v38 = vmul.f32 %v5724_v40, %v5789_v0  ;;  %4065 = vrcp.f32 %v1612_v23  ;;  %v1744_v32 = vadd.f32 1.0, %v4044_v60  ;;  %v5802_v49 = vpop.f32.mrb[72].mxu1  ;;  %v6844_v57 = vld [vmem:[#allocation59_spill] sm:$0xff] }
 0x3fc   :  { %v4048_v6 = vpop.eup %4047  ;;  %v1613_v5 = vadd.f32 1.0, %v4046_v54  ;;  %4067 = vtanh.f32 %v1492_v29  ;;  %v5806_v23 = vadd.f32 %v6844_v57, %v5407_v39  ;;  %v5809_v12 = vpop.f32.mrb[73].mxu0  ;;  %v1683_v57 = vadd.f32 %v5719_v31, %v1495_v58 }
 0x3fd   :  { %v4050_v50 = vpop.eup %4049  ;;  %v3517_v17 = vmul.f32 -1.442695, %v1872_v25  ;;  %v1873_v62 = vadd.f32 %v1857_v38, %v1473_v24  ;;  %v1822_v11 = vmul.f32 %v4048_v6, %v5702_v18  ;;  %4069 = vrcp.f32 %v1744_v32  ;;  %v5811_v60 = vpop.f32.mrb[73].mxu1  ;;  %v6846_v18 = vld [vmem:[#allocation60_spill] sm:$0xff] }
 0x3fe   :  { %v4052_v1 = vpop.eup %4051  ;;  %v1806_v29 = vmul.f32 %v4050_v50, %v5621_v3  ;;  %4071 = vrcp.f32 %v1613_v5  ;;  %6845 = vst [vmem:[#allocation59_spill] sm:$0xff] %v5811_v60  ;;  %v5817_v6 = vadd.f32 %v6846_v18, %v5409_v42  ;;  %v5820_v25 = vpop.f32.mrb[74].mxu0  ;;  %v6848_v5 = vld [vmem:[#allocation61_spill] sm:$0xff]  ;;  %v5831_v18 = vld [vmem:[#allocation5 + $0x58] sm:$0xff]  ;;  %v1552_v15 = vadd.f32 %v5758_v34, %v1498_v36 }
 0x3ff   :  { %v5813_v38 = vpop.eup %4053  ;;  %4073 = vpow2.f32 %v3517_v17  ;;  %v3518_v24 = vmul.f32 -1.442695, %v1873_v62  ;;  %v1823_v54 = vmul.f32 %v4052_v1, %v5748_v48  ;;  %v5822_v32 = vpop.f32.mrb[74].mxu1  ;;  %v5826_v53 = vadd.f32 %v6848_v5, %v5411_v44 }
 0x400   :  { %6847 = vst [vmem:[#allocation60_spill] sm:$0xff] %v5817_v6  ;;  %v4056_v3 = vpop.eup %4055  ;;  %v5828_v50 = vadd.f32 %v1822_v11, %v1806_v29  ;;  %4075 = vpow2.f32 %v3506_v10  ;;  %v5833_v17 = vpop.f32.mrb[75].mxu0  ;;  %v1668_v5 = vmul.f32 %v5481_v35, %v5746_v37  ;;  %v1477_v10 = vadd.f32 %v5647_v9, %v5507_v30  ;;  %v6851_v9 = vld [vmem:[#allocation88_spill] sm:$0xff] }
 0x401   :  { %v5835_v62 = vpop.f32.mrb[75].mxu1  ;;  %v4058_v48 = vpop.eup %4057  ;;  %4077 = vpow2.f32 %v3518_v24  ;;  %v1745_v1 = vadd.f32 1.0, %v4056_v3  ;;  %v1496_v24 = vadd.f32 %v5735_v14, %v5618_v47  ;;  %v1537_v34 = vmul.f32 %v5460_v28, %v5831_v18 }
 0x402   :  { %6849 = vst [vmem:[#allocation61_spill] sm:$0xff] %v5828_v50  ;;  %6850 = vst [vmem:[#allocation97_spill] sm:$0xff] %v5835_v62  ;;  %v4060_v59 = vpop.eup %4059  ;;  %v1934_v11 = vadd.f32 1.0, %v4058_v48  ;;  %v1858_v31 = vmul.f32 %v5724_v40, %v5828_v50  ;;  %4079 = vpow2.f32 %v3490_v46  ;;  %v3507_v45 = vmul.f32 -1.442695, %v1683_v57  ;;  %v6852_v46 = vld [vmem:[#allocation53_spill] sm:$0xff] }
 0x403   :  { %v4062_v58 = vpop.eup %4061  ;;  %4081 = vrcp.f32 %v1745_v1  ;;  %v1614_v29 = vadd.f32 1.0, %v4060_v59  ;;  %v3491_v16 = vmul.f32 -1.442695, %v1552_v15  ;;  %v1499_v1 = vadd.f32 %v5766_v19, %v6852_v46  ;;  %v5851_v59 = vld [vmem:[#allocation5 + $0x60] sm:$0xff]  ;;  %v5853_v56 = vpop.f32.mrb[76].mxu0 }
 0x404   :  { %v4064_v36 = vpop.eup %4063  ;;  %4083 = vrcp.f32 %v1934_v11  ;;  %v1935_v3 = vadd.f32 1.0, %v4062_v58  ;;  %v1874_v48 = vadd.f32 %v1858_v31, %v1477_v10  ;;  %v5855_v14 = vpop.f32.mrb[76].mxu1  ;;  %v6853_v57 = vld [vmem:[#allocation55_spill] sm:$0xff] }
 0x405   :  { %v4066_v52 = vpop.eup %4065  ;;  %v1807_v30 = vmul.f32 %v4064_v36, %v6851_v9  ;;  %4085 = vrcp.f32 %v1614_v29  ;;  %v1502_v31 = vadd.f32 %v5773_v61, %v6853_v57  ;;  %v5860_v58 = vpop.f32.mrb[77].mxu0  ;;  %v6856_v36 = vld [vmem:[#allocation52_spill] sm:$0xff]  ;;  %v6857_v61 = vld [vmem:[#allocation34_spill] sm:$0xff]  ;;  %v6858_v57 = vld [vmem:[#allocation89_spill] sm:$0xff] }
 0x406   :  { %v4068_v47 = vpop.eup %4067  ;;  %4087 = vrcp.f32 %v1935_v3  ;;  %v3519_v11 = vmul.f32 -1.442695, %v1874_v48  ;;  %v1824_v10 = vmul.f32 %v4066_v52, %v5785_v21  ;;  %v5862_v15 = vpop.f32.mrb[77].mxu1  ;;  %v1500_v9 = vadd.f32 %v5761_v55, %v6856_v36 }
 0x407   :  { %6854 = vst [vmem:[#allocation88_spill] sm:$0xff] %v5862_v15  ;;  %v4070_v29 = vpop.eup %4069  ;;  %v5864_v19 = vadd.f32 %v1823_v54, %v1807_v30  ;;  %4089 = vtanh.f32 %v1496_v24  ;;  %v1669_v3 = vmul.f32 %v5481_v35, %v5831_v18  ;;  %v5870_v48 = vpop.f32.mrb[78].mxu0  ;;  %v1481_v46 = vadd.f32 %v6858_v57, %v6857_v61 }
 0x408   :  { %v5872_v52 = vpop.f32.mrb[78].mxu1  ;;  %v4072_v21 = vpop.eup %4071  ;;  %4091 = vpow2.f32 %v3519_v11  ;;  %v1808_v15 = vmul.f32 %v4070_v29, %v6859_v43  ;;  %v1538_v30 = vmul.f32 %v5460_v28, %v5851_v59  ;;  %v1684_v11 = vadd.f32 %v1668_v5, %v1499_v1 }
 0x409   :  { %6855 = vst [vmem:[#allocation98_spill] sm:$0xff] %v5864_v19  ;;  %v5879_v54 = vpop.f32.mrb[79].mxu0  ;;  %v5881_v55 = vpop.f32.mrb[79].mxu1  ;;  %v1859_v36 = vmul.f32 %v5724_v40, %v5864_v19  ;;  %v1825_v62 = vmul.f32 %v4072_v21, %v5813_v38  ;;  %4093 = vpow2.f32 %v3507_v45  ;;  %v1553_v43 = vadd.f32 %v1537_v34, %v1502_v31  ;;  %v6863_v38 = vld [vmem:[#allocation92_spill] sm:$0xff]  ;;  %v6864_v31 = vld [vmem:[#allocation91_spill] sm:$0xff] }
 0x40a   :  { %6860 = vst [vmem:[#allocation89_spill] sm:$0xff] %v5881_v55  ;;  %v4074_v24 = vpop.eup %4073  ;;  %v5886_v57 = vadd.f32 %v1824_v10, %v1808_v15  ;;  %4095 = vpow2.f32 %v3491_v16  ;;  %v1503_v55 = vadd.f32 %v5781_v41, %v6861_v63  ;;  %v1485_v45 = vadd.f32 %v6863_v38, %v6862_v4  ;;  %v6866_v38 = vld [vmem:[#allocation63_spill] sm:$0xff] }
 0x40b   :  { %v4076_v50 = vpop.eup %4075  ;;  %v1936_v0 = vadd.f32 1.0, %v4074_v24  ;;  %v1875_v61 = vadd.f32 %v1859_v36, %v1481_v46  ;;  %4097 = vtanh.f32 %v1500_v9  ;;  %v3508_v34 = vmul.f32 -1.442695, %v1684_v11  ;;  %v6865_v9 = vld [vmem:[#allocation56_spill] sm:$0xff] }
 0x40c   :  { %v4078_v29 = vpop.eup %4077  ;;  %v1746_v60 = vadd.f32 1.0, %v4076_v50  ;;  %v1860_v5 = vmul.f32 %v5724_v40, %v5886_v57  ;;  %v3492_v36 = vmul.f32 -1.442695, %v1553_v43  ;;  %v1504_v21 = vadd.f32 %v5775_v13, %v6865_v9 }
 0x40d   :  { %v4080_v2 = vpop.eup %4079  ;;  %4099 = vrcp.f32 %v1936_v0  ;;  %v1937_v19 = vadd.f32 1.0, %v4078_v29  ;;  %v3520_v10 = vmul.f32 -1.442695, %v1875_v61  ;;  %v1506_v0 = vadd.f32 %v5800_v8, %v5806_v23 }
 0x40e   :  { %v4082_v1 = vpop.eup %4081  ;;  %4101 = vrcp.f32 %v1746_v60  ;;  %v1615_v16 = vadd.f32 1.0, %v4080_v2  ;;  %v1876_v50 = vadd.f32 %v1860_v5, %v1485_v45  ;;  %v1685_v24 = vadd.f32 %v1669_v3, %v1503_v55 }
 0x40f   :  { %v5894_v46 = vpop.eup %4083  ;;  %4103 = vrcp.f32 %v1937_v19  ;;  %v1809_v41 = vmul.f32 %v4082_v1, %v6864_v31  ;;  %v5905_v19 = vld [vmem:[#allocation5 + $0x68] sm:$0xff]  ;;  %v5909_v8 = vadd.f32 %v6866_v38, %v5407_v39  ;;  %v1507_v43 = vadd.f32 %v5809_v12, %v5826_v53  ;;  %v6869_v1 = vld [vmem:[#allocation65_spill] sm:$0xff]  ;;  %v6871_v38 = vld [vmem:[#allocation75_spill] sm:$0xff] }
 0x410   :  { %v4086_v15 = vpop.eup %4085  ;;  %4105 = vpow2.f32 %v3520_v10  ;;  %v3521_v2 = vmul.f32 -1.442695, %v1876_v50  ;;  %v1670_v13 = vmul.f32 %v5481_v35, %v5851_v59  ;;  %v1554_v45 = vadd.f32 %v1538_v30, %v1506_v0 }
 0x411   :  { %v5901_v61 = vpop.eup %4087  ;;  %v5903_v60 = vadd.f32 %v1825_v62, %v1809_v41  ;;  %v1826_v11 = vmul.f32 %v4086_v15, %v4068_v47  ;;  %4107 = vrcp.f32 %v1615_v16  ;;  %6867 = vst [vmem:[#allocation90_spill] sm:$0xff] %v5909_v8  ;;  %v6868_v62 = vld [vmem:[#allocation42_spill] sm:$0xff]  ;;  %v5921_v10 = vadd.f32 %v6869_v1, %v5411_v44 }
 0x412   :  { %v4090_v29 = vpop.eup %4089  ;;  %4109 = vpow2.f32 %v3508_v34  ;;  %v1489_v47 = vadd.f32 %v5697_v26, %v6868_v62  ;;  %v1539_v12 = vmul.f32 %v5460_v28, %v5905_v19  ;;  %v3509_v41 = vmul.f32 -1.442695, %v1685_v24 }
 0x413   :  { %v4092_v3 = vpop.eup %4091  ;;  %4111 = vpow2.f32 %v3521_v2  ;;  %v1861_v55 = vmul.f32 %v5724_v40, %v5903_v60  ;;  %6870 = vst [vmem:[#allocation57_spill] sm:$0xff] %v5921_v10  ;;  %v1686_v30 = vadd.f32 %v1670_v13, %v1507_v43  ;;  %v1510_v0 = vadd.f32 %v5820_v25, %v5909_v8  ;;  %v5941_v43 = vld [vmem:[#allocation5 + $0x70] sm:$0xff] }
 0x414   :  { %v4094_v5 = vpop.eup %4093  ;;  %v1938_v16 = vadd.f32 1.0, %v4092_v3  ;;  %4113 = vpow2.f32 %v3492_v36  ;;  %v6872_v36 = vld [vmem:[#allocation50_spill] sm:$0xff]  ;;  %v1511_v24 = vadd.f32 %v5833_v17, %v5921_v10  ;;  %v1671_v25 = vmul.f32 %v5481_v35, %v5905_v19  ;;  %v6877_v17 = vld [vmem:[#allocation68_spill] sm:$0xff] }
 0x415   :  { %v4096_v34 = vpop.eup %4095  ;;  %v1877_v50 = vadd.f32 %v1861_v55, %v1489_v47  ;;  %v1747_v31 = vadd.f32 1.0, %v4094_v5  ;;  %4115 = vtanh.f32 %v1504_v21  ;;  %v5933_v3 = vadd.f32 %v6872_v36, %v6871_v38  ;;  %v6874_v5 = vld [vmem:[#allocation64_spill] sm:$0xff] }
 0x416   :  { %v5925_v26 = vpop.eup %4097  ;;  %4117 = vrcp.f32 %v1938_v16  ;;  %v1616_v15 = vadd.f32 1.0, %v4096_v34  ;;  %v3493_v47 = vmul.f32 -1.442695, %v1554_v45  ;;  %v1508_v21 = vadd.f32 %v5802_v49, %v5817_v6  ;;  %v6876_v45 = vld [vmem:[#allocation67_spill] sm:$0xff] }
 0x417   :  { %v5929_v2 = vpop.eup %4099  ;;  %6873 = vst [vmem:[#allocation38_spill] sm:$0xff] %v5933_v3  ;;  %v3522_v1 = vmul.f32 -1.442695, %v1877_v50  ;;  %4119 = vrcp.f32 %v1747_v31  ;;  %v5947_v16 = vadd.f32 %v6874_v5, %v5409_v42  ;;  %v5951_v34 = vadd.f32 %v6876_v45, %v5407_v39 }
 0x418   :  { %v4102_v55 = vpop.eup %4101  ;;  %4121 = vrcp.f32 %v1616_v15  ;;  %v5956_v31 = vadd.f32 %v6877_v17, %v5409_v42  ;;  %v3510_v15 = vmul.f32 -1.442695, %v1686_v30  ;;  %v1555_v36 = vadd.f32 %v1539_v12, %v1510_v0  ;;  %v6880_v0 = vld [vmem:[#allocation69_spill] sm:$0xff] }
 0x419   :  { %v5943_v13 = vpop.eup %4103  ;;  %6875 = vst [vmem:[#allocation92_spill] sm:$0xff] %v5947_v16  ;;  %4123 = vpow2.f32 %v3522_v1  ;;  %v1810_v49 = vmul.f32 %v4102_v55, %v5677_v51  ;;  %v1540_v5 = vmul.f32 %v5460_v28, %v5941_v43  ;;  %v6879_v1 = vld [vmem:[#allocation46_spill] sm:$0xff]  ;;  %v1687_v9 = vadd.f32 %v1671_v25, %v1511_v24 }
 0x41a   :  { %v4106_v50 = vpop.eup %4105  ;;  %6878 = vst [vmem:[#allocation91_spill] sm:$0xff] %v5956_v31  ;;  %4125 = vpow2.f32 %v3509_v41  ;;  %v1493_v51 = vadd.f32 %v5728_v22, %v6879_v1  ;;  %v3494_v22 = vmul.f32 -1.442695, %v1555_v36  ;;  %v5978_v25 = vld [vmem:[#allocation5 + $0x78] sm:$0xff]  ;;  %v1672_v36 = vmul.f32 %v5481_v35, %v5941_v43 }
 0x41b   :  { %v4108_v6 = vpop.eup %4107  ;;  %v1939_v10 = vadd.f32 1.0, %v4106_v50  ;;  %v5958_v8 = vadd.f32 %v1826_v11, %v1810_v49  ;;  %4127 = vpow2.f32 %v3493_v47  ;;  %v1514_v11 = vadd.f32 %v5853_v56, %v5951_v34 }
 0x41c   :  { %v4110_v45 = vpop.eup %4109  ;;  %v1827_v55 = vmul.f32 %v4108_v6, %v4090_v29  ;;  %4129 = vtanh.f32 %v1508_v21  ;;  %v5970_v47 = vadd.f32 %v6880_v0, %v5411_v44  ;;  %v6882_v29 = vld [vmem:[#allocation71_spill] sm:$0xff]  ;;  %v1512_v50 = vadd.f32 %v5822_v32, %v5947_v16 }
 0x41d   :  { %v4112_v17 = vpop.eup %4111  ;;  %4131 = vrcp.f32 %v1939_v10  ;;  %v1862_v12 = vmul.f32 %v5724_v40, %v5958_v8  ;;  %v1748_v41 = vadd.f32 1.0, %v4110_v45  ;;  %v5976_v10 = vadd.f32 %v6882_v29, %v5407_v39 }
 0x41e   :  { %v4114_v30 = vpop.eup %4113  ;;  %6881 = vst [vmem:[#allocation63_spill] sm:$0xff] %v5970_v47  ;;  %v1940_v49 = vadd.f32 1.0, %v4112_v17  ;;  %4133 = vpow2.f32 %v3510_v15  ;;  %v1515_v15 = vadd.f32 %v5860_v58, %v5970_v47  ;;  %v1556_v17 = vadd.f32 %v1540_v5, %v1514_v11  ;;  %v6884_v58 = vld [vmem:[#allocation73_spill] sm:$0xff] }
 0x41f   :  { %v5972_v6 = vpop.eup %4115  ;;  %6883 = vst [vmem:[#allocation42_spill] sm:$0xff] %v5976_v10  ;;  %v1878_v21 = vadd.f32 %v1862_v12, %v1493_v51  ;;  %4135 = vrcp.f32 %v1748_v41  ;;  %v1617_v24 = vadd.f32 1.0, %v4114_v30  ;;  %v3511_v51 = vmul.f32 -1.442695, %v1687_v9 }
 0x420   :  { %v5980_v56 = vpop.eup %4117  ;;  %4137 = vrcp.f32 %v1940_v49  ;;  %v1518_v30 = vadd.f32 %v5870_v48, %v5976_v10  ;;  %v1541_v32 = vmul.f32 %v5460_v28, %v5978_v25  ;;  %v5995_v49 = vadd.f32 %v6884_v58, %v5411_v44 }
 0x421   :  { %v4120_v45 = vpop.eup %4119  ;;  %v3523_v39 = vmul.f32 -1.442695, %v1878_v21  ;;  %4139 = vrcp.f32 %v1617_v24  ;;  %v1497_v35 = vadd.f32 %v5740_v20, %v5933_v3  ;;  %v1516_v48 = vadd.f32 %v5855_v14, %v5956_v31  ;;  %v6013_v14 = vld [vmem:[%s6617_s7 + $0x1] ss:$0 sm:$0xff] }
 0x422   :  { %v4122_v12 = vpop.eup %4121  ;;  %v1811_v41 = vmul.f32 %v4120_v45, %v5700_v33  ;;  %4141 = vpow2.f32 %v3494_v22  ;;  %6885 = vst [vmem:[#allocation65_spill] sm:$0xff] %v5995_v49  ;;  %v3495_v29 = vmul.f32 -1.442695, %v1556_v17  ;;  %v1688_v44 = vadd.f32 %v1672_v36, %v1515_v15 }
 0x423   :  { %v4124_v0 = vpop.eup %4123  ;;  %4143 = vpow2.f32 %v3523_v39  ;;  %v1828_v9 = vmul.f32 %v4122_v12, %v5925_v26  ;;  %v1557_v26 = vadd.f32 %v1541_v32, %v1518_v30 }
 0x424   :  { %v4126_v5 = vpop.eup %4125  ;;  %v1941_v33 = vadd.f32 1.0, %v4124_v0  ;;  %v6000_v11 = vadd.f32 %v1827_v55, %v1811_v41  ;;  %4145 = vtanh.f32 %v1512_v50  ;;  %v1519_v55 = vadd.f32 %v5879_v54, %v5995_v49  ;;  %v6887_v0 = vld [vmem:[#allocation72_spill] sm:$0xff] }
 0x425   :  { %v4128_v28 = vpop.eup %4127  ;;  %v1749_v22 = vadd.f32 1.0, %v4126_v5  ;;  %4147 = vpow2.f32 %v3511_v51  ;;  %v1673_v50 = vmul.f32 %v6013_v14, %v5978_v25  ;;  %v3512_v17 = vmul.f32 -1.442695, %v1688_v44 }
 0x426   :  { %6886 = vst [vmem:[#allocation75_spill] sm:$0xff] %v6000_v11  ;;  %v4130_v21 = vpop.eup %4129  ;;  %4149 = vrcp.f32 %v1941_v33  ;;  %v1863_v20 = vmul.f32 %v5724_v40, %v6000_v11  ;;  %v1618_v24 = vadd.f32 1.0, %v4128_v28  ;;  %v3496_v30 = vmul.f32 -1.442695, %v1557_v26  ;;  %v6889_v33 = vld [vmem:[#allocation54_spill] sm:$0xff] }
 0x427   :  { %v6006_v45 = vpop.eup %4131  ;;  %4151 = vrcp.f32 %v1749_v22  ;;  %v6022_v58 = vadd.f32 %v6887_v0, %v5409_v42  ;;  %v1689_v5 = vadd.f32 %v1673_v50, %v1519_v55  ;;  %v6026_v28 = vadd.f32 %v6889_v33, %v6871_v38  ;;  %v6893_v33 = vld [vmem:[#allocation95_spill] sm:$0xff] }
 0x428   :  { %v4134_v15 = vpop.eup %4133  ;;  %v1879_v36 = vadd.f32 %v1863_v20, %v1497_v35  ;;  %4153 = vrcp.f32 %v1618_v24 }
 0x429   :  { %v4136_v39 = vpop.eup %4135  ;;  %v1750_v51 = vadd.f32 1.0, %v4134_v15  ;;  %4155 = vpow2.f32 %v3495_v29  ;;  %6888 = vst [vmem:[#allocation50_spill] sm:$0xff] %v6022_v58  ;;  %6890 = vst [vmem:[#allocation64_spill] sm:$0xff] %v6026_v28  ;;  %v1520_v44 = vadd.f32 %v5872_v52, %v6022_v58  ;;  %v1501_v24 = vadd.f32 %v5768_v7, %v6026_v28  ;;  %v6930_v28 = vld [vmem:[#allocation39_spill] sm:$0xff] }
 0x42a   :  { %v6017_v12 = vpop.eup %4137  ;;  %v3524_v41 = vmul.f32 -1.442695, %v1879_v36  ;;  %v1812_v54 = vmul.f32 %v4136_v39, %v5746_v37  ;;  %4157 = vtanh.f32 %v1516_v48 }
 0x42b   :  { %v4140_v32 = vpop.eup %4139  ;;  %4159 = vrcp.f32 %v1750_v51 }
 0x42c   :  { %v4142_v35 = vpop.eup %4141  ;;  %4161 = vpow2.f32 %v3524_v41  ;;  %v6028_v22 = vadd.f32 %v1828_v9, %v1812_v54  ;;  %v1829_v29 = vmul.f32 %v4140_v32, %v5972_v6  ;;  %v3513_v9 = vmul.f32 -1.442695, %v1689_v5  ;;  %v6891_v54 = vld [vmem:[#allocation58_spill] sm:$0xff] }
 0x42d   :  { %v4144_v37 = vpop.eup %4143  ;;  %v1619_v48 = vadd.f32 1.0, %v4142_v35  ;;  %4163 = vpow2.f32 %v3512_v17 }
 0x42e   :  { %v4146_v42 = vpop.eup %4145  ;;  %v1942_v20 = vadd.f32 1.0, %v4144_v37  ;;  %v1864_v26 = vmul.f32 %v5724_v40, %v6028_v22  ;;  %4165 = vpow2.f32 %v3496_v30  ;;  %v6042_v30 = vadd.f32 %v6891_v54, %v6871_v38 }
 0x42f   :  { %v4148_v55 = vpop.eup %4147  ;;  %4167 = vrcp.f32 %v1619_v48 }
 0x430   :  { %v6037_v50 = vpop.eup %4149  ;;  %4169 = vrcp.f32 %v1942_v20  ;;  %v1880_v6 = vadd.f32 %v1864_v26, %v1501_v24  ;;  %v1751_v15 = vadd.f32 1.0, %v4148_v55  ;;  %6892 = vst [vmem:[#allocation67_spill] sm:$0xff] %v6042_v30  ;;  %v6896_v24 = vld [vmem:[#allocation93_spill] sm:$0xff] }
 0x431   :  { %v4152_v36 = vpop.eup %4151  ;;  %4171 = vtanh.f32 %v1520_v44  ;;  %v6894_v44 = vld [vmem:[#allocation62_spill] sm:$0xff] }
 0x432   :  { %v4154_v52 = vpop.eup %4153  ;;  %v3525_v39 = vmul.f32 -1.442695, %v1880_v6  ;;  %v1813_v51 = vmul.f32 %v4152_v36, %v5831_v18  ;;  %4173 = vrcp.f32 %v1751_v15  ;;  %v1505_v18 = vadd.f32 %v6893_v33, %v6042_v30  ;;  %v6897_v15 = vld [vmem:[#allocation94_spill] sm:$0xff]  ;;  %v6926_v30 = vld [vmem:[#allocation33_spill] sm:$0xff] }
 0x433   :  { %v4156_v7 = vpop.eup %4155  ;;  %v1830_v17 = vmul.f32 %v4154_v52, %v4130_v21  ;;  %4175 = vpow2.f32 %v3513_v9  ;;  %v6054_v20 = vadd.f32 %v6894_v44, %v6871_v38 }
 0x434   :  { %v4158_v41 = vpop.eup %4157  ;;  %4177 = vpow2.f32 %v3525_v39  ;;  %v6044_v32 = vadd.f32 %v1829_v29, %v1813_v51  ;;  %v1620_v0 = vadd.f32 1.0, %v4156_v7 }
 0x435   :  { %v4160_v5 = vpop.eup %4159  ;;  %4179 = vtanh.f32 %v5732_v27  ;;  %6895 = vst [vmem:[#allocation68_spill] sm:$0xff] %v6054_v20 }
 0x436   :  { %v4162_v35 = vpop.eup %4161  ;;  %v1865_v21 = vmul.f32 %v5724_v40, %v6044_v32  ;;  %v1814_v37 = vmul.f32 %v4160_v5, %v5851_v59  ;;  %4181 = vrcp.f32 %v1620_v0  ;;  %v6898_v59 = vld [vmem:[#allocation59_spill] sm:$0xff] }
 0x437   :  { %v4164_v48 = vpop.eup %4163  ;;  %v1943_v29 = vadd.f32 1.0, %v4162_v35  ;;  %4183 = vtanh.f32 %v6896_v24  ;;  %v1509_v52 = vadd.f32 %v6898_v59, %v6054_v20  ;;  %v6903_v59 = vld [vmem:[#allocation98_spill] sm:$0xff] }
 0x438   :  { %v4166_v26 = vpop.eup %4165  ;;  %v1881_v55 = vadd.f32 %v1865_v21, %v1505_v18  ;;  %v6057_v9 = vadd.f32 %v1830_v17, %v1814_v37  ;;  %v1752_v6 = vadd.f32 1.0, %v4164_v48  ;;  %4185 = vtanh.f32 %v6897_v15  ;;  %v6899_v21 = vld [vmem:[#allocation96_spill] sm:$0xff] }
 0x439   :  { %v4168_v36 = vpop.eup %4167  ;;  %4187 = vrcp.f32 %v1943_v29  ;;  %v1621_v39 = vadd.f32 1.0, %v4166_v26  ;;  %v6900_v29 = vld [vmem:[#allocation61_spill] sm:$0xff] }
 0x43a   :  { %v6062_v51 = vpop.eup %4169  ;;  %v3526_v7 = vmul.f32 -1.442695, %v1881_v55  ;;  %v1866_v54 = vmul.f32 %v5724_v40, %v6057_v9  ;;  %v1831_v0 = vmul.f32 %v4168_v36, %v4146_v42  ;;  %4189 = vrcp.f32 %v1752_v6  ;;  %v6901_v55 = vld [vmem:[#allocation66_spill] sm:$0xff] }
 0x43b   :  { %v4172_v5 = vpop.eup %4171  ;;  %4191 = vrcp.f32 %v1621_v39  ;;  %v6071_v42 = vadd.f32 %v6901_v55, %v6871_v38  ;;  %v6904_v39 = vld [vmem:[#allocation97_spill] sm:$0xff] }
 0x43c   :  { %v4174_v17 = vpop.eup %4173  ;;  %4193 = vpow2.f32 %v3526_v7  ;;  %v1882_v35 = vadd.f32 %v1866_v54, %v1509_v52 }
 0x43d   :  { %v4176_v33 = vpop.eup %4175  ;;  %v1815_v18 = vmul.f32 %v4174_v17, %v5905_v19  ;;  %4195 = vtanh.f32 %v6899_v21  ;;  %6902 = vst [vmem:[#allocation46_spill] sm:$0xff] %v6071_v42  ;;  %v1513_v7 = vadd.f32 %v6904_v39, %v6071_v42 }
 0x43e   :  { %v4178_v37 = vpop.eup %4177  ;;  %v3527_v48 = vmul.f32 -1.442695, %v1882_v35  ;;  %v1753_v44 = vadd.f32 1.0, %v4176_v33  ;;  %4197 = vtanh.f32 %v6900_v29 }
 0x43f   :  { %v4180_v26 = vpop.eup %4179  ;;  %v1944_v6 = vadd.f32 1.0, %v4178_v37  ;;  %v6073_v36 = vadd.f32 %v1831_v0, %v1815_v18  ;;  %4199 = vtanh.f32 %v6903_v59 }
 0x440   :  { %v4182_v52 = vpop.eup %4181  ;;  %4201 = vpow2.f32 %v3527_v48  ;;  %v1998_v33 = vmul.f32 %v4180_v26, %v5894_v46 }
 0x441   :  { %v4184_v19 = vpop.eup %4183  ;;  %4203 = vrcp.f32 %v1944_v6  ;;  %v1867_v54 = vmul.f32 %v5724_v40, %v6073_v36  ;;  %v1832_v17 = vmul.f32 %v4182_v52, %v4158_v41 }
 0x442   :  { %v4186_v35 = vpop.eup %4185  ;;  %4205 = vrcp.f32 %v1753_v44  ;;  %v1999_v0 = vmul.f32 %v4184_v19, %v5901_v61  ;;  %v6905_v61 = vld [vmem:[#allocation70_spill] sm:$0xff] }
 0x443   :  { %v4188_v18 = vpop.eup %4187  ;;  %v1883_v37 = vadd.f32 %v1867_v54, %v1513_v7  ;;  %4207 = vtanh.f32 %v5886_v57  ;;  %v6092_v26 = vadd.f32 %v6905_v61, %v6871_v38  ;;  %v2000_v7 = vmul.f32 %v4186_v35, %v5929_v2 }
 0x444   :  { %v4190_v48 = vpop.eup %4189  ;;  %v6083_v55 = vpack.c.bf16 %v1999_v0, %v1998_v33  ;;  %4209 = vtanh.f32 %v5903_v60  ;;  %v6907_v33 = vld [vmem:[#allocation88_spill] sm:$0xff] }
 0x445   :  { %v4192_v6 = vpop.eup %4191  ;;  %v3528_v39 = vmul.f32 -1.442695, %v1883_v37  ;;  %v1816_v42 = vmul.f32 %v4190_v48, %v5941_v43  ;;  %4211 = vtanh.f32 %v5958_v8  ;;  %6906 = vst [vmem:[#allocation69_spill] sm:$0xff] %v6092_v26  ;;  %v1517_v0 = vadd.f32 %v6907_v33, %v6092_v26 }
 0x446   :  { %v4194_v41 = vpop.eup %4193  ;;  %v1833_v44 = vmul.f32 %v4192_v6, %v4172_v5  ;;  %3741 = vmatprep.subr.bf16.mxu0 %v6083_v55  ;;  %4213 = vtanh.f32 %v6000_v11 }
 0x447   :  { %v4196_v46 = vpop.eup %4195  ;;  %v1945_v52 = vadd.f32 1.0, %v4194_v41  ;;  %4215 = vpow2.f32 %v3528_v39  ;;  %v6094_v19 = vadd.f32 %v1832_v17, %v1816_v42  ;;  %3742 = vmatpush3.bf16.msra.mxu0 %v6083_v55 }
 0x448   :  { %v4198_v43 = vpop.eup %4197  ;;  %v2001_v5 = vmul.f32 %v4196_v46, %v5943_v13  ;;  %4217 = vtanh.f32 %v6028_v22 }
 0x449   :  { %v4200_v54 = vpop.eup %4199  ;;  %4219 = vrcp.f32 %v1945_v52  ;;  %v1868_v37 = vmul.f32 %v5724_v40, %v6094_v19  ;;  %v2002_v17 = vmul.f32 %v4198_v43, %v5980_v56  ;;  %v6908_v56 = vld [vmem:[#allocation74_spill] sm:$0xff] }
 0x44a   :  { %v4202_v48 = vpop.eup %4201  ;;  %v6104_v42 = vpack.c.bf16 %v2001_v5, %v2000_v7  ;;  %v2003_v6 = vmul.f32 %v4200_v54, %v6006_v45  ;;  %4221 = vtanh.f32 %v6044_v32  ;;  %v6116_v43 = vadd.f32 %v6908_v56, %v6871_v38 }
 0x44b   :  { %v4204_v2 = vpop.eup %4203  ;;  %v1884_v13 = vadd.f32 %v1868_v37, %v1517_v0  ;;  %v1946_v45 = vadd.f32 1.0, %v4202_v48  ;;  %4223 = vtanh.f32 %v6057_v9  ;;  %v6911_v0 = vld [vmem:[#allocation89_spill] sm:$0xff] }
 0x44c   :  { %v4206_v35 = vpop.eup %4205  ;;  %3743 = vmatprep.subr.bf16.mxu0 %v6104_v42  ;;  %v6110_v39 = vpack.c.bf16 %v2003_v6, %v2002_v17  ;;  %6909 = vst [vmem:[#allocation71_spill] sm:$0xff] %v6116_v43  ;;  %v1521_v37 = vadd.f32 %v6911_v0, %v6116_v43 }
 0x44d   :  { %v4208_v41 = vpop.eup %4207  ;;  %v3529_v46 = vmul.f32 -1.442695, %v1884_v13  ;;  %v1817_v61 = vmul.f32 %v4206_v35, %v5978_v25  ;;  %3744 = vmatpush3.bf16.msra.mxu0 %v6104_v42 }
 0x44e   :  { %v4210_v52 = vpop.eup %4209  ;;  %3745 = vmatprep.subr.bf16.mxu0 %v6110_v39  ;;  %v2004_v54 = vmul.f32 %v4208_v41, %v6017_v12 }
 0x44f   :  { %v4212_v7 = vpop.eup %4211  ;;  %v6119_v5 = vadd.f32 %v1833_v44, %v1817_v61  ;;  %v2005_v33 = vmul.f32 %v4210_v52, %v6037_v50  ;;  %4225 = vpow2.f32 %v3529_v46 }
 0x450   :  { %v4214_v25 = vpop.eup %4213  ;;  %v2006_v44 = vmul.f32 %v4212_v7, %v6062_v51  ;;  %4227 = vrcp.f32 %v1946_v45 }
 0x451   :  { %6910 = vst [vmem:[#allocation73_spill] sm:$0xff] %v6119_v5  ;;  %v4216_v17 = vpop.eup %4215  ;;  %v1869_v38 = vmul.f32 %v5724_v40, %v6119_v5  ;;  %3746 = vmatpush3.bf16.msra.mxu0 %v6110_v39  ;;  %v6129_v48 = vpack.c.bf16 %v2005_v33, %v2004_v54  ;;  %v2007_v12 = vmul.f32 %v4214_v25, %v4188_v18  ;;  %4229 = vtanh.f32 %v6073_v36 }
 0x452   :  { %v4218_v6 = vpop.eup %4217  ;;  %v1947_v50 = vadd.f32 1.0, %v4216_v17 }
 0x453   :  { %v4220_v13 = vpop.eup %4219  ;;  %v1885_v35 = vadd.f32 %v1869_v38, %v1521_v37  ;;  %3747 = vmatprep.subr.bf16.mxu0 %v6129_v48  ;;  %v6133_v41 = vpack.c.bf16 %v2007_v12, %v2006_v44  ;;  %v2008_v61 = vmul.f32 %v4218_v6, %v4204_v2 }
 0x454   :  { %v4222_v46 = vpop.eup %4221  ;;  %4231 = vrcp.f32 %v1947_v50 }
 0x455   :  { %v3530_v40 = vmul.f32 -1.442695, %v1885_v35  ;;  %3748 = vmatpush3.bf16.msra.mxu0 %v6129_v48  ;;  %v2009_v52 = vmul.f32 %v4222_v46, %v4220_v13  ;;  %v4224_v18 = vpop.eup %4223  ;;  %v4501_v46 = vld [vmem:[#allocation8 + $0xc] ss:$16 sps:$4 sm:$0xff]  }
 0x456   :  { %3749 = vmatprep.subr.bf16.mxu0 %v6133_v41 }
 0x457   :  { %4233 = vpow2.f32 %v3530_v40  ;;  %v6138_v51 = vpack.c.bf16 %v2009_v52, %v2008_v61  ;;  %v4502_v40 = vld [vmem:[%s6610_s0 + $0x8] sm:$0xff]   ;;  %v4503_v61 = vld [vmem:[%s6610_s0 + $0x10] sm:$0xff]  }
 0x458   :  { %4235 = vtanh.f32 %v6094_v19  ;;  %v4504_v52 = vld [vmem:[#allocation8 + $0x8] ss:$16 sps:$4 sm:$0xff]  }
 0x459   :  { %3750 = vmatpush3.bf16.msra.mxu0 %v6133_v41  ;;  %v4226_v56 = vpop.eup %4225 }
 0x45a   :  { %3751 = vmatprep.subr.bf16.mxu0 %v6138_v51  ;;  %v4228_v45 = vpop.eup %4227  ;;  %v1948_v33 = vadd.f32 1.0, %v4226_v56  ;;  %v4506_v56 = vld [vmem:[#allocation8 + $0x28] ss:$16 sps:$4 sm:$0xff]  }
 0x45b   :  { %v4230_v7 = vpop.eup %4229  ;;  %v2010_v25 = vmul.f32 %v4228_v45, %v4224_v18  ;;  %v4505_v18 = vld [vmem:[#allocation8 + $0x2c] ss:$16 sps:$4 sm:$0xff]  }
 0x45c   :  { %4237 = vrcp.f32 %v1948_v33  ;;  %v4507_v45 = vld [vmem:[#allocation8 + $0x4c] ss:$16 sps:$4 sm:$0xff]   ;;  %v4510_v33 = vld [vmem:[#allocation8 + $0x48] ss:$16 sps:$4 sm:$0xff]  }
 0x45d   :  { %3752 = vmatpush3.bf16.msra.mxu0 %v6138_v51  ;;  %4239 = vtanh.f32 %v6119_v5 }
 0x45e   :  { %v4232_v54 = vpop.eup %4231 }
 0x45f   :  { %v2011_v2 = vmul.f32 %v4232_v54, %v4230_v7  ;;  %v4508_v7 = vld [vmem:[%s6610_s0 + $0x18] sm:$0xff]   ;;  %v4509_v54 = vld [vmem:[%s6610_s0 + $0x20] sm:$0xff]  }
 0x461   :  { %v4234_v0 = vpop.eup %4233  ;;  %v6143_v37 = vpack.c.bf16 %v2011_v2, %v2010_v25  ;;  %v4511_v25 = vld [vmem:[#allocation8 + $0x6c] ss:$16 sps:$4 sm:$0xff]   ;;  %v4512_v2 = vld [vmem:[#allocation8 + $0x68] ss:$16 sps:$4 sm:$0xff]  }
 0x462   :  { %v1949_v17 = vadd.f32 1.0, %v4234_v0  ;;  %v4236_v38 = vpop.eup %4235  ;;  %v4513_v0 = vld [vmem:[#allocation8 + $0x8c] ss:$16 sps:$4 sm:$0xff]  }
 0x463   :  { %3753 = vmatprep.subr.bf16.mxu0 %v6143_v37 }
 0x464   :  { %4241 = vrcp.f32 %v1949_v17  ;;  %3754 = vmatpush3.bf16.msra.mxu0 %v6143_v37  ;;  %v4514_v17 = vld [vmem:[%s6610_s0 + $0x28] sm:$0xff]  }
 0x466   :  { %v4238_v44 = vpop.eup %4237 }
 0x467   :  { %v4240_v12 = vpop.eup %4239  ;;  %v2012_v50 = vmul.f32 %v4238_v44, %v4236_v38  ;;  %v4515_v38 = vld [vmem:[%s6610_s0 + $0x30] sm:$0xff]   ;;  %v4516_v44 = vld [vmem:[#allocation8 + $0x88] ss:$16 sps:$4 sm:$0xff]  }
 0x46e   :  { %v4242_v6 = vpop.eup %4241 }
 0x46f   :  { %v2013_v13 = vmul.f32 %v4242_v6, %v4240_v12  ;;  %v4517_v12 = vld [vmem:[#allocation8 + $0xac] ss:$16 sps:$4 sm:$0xff]   ;;  %v4518_v6 = vld [vmem:[#allocation8 + $0xa8] ss:$16 sps:$4 sm:$0xff]  }
 0x471   :  { %v6149_v35 = vpack.c.bf16 %v2013_v13, %v2012_v50  ;;  %v4519_v50 = vld [vmem:[#allocation8 + $0xcc] ss:$16 sps:$4 sm:$0xff]  }
 0x472   :  { %v4520_v13 = vld [vmem:[%s6610_s0 + $0x38] sm:$0xff]  }
 0x473   :  { %3755 = vmatprep.subr.bf16.mxu0 %v6149_v35 }
 0x474   :  { %3756 = vmatpush3.bf16.msra.mxu0 %v6149_v35 }
 0x475   :  { %2240 = vmatprep.subr.bf16.mxu0 %v4501_v46  ;;  %v4521_v46 = vld [vmem:[#allocation8 + $0xc8] ss:$16 sps:$4 sm:$0xff]  }
 0x477   :  { %3758 = vmatmul.mubr.bf16.vlgmr.msra.gmra.mrb[80].mxu0 %v4502_v40  ;;  %v4522_v40 = vld [vmem:[#allocation8 + $0xec] ss:$16 sps:$4 sm:$0xff]  }
 0x478   :  { %3761 = vmatprep.mubr.bf16.mxu0 %v4503_v61  ;;  %2241 = vmatpush1.bf16.msra.mxu0 %v4504_v52  ;;  %v4523_v61 = vld [vmem:[#allocation8 + $0xe8] ss:$16 sps:$4 sm:$0xff]   ;;  %v4524_v52 = vld [vmem:[#allocation8 + $0x10c] ss:$16 sps:$4 sm:$0xff]  }
 0x479   :  { %2242 = vmatprep.subr.bf16.mxu0 %v4505_v18  ;;  %v4525_v18 = vld [vmem:[#allocation8 + $0x108] ss:$16 sps:$4 sm:$0xff]  }
 0x47c   :  { %2243 = vmatpush1.bf16.msra.mxu0 %v4506_v56  ;;  %v4526_v56 = vld [vmem:[#allocation8 + $0x12c] ss:$16 sps:$4 sm:$0xff]  }
 0x47d   :  { %2244 = vmatprep.subr.bf16.mxu0 %v4507_v45  ;;  %v4527_v45 = vld [vmem:[#allocation8 + $0x128] ss:$16 sps:$4 sm:$0xff]  }
 0x47f   :  { %3762 = vmatmul.mubr.bf16.gmra.mrb[84].mxu0 %v4508_v7  ;;  %v4528_v7 = vld [vmem:[#allocation8 + $0x14c] ss:$16 sps:$4 sm:$0xff]  }
 0x480   :  { %3765 = vmatprep.mubr.bf16.mxu0 %v4509_v54  ;;  %2245 = vmatpush1.bf16.msra.mxu0 %v4510_v33  ;;  %v4529_v54 = vld [vmem:[#allocation8 + $0x148] ss:$16 sps:$4 sm:$0xff]   ;;  %v4530_v33 = vld [vmem:[#allocation8 + $0x16c] ss:$16 sps:$4 sm:$0xff]  }
 0x481   :  { %2246 = vmatprep.subr.bf16.mxu0 %v4511_v25  ;;  %v4531_v25 = vld [vmem:[#allocation8 + $0x168] ss:$16 sps:$4 sm:$0xff]  }
 0x484   :  { %2247 = vmatpush1.bf16.msra.mxu0 %v4512_v2  ;;  %v4532_v2 = vld [vmem:[#allocation8 + $0x18c] ss:$16 sps:$4 sm:$0xff]  }
 0x485   :  { %2248 = vmatprep.subr.bf16.mxu0 %v4513_v0  ;;  %v4533_v0 = vld [vmem:[#allocation8 + $0x188] ss:$16 sps:$4 sm:$0xff]  }
 0x487   :  { %3766 = vmatmul.mubr.bf16.gmra.mrb[88].mxu0 %v4514_v17  ;;  %v4534_v17 = vld [vmem:[#allocation8 + $0x1ac] ss:$16 sps:$4 sm:$0xff]  }
 0x488   :  { %3769 = vmatprep.mubr.bf16.mxu0 %v4515_v38  ;;  %2249 = vmatpush1.bf16.msra.mxu0 %v4516_v44  ;;  %v4535_v38 = vld [vmem:[#allocation8 + $0x1a8] ss:$16 sps:$4 sm:$0xff]   ;;  %v4536_v44 = vld [vmem:[#allocation8 + $0x1cc] ss:$16 sps:$4 sm:$0xff]  }
 0x489   :  { %2250 = vmatprep.subr.bf16.mxu0 %v4517_v12  ;;  %v4537_v12 = vld [vmem:[#allocation8 + $0x1c8] ss:$16 sps:$4 sm:$0xff]  }
 0x48c   :  { %2251 = vmatpush1.bf16.msra.mxu0 %v4518_v6  ;;  %v4538_v6 = vld [vmem:[#allocation8 + $0x1ec] ss:$16 sps:$4 sm:$0xff]  }
 0x48d   :  { %2252 = vmatprep.subr.bf16.mxu0 %v4519_v50  ;;  %v4539_v50 = vld [vmem:[#allocation8 + $0x1e8] ss:$16 sps:$4 sm:$0xff]  }
 0x48f   :  { %3770 = vmatmul.mubr.bf16.gmra.mrb[92].mxu0 %v4520_v13 }
 0x490   :  { %2253 = vmatpush1.bf16.msra.mxu0 %v4521_v46 }
 0x491   :  { %2254 = vmatprep.subr.bf16.mxu0 %v4522_v40 }
 0x494   :  { %2255 = vmatpush1.bf16.msra.mxu0 %v4523_v61 }
 0x495   :  { %2256 = vmatprep.subr.bf16.mxu0 %v4524_v52 }
 0x498   :  { %2257 = vmatpush1.bf16.msra.mxu0 %v4525_v18 }
 0x499   :  { %2258 = vmatprep.subr.bf16.mxu0 %v4526_v56 }
 0x49c   :  { %2259 = vmatpush1.bf16.msra.mxu0 %v4527_v45 }
 0x49d   :  { %2260 = vmatprep.subr.bf16.mxu0 %v4528_v7 }
 0x4a0   :  { %2261 = vmatpush1.bf16.msra.mxu0 %v4529_v54 }
 0x4a1   :  { %2262 = vmatprep.subr.bf16.mxu0 %v4530_v33 }
 0x4a4   :  { %2263 = vmatpush1.bf16.msra.mxu0 %v4531_v25 }
 0x4a5   :  { %2264 = vmatprep.subr.bf16.mxu0 %v4532_v2 }
 0x4a8   :  { %2265 = vmatpush1.bf16.msra.mxu0 %v4533_v0 }
 0x4a9   :  { %2266 = vmatprep.subr.bf16.mxu0 %v4534_v17 }
 0x4ac   :  { %2267 = vmatpush1.bf16.msra.mxu0 %v4535_v38 }
 0x4ad   :  { %2268 = vmatprep.subr.bf16.mxu0 %v4536_v44 }
 0x4b0   :  { %2269 = vmatpush1.bf16.msra.mxu0 %v4537_v12 }
 0x4b1   :  { %2270 = vmatprep.subr.bf16.mxu0 %v4538_v6 }
 0x4b4   :  { %2271 = vmatpush1.bf16.msra.mxu0 %v4539_v50 }
 0x54a   :  { %v3759_v13 = vpop.f32.mrb[80].mxu0 }
 0x54b   :  { %v2056_v46 = vpop.f32.mrb[81].mxu0 }
 0x54c   :  { %v3760_v40 = vpop.f32.mrb[82].mxu0 }
 0x54d   :  { %v2120_v61 = vpack.c.bf16 %v3760_v40, %v3759_v13  ;;  %v2059_v52 = vpop.f32.mrb[83].mxu0  ;;  %v3975_v40 = vld [vmem:[#allocation10 + $0x20] sm:$0xff]  }
 0x54e   :  { %v2119_v18 = vpack.c.bf16 %v2059_v52, %v2056_v46 }
 0x550   :  { %2159 = vmatprep.mubr.bf16.mxu1 %v2119_v18  ;;  %2272 = vmatprep.mubr.bf16.mxu0 %v2119_v18  ;;  %v6912_v18 = vld [vmem:[#allocation76_spill] sm:$0xff] }
 0x551   :  { %2160 = vmatmul.mubr.bf16.vlgmr.msra.gmra.mrb[80].mxu1 %v6083_v55  ;;  %2273 = vmatmul.mubr.bf16.vlgmr.msra.gmra.mrb[96].mxu0 %v6083_v55 }
 0x552   :  { %2169 = vmatprep.mubr.bf16.mxu1 %v2120_v61  ;;  %2282 = vmatprep.mubr.bf16.mxu0 %v2120_v61  ;;  %v3763_v56 = vpop.f32.mrb[84].mxu0  ;;  %v3977_v61 = vld [vmem:[#allocation10 + $0x30] sm:$0xff]  }
 0x553   :  { %v2072_v45 = vpop.f32.mrb[85].mxu0 }
 0x554   :  { %v3764_v7 = vpop.f32.mrb[86].mxu0 }
 0x555   :  { %v2122_v54 = vpack.c.bf16 %v3764_v7, %v3763_v56  ;;  %v2075_v33 = vpop.f32.mrb[87].mxu0 }
 0x556   :  { %v2121_v25 = vpack.c.bf16 %v2075_v33, %v2072_v45  ;;  %v6194_v45 = vld [vmem:[%s6617_s7] ss:$0 sm:$0xff] }
 0x557   :  { %v2417_v7 = vmul.f32 %v6194_v45, %v5732_v27 }
 0x559   :  { %2170 = vmatmul.mubr.bf16.gmra.mrb[84].mxu1 %v6104_v42  ;;  %2283 = vmatmul.mubr.bf16.gmra.mrb[100].mxu0 %v6104_v42 }
 0x55a   :  { %2179 = vmatprep.mubr.bf16.mxu1 %v2121_v25  ;;  %2292 = vmatprep.mubr.bf16.mxu0 %v2121_v25  ;;  %v3767_v2 = vpop.f32.mrb[88].mxu0  ;;  %v3978_v25 = vld [vmem:[#allocation10 + $0x38] sm:$0xff]  }
 0x55b   :  { %v2088_v0 = vpop.f32.mrb[89].mxu0 }
 0x55c   :  { %v3768_v17 = vpop.f32.mrb[90].mxu0 }
 0x55d   :  { %v2124_v38 = vpack.c.bf16 %v3768_v17, %v3767_v2  ;;  %v2091_v44 = vpop.f32.mrb[91].mxu0  ;;  %v6913_v2 = vld [vmem:[#allocation78_spill] sm:$0xff]  ;;  %v2545_v17 = vmul.f32 %v6013_v14, %v5732_v27 }
 0x55e   :  { %v2123_v55 = vpack.c.bf16 %v2091_v44, %v2088_v0 }
 0x561   :  { %2180 = vmatmul.mubr.bf16.gmra.mrb[88].mxu1 %v6110_v39  ;;  %2293 = vmatmul.mubr.bf16.gmra.mrb[104].mxu0 %v6110_v39  ;;  %v3971_v39 = vld [vmem:[#allocation10] sm:$0xff]  }
 0x562   :  { %2189 = vmatprep.mubr.bf16.mxu1 %v2122_v54  ;;  %2302 = vmatprep.mubr.bf16.mxu0 %v2122_v54  ;;  %v3771_v12 = vpop.f32.mrb[92].mxu0 }
 0x563   :  { %v2104_v6 = vpop.f32.mrb[93].mxu0  ;;  %3773 = vmatprep.subr.bf16.mxu1 %v3971_v39 }
 0x564   :  { %v3772_v50 = vpop.f32.mrb[94].mxu0  ;;  %3774 = vmatpush3.bf16.msra.mxu1 %v3971_v39  ;;  %v6915_v39 = vld [vmem:[#allocation82_spill] sm:$0xff] }
 0x565   :  { %v2126_v13 = vpack.c.bf16 %v3772_v50, %v3771_v12  ;;  %v2107_v46 = vpop.f32.mrb[95].mxu0  ;;  %v6914_v12 = vld [vmem:[#allocation80_spill] sm:$0xff]  ;;  %v2418_v50 = vmul.f32 %v6194_v45, %v6896_v24 }
 0x566   :  { %v2125_v42 = vpack.c.bf16 %v2107_v46, %v2104_v6 }
 0x569   :  { %2190 = vmatmul.mubr.bf16.gmra.mrb[92].mxu1 %v6129_v48  ;;  %2303 = vmatmul.mubr.bf16.gmra.mrb[108].mxu0 %v6129_v48  ;;  %v3972_v48 = vld [vmem:[#allocation10 + $0x8] sm:$0xff]  }
 0x56a   :  { %2199 = vmatprep.mubr.bf16.mxu1 %v2123_v55  ;;  %2312 = vmatprep.mubr.bf16.mxu0 %v2123_v55 }
 0x56b   :  { %3775 = vmatprep.subr.bf16.mxu1 %v3972_v48 }
 0x56c   :  { %3776 = vmatpush3.bf16.msra.mxu1 %v3972_v48 }
 0x571   :  { %2200 = vmatmul.mubr.bf16.gmra.mrb[96].mxu1 %v6133_v41  ;;  %2313 = vmatmul.mubr.bf16.gmra.mrb[112].mxu0 %v6133_v41  ;;  %v3973_v41 = vld [vmem:[#allocation10 + $0x10] sm:$0xff]  }
 0x572   :  { %2209 = vmatprep.mubr.bf16.mxu1 %v2124_v38  ;;  %2322 = vmatprep.mubr.bf16.mxu0 %v2124_v38 }
 0x573   :  { %3777 = vmatprep.subr.bf16.mxu1 %v3973_v41 }
 0x574   :  { %3778 = vmatpush3.bf16.msra.mxu1 %v3973_v41  ;;  %v2546_v41 = vmul.f32 %v6013_v14, %v6896_v24 }
 0x579   :  { %2210 = vmatmul.mubr.bf16.gmra.mrb[100].mxu1 %v6138_v51  ;;  %2323 = vmatmul.mubr.bf16.gmra.mrb[116].mxu0 %v6138_v51  ;;  %v3974_v51 = vld [vmem:[#allocation10 + $0x18] sm:$0xff]  }
 0x57a   :  { %2219 = vmatprep.mubr.bf16.mxu1 %v2125_v42  ;;  %2332 = vmatprep.mubr.bf16.mxu0 %v2125_v42 }
 0x57b   :  { %3779 = vmatprep.subr.bf16.mxu1 %v3974_v51 }
 0x57c   :  { %3780 = vmatpush3.bf16.msra.mxu1 %v3974_v51 }
 0x57d   :  { %3781 = vmatprep.subr.bf16.mxu1 %v3975_v40 }
 0x580   :  { %3782 = vmatpush3.bf16.msra.mxu1 %v3975_v40 }
 0x581   :  { %2220 = vmatmul.mubr.bf16.gmra.mrb[104].mxu1 %v6143_v37  ;;  %2333 = vmatmul.mubr.bf16.gmra.mrb[120].mxu0 %v6143_v37  ;;  %v3976_v37 = vld [vmem:[#allocation10 + $0x28] sm:$0xff]  }
 0x582   :  { %2229 = vmatprep.mubr.bf16.mxu1 %v2126_v13  ;;  %2342 = vmatprep.mubr.bf16.mxu0 %v2126_v13 }
 0x583   :  { %3783 = vmatprep.subr.bf16.mxu1 %v3976_v37 }
 0x584   :  { %3784 = vmatpush3.bf16.msra.mxu1 %v3976_v37 }
 0x585   :  { %3785 = vmatprep.subr.bf16.mxu1 %v3977_v61 }
 0x588   :  { %3786 = vmatpush3.bf16.msra.mxu1 %v3977_v61 }
 0x589   :  { %2230 = vmatmul.mubr.bf16.gmra.mrb[108].mxu1 %v6149_v35  ;;  %2343 = vmatmul.mubr.bf16.gmra.mrb[124].mxu0 %v6149_v35 }
 0x58a   :  { %3787 = vmatprep.subr.bf16.mxu1 %v3978_v25 }
 0x58c   :  { %3788 = vmatpush3.bf16.msra.mxu1 %v3978_v25 }
 0x624   :  { %v2161_v35 = vpop.f32.mrb[80].mxu1  ;;  %v2274_v52 = vpop.f32.mrb[96].mxu0 }
 0x625   :  { %v2353_v56 = vadd.f32 %v2161_v35, %v6912_v18  ;;  %v2163_v54 = vpop.f32.mrb[81].mxu1  ;;  %v6198_v33 = vpop.f32.mrb[97].mxu0 }
 0x626   :  { %v2354_v0 = vadd.f32 %v2163_v54, %v6913_v2  ;;  %v2165_v38 = vpop.f32.mrb[82].mxu1  ;;  %v2278_v44 = vpop.f32.mrb[98].mxu0  ;;  %v6916_v54 = vld [vmem:[#allocation77_spill] sm:$0xff] }
 0x627   :  { %v2433_v55 = vadd.f32 %v2417_v7, %v2353_v56  ;;  %v2357_v6 = vadd.f32 %v2165_v38, %v6914_v12  ;;  %v2167_v13 = vpop.f32.mrb[83].mxu1  ;;  %v6206_v46 = vpop.f32.mrb[99].mxu0  ;;  %v2355_v2 = vadd.f32 %v2274_v52, %v6916_v54  ;;  %v2419_v38 = vmul.f32 %v6194_v45, %v6897_v15 }
 0x628   :  { %v2561_v42 = vadd.f32 %v2545_v17, %v2354_v0  ;;  %v2358_v48 = vadd.f32 %v2167_v13, %v6915_v39  ;;  %v6917_v0 = vld [vmem:[#allocation84_spill] sm:$0xff] }
 0x629   :  { %v3531_v51 = vmul.f32 -1.442695, %v2433_v55  ;;  %v2434_v40 = vadd.f32 %v2418_v50, %v2357_v6  ;;  %v6918_v55 = vld [vmem:[#allocation81_spill] sm:$0xff]  ;;  %v6919_v50 = vld [vmem:[#allocation86_spill] sm:$0xff] }
 0x62a   :  { %v3547_v37 = vmul.f32 -1.442695, %v2561_v42  ;;  %v2562_v61 = vadd.f32 %v2546_v41, %v2358_v48  ;;  %v2359_v6 = vadd.f32 %v2278_v44, %v6918_v55  ;;  %v2547_v42 = vmul.f32 %v6013_v14, %v6897_v15  ;;  %v6920_v41 = vld [vmem:[#allocation23_spill] sm:$0xff] }
 0x62b   :  { %4243 = vpow2.f32 %v3531_v51  ;;  %v3532_v35 = vmul.f32 -1.442695, %v2434_v40  ;;  %v2420_v40 = vmul.f32 %v6194_v45, %v6899_v21 }
 0x62c   :  { %4245 = vpow2.f32 %v3547_v37  ;;  %v3548_v18 = vmul.f32 -1.442695, %v2562_v61  ;;  %v2171_v56 = vpop.f32.mrb[84].mxu1  ;;  %v2284_v7 = vpop.f32.mrb[100].mxu0 }
 0x62d   :  { %4247 = vpow2.f32 %v3532_v35  ;;  %v2361_v17 = vadd.f32 %v2171_v56, %v6917_v0  ;;  %v2173_v12 = vpop.f32.mrb[85].mxu1  ;;  %v6215_v25 = vpop.f32.mrb[101].mxu0  ;;  %v6921_v56 = vld [vmem:[#allocation25_spill] sm:$0xff] }
 0x62e   :  { %4249 = vpow2.f32 %v3548_v18  ;;  %v2362_v13 = vadd.f32 %v2173_v12, %v6919_v50  ;;  %v2175_v39 = vpop.f32.mrb[86].mxu1  ;;  %v2288_v48 = vpop.f32.mrb[102].mxu0  ;;  %v2548_v18 = vmul.f32 %v6013_v14, %v6899_v21 }
 0x62f   :  { %v2435_v52 = vadd.f32 %v2419_v38, %v2361_v17  ;;  %v2365_v51 = vadd.f32 %v2175_v39, %v6920_v41  ;;  %v2177_v37 = vpop.f32.mrb[87].mxu1  ;;  %v6224_v61 = vpop.f32.mrb[103].mxu0  ;;  %4251 = vtanh.f32 %v2355_v2  ;;  %v6922_v38 = vld [vmem:[#allocation85_spill] sm:$0xff]  ;;  %v2421_v2 = vmul.f32 %v6194_v45, %v6900_v29 }
 0x630   :  { %v2563_v35 = vadd.f32 %v2547_v42, %v2362_v13  ;;  %v2366_v44 = vadd.f32 %v2177_v37, %v6921_v56  ;;  %4253 = vtanh.f32 %v2359_v6  ;;  %v2363_v55 = vadd.f32 %v2284_v7, %v6922_v38  ;;  %v6923_v42 = vld [vmem:[#allocation27_spill] sm:$0xff] }
 0x631   :  { %v3533_v54 = vmul.f32 -1.442695, %v2435_v52  ;;  %v2436_v0 = vadd.f32 %v2420_v40, %v2365_v51  ;;  %v2549_v6 = vmul.f32 %v6013_v14, %v6900_v29  ;;  %v6925_v38 = vld [vmem:[#allocation31_spill] sm:$0xff] }
 0x632   :  { %v3549_v12 = vmul.f32 -1.442695, %v2563_v35  ;;  %v2564_v17 = vadd.f32 %v2548_v18, %v2366_v44  ;;  %v6924_v35 = vld [vmem:[#allocation29_spill] sm:$0xff]  ;;  %v2422_v18 = vmul.f32 %v6194_v45, %v6903_v59 }
 0x633   :  { %4255 = vpow2.f32 %v3533_v54  ;;  %v3534_v50 = vmul.f32 -1.442695, %v2436_v0 }
 0x634   :  { %4257 = vpow2.f32 %v3549_v12  ;;  %v3550_v39 = vmul.f32 -1.442695, %v2564_v17  ;;  %v2181_v41 = vpop.f32.mrb[88].mxu1  ;;  %v6230_v43 = vpop.f32.mrb[104].mxu0 }
 0x635   :  { %v4244_v13 = vpop.eup %4243  ;;  %4259 = vpow2.f32 %v3534_v50  ;;  %v2369_v37 = vadd.f32 %v2181_v41, %v6923_v42  ;;  %v2183_v52 = vpop.f32.mrb[89].mxu1 }
 0x636   :  { %v6237_v51 = vpop.f32.mrb[105].mxu0  ;;  %v4246_v7 = vpop.eup %4245  ;;  %v2497_v40 = vadd.f32 1.0, %v4244_v13  ;;  %4261 = vpow2.f32 %v3550_v39  ;;  %v2370_v56 = vadd.f32 %v2183_v52, %v6924_v35 }
 0x637   :  { %v2185_v44 = vpop.f32.mrb[90].mxu1  ;;  %v6242_v54 = vpop.f32.mrb[106].mxu0  ;;  %v2625_v12 = vadd.f32 1.0, %v4246_v7  ;;  %4263 = vtanh.f32 %v2363_v55  ;;  %v2437_v17 = vadd.f32 %v2421_v2, %v2369_v37  ;;  %v2550_v55 = vmul.f32 %v6013_v14, %v6903_v59  ;;  %v6927_v2 = vld [vmem:[#allocation24_spill] sm:$0xff] }
 0x638   :  { %v4248_v0 = vpop.eup %4247  ;;  %v2373_v50 = vadd.f32 %v2185_v44, %v6925_v38  ;;  %v2187_v41 = vpop.f32.mrb[91].mxu1  ;;  %4265 = vrcp.f32 %v2497_v40  ;;  %v2565_v13 = vadd.f32 %v2549_v6, %v2370_v56  ;;  %v2367_v7 = vadd.f32 %v2288_v48, %v6927_v2  ;;  %v6929_v48 = vld [vmem:[#allocation37_spill] sm:$0xff] }
 0x639   :  { %v6245_v42 = vpop.f32.mrb[107].mxu0  ;;  %v4250_v26 = vpop.eup %4249  ;;  %v2498_v39 = vadd.f32 1.0, %v4248_v0  ;;  %4267 = vrcp.f32 %v2625_v12  ;;  %v3535_v35 = vmul.f32 -1.442695, %v2437_v17  ;;  %v2374_v49 = vadd.f32 %v2187_v41, %v6926_v30 }
 0x63a   :  { %v2626_v52 = vadd.f32 1.0, %v4250_v26  ;;  %v2438_v20 = vadd.f32 %v2422_v18, %v2373_v50  ;;  %v3551_v58 = vmul.f32 -1.442695, %v2565_v13  ;;  %v4252_v37 = vpop.eup %4251  ;;  %v6928_v18 = vld [vmem:[#allocation35_spill] sm:$0xff]  ;;  %v2423_v30 = vmul.f32 %v6194_v45, %v5886_v57 }
 0x63b   :  { %4269 = vrcp.f32 %v2498_v39  ;;  %v4254_v38 = vpop.eup %4253  ;;  %v2566_v40 = vadd.f32 %v2550_v55, %v2374_v49  ;;  %v2551_v49 = vmul.f32 %v6013_v14, %v5886_v57 }
 0x63c   :  { %4271 = vrcp.f32 %v2626_v52  ;;  %v3536_v44 = vmul.f32 -1.442695, %v2438_v20  ;;  %v2191_v6 = vpop.f32.mrb[92].mxu1  ;;  %v2304_v56 = vpop.f32.mrb[108].mxu0 }
 0x63d   :  { %4273 = vpow2.f32 %v3535_v35  ;;  %v4256_v26 = vpop.eup %4255  ;;  %v2377_v0 = vadd.f32 %v2191_v6, %v6928_v18  ;;  %v2193_v12 = vpop.f32.mrb[93].mxu1 }
 0x63e   :  { %4275 = vpow2.f32 %v3551_v58  ;;  %v6254_v17 = vpop.f32.mrb[109].mxu0  ;;  %v4258_v50 = vpop.eup %4257  ;;  %v2499_v41 = vadd.f32 1.0, %v4256_v26  ;;  %v2378_v20 = vadd.f32 %v2193_v12, %v6929_v48 }
 0x63f   :  { %4277 = vpow2.f32 %v3536_v44  ;;  %v2195_v39 = vpop.f32.mrb[94].mxu1  ;;  %v6259_v13 = vpop.f32.mrb[110].mxu0  ;;  %v2627_v52 = vadd.f32 1.0, %v4258_v50  ;;  %v2439_v35 = vadd.f32 %v2423_v30, %v2377_v0  ;;  %v3552_v44 = vmul.f32 -1.442695, %v2566_v40  ;;  %v6931_v50 = vld [vmem:[#allocation28_spill] sm:$0xff] }
 0x640   :  { %v4260_v58 = vpop.eup %4259  ;;  %4279 = vtanh.f32 %v2367_v7  ;;  %v6261_v55 = vpop.f32.mrb[95].mxu1  ;;  %v2567_v18 = vadd.f32 %v2551_v49, %v2378_v20  ;;  %v2381_v3 = vadd.f32 %v2195_v39, %v6930_v28  ;;  %v2371_v7 = vadd.f32 %v6230_v43, %v6931_v50  ;;  %v6932_v49 = vld [vmem:[#allocation32_spill] sm:$0xff] }
 0x641   :  { %v6263_v2 = vpop.f32.mrb[111].mxu0  ;;  %v4262_v6 = vpop.eup %4261  ;;  %4281 = vrcp.f32 %v2499_v41  ;;  %v2500_v26 = vadd.f32 1.0, %v4260_v58  ;;  %v3537_v31 = vmul.f32 -1.442695, %v2439_v35  ;;  %v2424_v41 = vmul.f32 %v6194_v45, %v5903_v60 }
 0x642   :  { %v4264_v12 = vpop.eup %4263  ;;  %4283 = vrcp.f32 %v2627_v52  ;;  %v2628_v48 = vadd.f32 1.0, %v4262_v6  ;;  %v3553_v5 = vmul.f32 -1.442695, %v2567_v18  ;;  %v2375_v58 = vadd.f32 %v6242_v54, %v6932_v49 }
 0x643   :  { %v4266_v16 = vpop.eup %4265  ;;  %4285 = vrcp.f32 %v2500_v26  ;;  %v2440_v43 = vadd.f32 %v2424_v41, %v2381_v3  ;;  %v2552_v49 = vmul.f32 %v6013_v14, %v5903_v60 }
 0x644   :  { %v4268_v0 = vpop.eup %4267  ;;  %v2705_v30 = vmul.f32 %v4266_v16, %v4252_v37  ;;  %4287 = vrcp.f32 %v2628_v48  ;;  %v2201_v28 = vpop.f32.mrb[96].mxu1 }
 0x645   :  { %v4270_v40 = vpop.eup %4269  ;;  %v2689_v20 = vmul.f32 %v4268_v0, %v5732_v27  ;;  %4289 = vpow2.f32 %v3552_v44  ;;  %v6273_v39 = vpop.f32.mrb[112].mxu0  ;;  %v6933_v27 = vld [vmem:[#allocation36_spill] sm:$0xff]  ;;  %v6934_v0 = vld [vmem:[#allocation79_spill] sm:$0xff] }
 0x646   :  { %v4272_v52 = vpop.eup %4271  ;;  %v2706_v35 = vmul.f32 %v4270_v40, %v4254_v38  ;;  %4291 = vpow2.f32 %v3537_v31  ;;  %v6275_v16 = vpop.f32.mrb[97].mxu1  ;;  %v2379_v48 = vadd.f32 %v2304_v56, %v6933_v27  ;;  %v2356_v31 = vadd.f32 %v6198_v33, %v6934_v0  ;;  %v6936_v27 = vld [vmem:[#allocation83_spill] sm:$0xff] }
 0x647   :  { %v6277_v37 = vpop.f32.mrb[113].mxu0  ;;  %v4274_v6 = vpop.eup %4273  ;;  %v2721_v26 = vadd.f32 %v2705_v30, %v2689_v20  ;;  %v2690_v18 = vmul.f32 %v4272_v52, %v6896_v24  ;;  %4293 = vtanh.f32 %v2371_v7  ;;  %v6294_v24 = vld [vmem:[%s6617_s7 + $0x2] ss:$0 sm:$0xff]  ;;  %v2360_v0 = vadd.f32 %v6206_v46, %v6936_v27 }
 0x648   :  { %v6281_v54 = vpop.f32.mrb[98].mxu1  ;;  %v6283_v44 = vpop.f32.mrb[114].mxu0  ;;  %v2501_v3 = vadd.f32 1.0, %v4274_v6  ;;  %4295 = vpow2.f32 %v3553_v5  ;;  %v3538_v5 = vmul.f32 -1.442695, %v2440_v43  ;;  %v2425_v43 = vmul.f32 %v6194_v45, %v5958_v8 }
 0x649   :  { %v4276_v50 = vpop.eup %4275  ;;  %v6287_v38 = vpop.f32.mrb[99].mxu1  ;;  %v2737_v56 = vmul.f32 %v6294_v24, %v2721_v26  ;;  %3313 = vst [vmem:[#allocation16] sm:$0xff] %v2721_v26  ;;  %v2722_v7 = vadd.f32 %v2706_v35, %v2690_v18  ;;  %4297 = vtanh.f32 %v2375_v58  ;;  %v6937_v58 = vld [vmem:[#allocation41_spill] sm:$0xff] }
 0x64a   :  { %v6289_v41 = vpop.f32.mrb[115].mxu0  ;;  %v4278_v30 = vpop.eup %4277  ;;  %v2629_v40 = vadd.f32 1.0, %v4276_v50  ;;  %4299 = vrcp.f32 %v2501_v3  ;;  %v2382_v18 = vadd.f32 %v6261_v55, %v6937_v58  ;;  %v6939_v55 = vld [vmem:[#allocation43_spill] sm:$0xff] }
 0x64b   :  { %6935 = vst [vmem:[#allocation72_spill] sm:$0xff] %v6289_v41  ;;  %v4280_v20 = vpop.eup %4279  ;;  %v2502_v33 = vadd.f32 1.0, %v4278_v30  ;;  %v2753_v6 = vadd.f32 %v2737_v56, %v2356_v31  ;;  %v2738_v41 = vmul.f32 %v6294_v24, %v2722_v7  ;;  %3314 = vst [vmem:[#allocation16 + $0x8] sm:$0xff] %v2722_v7  ;;  %4301 = vtanh.f32 %v2379_v48 }
 0x64c   :  { %v4282_v52 = vpop.eup %4281  ;;  %4303 = vrcp.f32 %v2629_v40  ;;  %v6307_v46 = vpop.f32.mrb[100].mxu1 }
 0x64d   :  { %v4284_v10 = vpop.eup %4283  ;;  %v2707_v35 = vmul.f32 %v4282_v52, %v4264_v12  ;;  %v3563_v14 = vmul.f32 -1.442695, %v2753_v6  ;;  %v2754_v3 = vadd.f32 %v2738_v41, %v2360_v0  ;;  %4305 = vrcp.f32 %v2502_v33  ;;  %v6309_v30 = vpop.f32.mrb[116].mxu0  ;;  %v6938_v12 = vld [vmem:[#allocation40_spill] sm:$0xff] }
 0x64e   :  { %v4286_v50 = vpop.eup %4285  ;;  %v2691_v31 = vmul.f32 %v4284_v10, %v6897_v15  ;;  %4307 = vpow2.f32 %v3538_v5  ;;  %v2383_v40 = vadd.f32 %v6259_v13, %v6938_v12  ;;  %v2385_v52 = vadd.f32 %v2201_v28, %v6939_v55  ;;  %v6314_v27 = vpop.f32.mrb[101].mxu1  ;;  %v6941_v13 = vld [vmem:[#allocation87_spill] sm:$0xff] }
 0x64f   :  { %v4288_v48 = vpop.eup %4287  ;;  %v2708_v56 = vmul.f32 %v4286_v50, %v4280_v20  ;;  %v6316_v58 = vpop.f32.mrb[117].mxu0  ;;  %4309 = vpow2.f32 %v3563_v14  ;;  %v3564_v10 = vmul.f32 -1.442695, %v2754_v3  ;;  %v2364_v28 = vadd.f32 %v6215_v25, %v6941_v13 }
 0x650   :  { %6940 = vst [vmem:[#allocation54_spill] sm:$0xff] %v6316_v58  ;;  %v4290_v41 = vpop.eup %4289  ;;  %v6318_v15 = vadd.f32 %v2707_v35, %v2691_v31  ;;  %v2692_v33 = vmul.f32 %v4288_v48, %v6899_v21  ;;  %v6321_v6 = vpop.f32.mrb[102].mxu1  ;;  %4311 = vtanh.f32 %v2721_v26  ;;  %v2568_v50 = vadd.f32 %v2552_v49, %v2382_v18  ;;  %v6943_v26 = vld [vmem:[#allocation26_spill] sm:$0xff]  ;;  %v6944_v58 = vld [vmem:[#allocation45_spill] sm:$0xff] }
 0x651   :  { %v6323_v20 = vpop.f32.mrb[118].mxu0  ;;  %v4292_v5 = vpop.eup %4291  ;;  %v2630_v0 = vadd.f32 1.0, %v4290_v41  ;;  %4313 = vpow2.f32 %v3564_v10  ;;  %v2368_v25 = vadd.f32 %v6224_v61, %v6943_v26  ;;  %v2441_v48 = vadd.f32 %v2425_v43, %v2385_v52 }
 0x652   :  { %v6327_v12 = vpop.f32.mrb[103].mxu1  ;;  %v6329_v55 = vpop.f32.mrb[119].mxu0  ;;  %v2739_v21 = vmul.f32 %v6294_v24, %v6318_v15  ;;  %3315 = vst [vmem:[#allocation16 + $0x10] sm:$0xff] %v6318_v15  ;;  %v2724_v35 = vadd.f32 %v2708_v56, %v2692_v33  ;;  %v2503_v3 = vadd.f32 1.0, %v4292_v5  ;;  %4315 = vtanh.f32 %v2722_v7 }
 0x653   :  { %6942 = vst [vmem:[#allocation58_spill] sm:$0xff] %v6329_v55  ;;  %v4294_v14 = vpop.eup %4293  ;;  %4317 = vtanh.f32 %v2383_v40  ;;  %v3554_v55 = vmul.f32 -1.442695, %v2568_v50  ;;  %v2386_v56 = vadd.f32 %v6275_v16, %v6944_v58  ;;  %v6348_v40 = vld [vmem:[%s6617_s7 + $0x1] ss:$0 sm:$0xff] }
 0x654   :  { %v4296_v31 = vpop.eup %4295  ;;  %v2755_v18 = vadd.f32 %v2739_v21, %v2364_v28  ;;  %v2740_v41 = vmul.f32 %v6294_v24, %v2724_v35  ;;  %3316 = vst [vmem:[#allocation16 + $0x18] sm:$0xff] %v2724_v35  ;;  %4319 = vrcp.f32 %v2630_v0  ;;  %v6341_v61 = vpop.f32.mrb[104].mxu1  ;;  %v3539_v28 = vmul.f32 -1.442695, %v2441_v48  ;;  %v6945_v58 = vld [vmem:[#allocation47_spill] sm:$0xff] }
 0x655   :  { %v4298_v49 = vpop.eup %4297  ;;  %v2631_v13 = vadd.f32 1.0, %v4296_v31  ;;  %4321 = vrcp.f32 %v2503_v3  ;;  %v6343_v43 = vpop.f32.mrb[120].mxu0  ;;  %v2553_v16 = vmul.f32 %v6348_v40, %v5958_v8  ;;  %v2389_v0 = vadd.f32 %v6281_v54, %v6945_v58 }
 0x656   :  { %v4300_v10 = vpop.eup %4299  ;;  %v3565_v7 = vmul.f32 -1.442695, %v2755_v18  ;;  %v2756_v5 = vadd.f32 %v2740_v41, %v2368_v25  ;;  %v6354_v50 = vpop.f32.mrb[105].mxu1  ;;  %v2426_v54 = vmul.f32 %v6194_v45, %v6000_v11 }
 0x657   :  { %v6339_v33 = vpop.eup %4301  ;;  %v2709_v47 = vmul.f32 %v4300_v10, %v4294_v14  ;;  %4323 = vrcp.f32 %v2631_v13  ;;  %v6356_v14 = vpop.f32.mrb[121].mxu0  ;;  %v2569_v41 = vadd.f32 %v2553_v16, %v2386_v56 }
 0x658   :  { %v4304_v52 = vpop.eup %4303  ;;  %6946 = vst [vmem:[#allocation95_spill] sm:$0xff] %v6356_v14  ;;  %4325 = vpow2.f32 %v3565_v7  ;;  %v3566_v3 = vmul.f32 -1.442695, %v2756_v5  ;;  %v6359_v26 = vpop.f32.mrb[106].mxu1  ;;  %v2442_v14 = vadd.f32 %v2426_v54, %v2389_v0  ;;  %v6951_v54 = vld [vmem:[#allocation49_spill] sm:$0xff] }
 0x659   :  { %v4306_v21 = vpop.eup %4305  ;;  %v2693_v31 = vmul.f32 %v4304_v52, %v6900_v29  ;;  %v6361_v25 = vpop.f32.mrb[122].mxu0  ;;  %4327 = vpow2.f32 %v3554_v55  ;;  %v6949_v55 = vld [vmem:[#allocation30_spill] sm:$0xff] }
 0x65a   :  { %6947 = vst [vmem:[#allocation62_spill] sm:$0xff] %v6361_v25  ;;  %v4308_v48 = vpop.eup %4307  ;;  %v2710_v18 = vmul.f32 %v4306_v21, %v4298_v49  ;;  %v6365_v13 = vpop.f32.mrb[107].mxu1  ;;  %4329 = vpow2.f32 %v3566_v3  ;;  %v2372_v49 = vadd.f32 %v6237_v51, %v6949_v55  ;;  %v6377_v3 = vld [vmem:[#allocation11] sm:$0xff]   ;;  %v3540_v51 = vmul.f32 -1.442695, %v2442_v14 }
 0x65b   :  { %v6367_v10 = vpop.f32.mrb[123].mxu0  ;;  %v4310_v58 = vpop.eup %4309  ;;  %v2725_v7 = vadd.f32 %v2709_v47, %v2693_v31  ;;  %v2504_v5 = vadd.f32 1.0, %v4308_v48  ;;  %4331 = vpow2.f32 %v3539_v28  ;;  %v3555_v47 = vmul.f32 -1.442695, %v2569_v41  ;;  %3805 = vmatprep.subr.bf16.mxu1 %v6377_v3 }
 0x65c   :  { %6948 = vst [vmem:[#allocation93_spill] sm:$0xff] %v6367_v10  ;;  %v6369_v29 = vpop.eup %4311  ;;  %v2817_v52 = vadd.f32 1.0, %v4310_v58  ;;  %4333 = vtanh.f32 %v6318_v15  ;;  %v6381_v0 = vpop.f32.mrb[108].mxu1  ;;  %v2390_v58 = vadd.f32 %v6287_v38, %v6951_v54  ;;  %v6954_v38 = vld [vmem:[#allocation34_spill] sm:$0xff] }
 0x65d   :  { %v4314_v25 = vpop.eup %4313  ;;  %v2741_v56 = vmul.f32 %v6294_v24, %v2725_v7  ;;  %3317 = vst [vmem:[#allocation16 + $0x20] sm:$0xff] %v2725_v7  ;;  %4335 = vtanh.f32 %v2724_v35  ;;  %v6383_v15 = vpop.f32.mrb[124].mxu0  ;;  %v2376_v54 = vadd.f32 %v6245_v42, %v6954_v38 }
 0x65e   :  { %v6375_v16 = vpop.eup %4315  ;;  %v2818_v21 = vadd.f32 1.0, %v4314_v25  ;;  %4337 = vrcp.f32 %v2504_v5  ;;  %6950 = vst [vmem:[#allocation94_spill] sm:$0xff] %v6383_v15  ;;  %v6387_v55 = vpop.f32.mrb[109].mxu1  ;;  %v6957_v15 = vld [vmem:[#allocation44_spill] sm:$0xff] }
 0x65f   :  { %v6379_v31 = vpop.eup %4317  ;;  %v2757_v28 = vadd.f32 %v2741_v56, %v2372_v49  ;;  %4339 = vrcp.f32 %v2817_v52  ;;  %v6389_v35 = vpop.f32.mrb[125].mxu0  ;;  %v2554_v49 = vmul.f32 %v6348_v40, %v6000_v11  ;;  %v2387_v11 = vadd.f32 %v6273_v39, %v6957_v15  ;;  %v6958_v15 = vld [vmem:[#allocation51_spill] sm:$0xff] }
 0x660   :  { %v4320_v48 = vpop.eup %4319  ;;  %6952 = vst [vmem:[#allocation59_spill] sm:$0xff] %v6389_v35  ;;  %4341 = vrcp.f32 %v2818_v21  ;;  %v6395_v56 = vpop.f32.mrb[110].mxu1  ;;  %v2427_v21 = vmul.f32 %v6194_v45, %v6028_v22 }
 0x661   :  { %v4322_v25 = vpop.eup %4321  ;;  %v3567_v41 = vmul.f32 -1.442695, %v2757_v28  ;;  %v2694_v5 = vmul.f32 %v4320_v48, %v6903_v59  ;;  %v6397_v14 = vpop.f32.mrb[126].mxu0  ;;  %4343 = vpow2.f32 %v3555_v47  ;;  %v2570_v47 = vadd.f32 %v2554_v49, %v2390_v58  ;;  %v6960_v49 = vld [vmem:[#allocation48_spill] sm:$0xff] }
 0x662   :  { %6953 = vst [vmem:[#allocation96_spill] sm:$0xff] %v6397_v14  ;;  %v4324_v52 = vpop.eup %4323  ;;  %v2711_v35 = vmul.f32 %v4322_v25, %v6339_v33  ;;  %v6404_v28 = vpop.f32.mrb[111].mxu1  ;;  %v2380_v33 = vadd.f32 %v6254_v17, %v6862_v4 }
 0x663   :  { %6955 = vst [vmem:[#allocation61_spill] sm:$0xff] %v6404_v28  ;;  %v6406_v59 = vpop.f32.mrb[127].mxu0  ;;  %v4326_v48 = vpop.eup %4325  ;;  %4345 = vpow2.f32 %v3567_v41  ;;  %v6408_v10 = vadd.f32 %v2710_v18, %v2694_v5  ;;  %v2695_v14 = vmul.f32 %v4324_v52, %v5886_v57  ;;  %v2393_v5 = vadd.f32 %v6307_v46, %v6958_v15  ;;  %v6959_v52 = vld [vmem:[#allocation53_spill] sm:$0xff] }
 0x664   :  { %6956 = vst [vmem:[#allocation66_spill] sm:$0xff] %v6406_v59  ;;  %v4328_v42 = vpop.eup %4327  ;;  %v2819_v38 = vadd.f32 1.0, %v4326_v48  ;;  %4347 = vpow2.f32 %v3540_v51  ;;  %v2394_v4 = vadd.f32 %v6314_v27, %v6959_v52  ;;  %v2555_v46 = vmul.f32 %v6348_v40, %v6028_v22 }
 0x665   :  { %v4330_v25 = vpop.eup %4329  ;;  %4349 = vtanh.f32 %v2725_v7  ;;  %v2742_v59 = vmul.f32 %v6294_v24, %v6408_v10  ;;  %3318 = vst [vmem:[#allocation16 + $0x28] sm:$0xff] %v6408_v10  ;;  %v6418_v18 = vadd.f32 %v2711_v35, %v2695_v14  ;;  %v2632_v57 = vadd.f32 1.0, %v4328_v42  ;;  %v6961_v42 = vld [vmem:[#allocation55_spill] sm:$0xff] }
 0x666   :  { %v4332_v41 = vpop.eup %4331  ;;  %4351 = vrcp.f32 %v2819_v38  ;;  %v2820_v39 = vadd.f32 1.0, %v4330_v25  ;;  %v2391_v14 = vadd.f32 %v6283_v44, %v6960_v49  ;;  %v2428_v27 = vmul.f32 %v6194_v45, %v6044_v32 }
 0x667   :  { %v4334_v17 = vpop.eup %4333  ;;  %v2758_v51 = vadd.f32 %v2742_v59, %v2376_v54  ;;  %v2743_v7 = vmul.f32 %v6294_v24, %v6418_v18  ;;  %3319 = vst [vmem:[#allocation16 + $0x30] sm:$0xff] %v6418_v18  ;;  %v2505_v58 = vadd.f32 1.0, %v4332_v41  ;;  %4353 = vtanh.f32 %v2387_v11 }
 0x668   :  { %v4336_v35 = vpop.eup %4335  ;;  %4355 = vrcp.f32 %v2820_v39  ;;  %v2397_v38 = vadd.f32 %v6321_v6, %v6961_v42  ;;  %v3556_v41 = vmul.f32 -1.442695, %v2570_v47  ;;  %v2443_v39 = vadd.f32 %v2427_v21, %v2393_v5 }
 0x669   :  { %v4338_v48 = vpop.eup %4337  ;;  %v3568_v54 = vmul.f32 -1.442695, %v2758_v51  ;;  %v2759_v59 = vadd.f32 %v2743_v7, %v2380_v33  ;;  %4357 = vrcp.f32 %v2632_v57  ;;  %v2571_v52 = vadd.f32 %v2555_v46, %v2394_v4 }
 0x66a   :  { %v4340_v25 = vpop.eup %4339  ;;  %v2712_v11 = vmul.f32 %v4338_v48, %v6379_v31  ;;  %4359 = vrcp.f32 %v2505_v58  ;;  %v2398_v49 = vadd.f32 %v6327_v12, %v6861_v63  ;;  %v2444_v51 = vadd.f32 %v2428_v27, %v2397_v38 }
 0x66b   :  { %v4342_v44 = vpop.eup %4341  ;;  %4361 = vpow2.f32 %v3568_v54  ;;  %v3569_v15 = vmul.f32 -1.442695, %v2759_v59  ;;  %v2556_v6 = vmul.f32 %v6348_v40, %v6044_v32  ;;  %v3541_v21 = vmul.f32 -1.442695, %v2443_v39 }
 0x66c   :  { %v4344_v28 = vpop.eup %4343  ;;  %4363 = vtanh.f32 %v2391_v14  ;;  %v3557_v4 = vmul.f32 -1.442695, %v2571_v52  ;;  %v2401_v12 = vadd.f32 %v6341_v61, %v5806_v23  ;;  %v2882_v14 = vmul.f32 %v4342_v44, %v6375_v16  ;;  %v6962_v23 = vld [vmem:[#allocation52_spill] sm:$0xff] }
 0x66d   :  { %v4346_v33 = vpop.eup %4345  ;;  %4365 = vpow2.f32 %v3569_v15  ;;  %v2633_v57 = vadd.f32 1.0, %v4344_v28  ;;  %v2572_v58 = vadd.f32 %v2556_v6, %v2398_v49  ;;  %v2881_v28 = vmul.f32 %v4340_v25, %v6369_v29 }
 0x66e   :  { %v4348_v31 = vpop.eup %4347  ;;  %v2821_v7 = vadd.f32 1.0, %v4346_v33  ;;  %4367 = vpow2.f32 %v3556_v41  ;;  %v3542_v27 = vmul.f32 -1.442695, %v2444_v51  ;;  %v2429_v59 = vmul.f32 %v6194_v45, %v6057_v9  ;;  %3298 = vst [vmem:[#allocation14 + $0x8] sm:$0xff] %v2882_v14 }
 0x66f   :  { %v6440_v47 = vpop.eup %4349  ;;  %4369 = vrcp.f32 %v2633_v57  ;;  %v2506_v5 = vadd.f32 1.0, %v4348_v31  ;;  %v2897_v42 = vmax.f32 %v2881_v28, 0.0  ;;  %v2898_v38 = vmax.f32 %v2882_v14, 0.0  ;;  %3297 = vst [vmem:[#allocation14] sm:$0xff] %v2881_v28 }
 0x670   :  { %v4352_v63 = vpop.eup %4351  ;;  %4371 = vrcp.f32 %v2821_v7  ;;  %v2395_v61 = vadd.f32 %v6309_v30, %v6962_v23  ;;  %v3558_v29 = vmul.f32 -1.442695, %v2572_v58  ;;  %v2445_v39 = vadd.f32 %v2429_v59, %v2401_v12  ;;  %v3980_v7 = vld [vmem:[#allocation11 + $0x8] sm:$0xff]  }
 0x671   :  { %v4354_v46 = vpop.eup %4353  ;;  %4373 = vrcp.f32 %v2506_v5  ;;  %v2883_v48 = vmul.f32 %v4352_v63, %v4334_v17  ;;  %v2913_v44 = vpack.c.bf16 %v2898_v38, %v2897_v42  ;;  %v2402_v6 = vadd.f32 %v6354_v50, %v5826_v53  ;;  %v6963_v63 = vld [vmem:[#allocation56_spill] sm:$0xff] }
 0x672   :  { %v4356_v54 = vpop.eup %4355  ;;  %4375 = vpow2.f32 %v3541_v21  ;;  %v2399_v12 = vadd.f32 %v6323_v20, %v6963_v63  ;;  %v2430_v14 = vmul.f32 %v6194_v45, %v6073_v36  ;;  %v6969_v63 = vld [vmem:[#allocation73_spill] sm:$0xff] }
 0x673   :  { %v4358_v41 = vpop.eup %4357  ;;  %4377 = vtanh.f32 %v6408_v10  ;;  %v2884_v16 = vmul.f32 %v4356_v54, %v4336_v35  ;;  %3299 = vst [vmem:[#allocation14 + $0x10] sm:$0xff] %v2883_v48  ;;  %v2899_v49 = vmax.f32 %v2883_v48, 0.0  ;;  %v2557_v35 = vmul.f32 %v6348_v40, %v6057_v9  ;;  %3789 = vmatprep.mubr.bf16.mxu1 %v2913_v44  ;;  %v6965_v48 = vld [vmem:[#allocation57_spill] sm:$0xff]  ;;  %v3982_v44 = vld [vmem:[#allocation11 + $0x18] sm:$0xff]  }
 0x674   :  { %v4360_v25 = vpop.eup %4359  ;;  %v2696_v17 = vmul.f32 %v4358_v41, %v5903_v60  ;;  %4379 = vpow2.f32 %v3557_v4  ;;  %v2384_v60 = vadd.f32 %v6263_v2, %v6868_v62  ;;  %v6964_v62 = vld [vmem:[#allocation90_spill] sm:$0xff]  ;;  %v2406_v20 = vadd.f32 %v6365_v13, %v6965_v48 }
 0x675   :  { %v4362_v15 = vpop.eup %4361  ;;  %v2713_v52 = vmul.f32 %v4360_v25, %v4354_v46  ;;  %4381 = vpow2.f32 %v3542_v27  ;;  %v2900_v33 = vmax.f32 %v2884_v16, 0.0  ;;  %3300 = vst [vmem:[#allocation14 + $0x18] sm:$0xff] %v2884_v16  ;;  %v2405_v2 = vadd.f32 %v6359_v26, %v6964_v62  ;;  %v3981_v26 = vld [vmem:[#allocation11 + $0x10] sm:$0xff]  }
 0x676   :  { %v4364_v57 = vpop.eup %4363  ;;  %v2822_v10 = vadd.f32 1.0, %v4362_v15  ;;  %4383 = vtanh.f32 %v6418_v18  ;;  %v2728_v30 = vadd.f32 %v2712_v11, %v2696_v17  ;;  %v3543_v11 = vmul.f32 -1.442695, %v2445_v39 }
 0x677   :  { %v4366_v51 = vpop.eup %4365  ;;  %4385 = vpow2.f32 %v3558_v29  ;;  %v2914_v31 = vpack.c.bf16 %v2900_v33, %v2899_v49  ;;  %v2573_v27 = vadd.f32 %v2557_v35, %v2402_v6  ;;  %v2446_v23 = vadd.f32 %v2430_v14, %v2405_v2 }
 0x678   :  { %v4368_v21 = vpop.eup %4367  ;;  %4387 = vrcp.f32 %v2822_v10  ;;  %v2823_v5 = vadd.f32 1.0, %v4366_v51  ;;  %v2744_v18 = vmul.f32 %v6294_v24, %v2728_v30  ;;  %3320 = vst [vmem:[#allocation16 + $0x38] sm:$0xff] %v2728_v30  ;;  %v2559_v10 = vmul.f32 %v6348_v40, %v6094_v19 }
 0x679   :  { %v4370_v4 = vpop.eup %4369  ;;  %v2634_v58 = vadd.f32 1.0, %v4368_v21  ;;  %4389 = vtanh.f32 %v2395_v61  ;;  %3790 = vmatmul.mubr.bf16.vlgmr.msra.gmra.mrb[112].mxu1 %v2914_v31  ;;  %v2558_v61 = vmul.f32 %v6348_v40, %v6073_v36  ;;  %v3559_v17 = vmul.f32 -1.442695, %v2573_v27 }
 0x67a   :  { %v4372_v53 = vpop.eup %4371  ;;  %4391 = vrcp.f32 %v2823_v5  ;;  %v2760_v50 = vadd.f32 %v2744_v18, %v2384_v60  ;;  %v2697_v28 = vmul.f32 %v4370_v4, %v5958_v8  ;;  %3806 = vmatpush3.bf16.msra.mxu1 %v6377_v3  ;;  %v3544_v33 = vmul.f32 -1.442695, %v2446_v23  ;;  %v6966_v60 = vld [vmem:[#allocation63_spill] sm:$0xff] }
 0x67b   :  { %v4374_v46 = vpop.eup %4373  ;;  %4393 = vrcp.f32 %v2634_v58  ;;  %v6471_v54 = vmul.f32 %v4372_v53, %v6440_v47  ;;  %3807 = vmatprep.subr.bf16.mxu1 %v3980_v7  ;;  %v2388_v47 = vadd.f32 %v6277_v37, %v6879_v1  ;;  %v2574_v39 = vadd.f32 %v2558_v61, %v2406_v20  ;;  %v3983_v18 = vld [vmem:[#allocation11 + $0x20] sm:$0xff]  }
 0x67c   :  { %v4376_v59 = vpop.eup %4375  ;;  %v3570_v42 = vmul.f32 -1.442695, %v2760_v50  ;;  %v6473_v38 = vadd.f32 %v2713_v52, %v2697_v28  ;;  %v6475_v8 = vmul.f32 %v4374_v46, %v4364_v57  ;;  %4395 = vpow2.f32 %v3543_v11 }
 0x67d   :  { %v4378_v41 = vpop.eup %4377  ;;  %v2507_v3 = vadd.f32 1.0, %v4376_v59  ;;  %4397 = vtanh.f32 %v2399_v12  ;;  %3301 = vst [vmem:[#allocation14 + $0x20] sm:$0xff] %v6471_v54  ;;  %v2409_v1 = vadd.f32 %v6381_v0, %v5951_v34  ;;  %v2431_v57 = vmul.f32 %v6194_v45, %v6094_v19  ;;  %v6968_v0 = vld [vmem:[#allocation42_spill] sm:$0xff] }
 0x67e   :  { %v4380_v13 = vpop.eup %4379  ;;  %4399 = vpow2.f32 %v3570_v42  ;;  %v2745_v29 = vmul.f32 %v6294_v24, %v6473_v38  ;;  %3321 = vst [vmem:[#allocation16 + $0x40] sm:$0xff] %v6473_v38  ;;  %3808 = vmatpush3.bf16.msra.mxu1 %v3980_v7  ;;  %v2410_v6 = vadd.f32 %v6387_v55, %v6966_v60  ;;  %v6967_v7 = vld [vmem:[#allocation60_spill] sm:$0xff]  ;;  %v2413_v21 = vadd.f32 %v6395_v56, %v6968_v0  ;;  %v6970_v56 = vld [vmem:[#allocation75_spill] sm:$0xff] }
 0x67f   :  { %v4382_v16 = vpop.eup %4381  ;;  %4401 = vtanh.f32 %v2728_v30  ;;  %v2635_v25 = vadd.f32 1.0, %v4380_v13  ;;  %3809 = vmatprep.subr.bf16.mxu1 %v3981_v26  ;;  %v2403_v34 = vadd.f32 %v6343_v43, %v6967_v7  ;;  %v3560_v4 = vmul.f32 -1.442695, %v2574_v39  ;;  %v6973_v13 = vld [vmem:[#allocation38_spill] sm:$0xff]  ;;  %v6977_v7 = vld [vmem:[#allocation91_spill] sm:$0xff] }
 0x680   :  { %v4384_v15 = vpop.eup %4383  ;;  %v2761_v52 = vadd.f32 %v2745_v29, %v2388_v47  ;;  %4403 = vrcp.f32 %v2507_v3  ;;  %v2508_v49 = vadd.f32 1.0, %v4382_v16  ;;  %v2447_v58 = vadd.f32 %v2431_v57, %v2409_v1  ;;  %v6972_v3 = vld [vmem:[#allocation62_spill] sm:$0xff]  ;;  %v6974_v47 = vld [vmem:[#allocation72_spill] sm:$0xff] }
 0x681   :  { %v4386_v37 = vpop.eup %4385  ;;  %4405 = vrcp.f32 %v2635_v25  ;;  %v2432_v12 = vmul.f32 %v6194_v45, %v6969_v63  ;;  %v2901_v62 = vmax.f32 %v6471_v54, 0.0  ;;  %v2575_v28 = vadd.f32 %v2559_v10, %v2410_v6  ;;  %v3984_v45 = vld [vmem:[#allocation11 + $0x28] sm:$0xff]  }
 0x682   :  { %v4388_v30 = vpop.eup %4387  ;;  %v3571_v35 = vmul.f32 -1.442695, %v2761_v52  ;;  %4407 = vrcp.f32 %v2508_v49  ;;  %v2636_v51 = vadd.f32 1.0, %v4386_v37  ;;  %3810 = vmatpush3.bf16.msra.mxu1 %v3981_v26  ;;  %v3545_v26 = vmul.f32 -1.442695, %v2447_v58 }
 0x683   :  { %v4390_v31 = vpop.eup %4389  ;;  %4409 = vpow2.f32 %v3559_v17  ;;  %v2886_v5 = vmul.f32 %v4388_v30, %v4378_v41  ;;  %3811 = vmatprep.subr.bf16.mxu1 %v3982_v44  ;;  %v2448_v27 = vadd.f32 %v2432_v12, %v2413_v21  ;;  %v6971_v41 = vld [vmem:[#allocation92_spill] sm:$0xff]  ;;  %v2392_v29 = vadd.f32 %v6974_v47, %v6973_v13  ;;  %v6979_v12 = vld [vmem:[#allocation65_spill] sm:$0xff] }
 0x684   :  { %v4392_v11 = vpop.eup %4391  ;;  %4411 = vpow2.f32 %v3571_v35  ;;  %v2407_v23 = vadd.f32 %v6972_v3, %v6971_v41  ;;  %v6975_v30 = vld [vmem:[#allocation64_spill] sm:$0xff]  ;;  %v6976_v35 = vld [vmem:[#allocation54_spill] sm:$0xff] }
 0x685   :  { %v4394_v55 = vpop.eup %4393  ;;  %4413 = vrcp.f32 %v2636_v51  ;;  %v2902_v2 = vmax.f32 %v2886_v5, 0.0  ;;  %3302 = vst [vmem:[#allocation14 + $0x28] sm:$0xff] %v2886_v5  ;;  %v6500_v43 = vmul.f32 %v4392_v11, %v4384_v15  ;;  %v3546_v39 = vmul.f32 -1.442695, %v2448_v27 }
 0x686   :  { %v4396_v53 = vpop.eup %4395  ;;  %v2698_v50 = vmul.f32 %v4394_v55, %v6970_v56  ;;  %4415 = vpow2.f32 %v3544_v33  ;;  %3812 = vmatpush3.bf16.msra.mxu1 %v3982_v44  ;;  %v2396_v51 = vadd.f32 %v6976_v35, %v6975_v30  ;;  %v6980_v55 = vld [vmem:[#allocation61_spill] sm:$0xff] }
 0x687   :  { %v4398_v14 = vpop.eup %4397  ;;  %v2509_v46 = vadd.f32 1.0, %v4396_v53  ;;  %4417 = vtanh.f32 %v2403_v34  ;;  %v2915_v48 = vpack.c.bf16 %v2902_v2, %v2901_v62  ;;  %3303 = vst [vmem:[#allocation14 + $0x30] sm:$0xff] %v6500_v43  ;;  %3813 = vmatprep.subr.bf16.mxu1 %v3983_v18  ;;  %v6978_v34 = vld [vmem:[#allocation94_spill] sm:$0xff]  ;;  %v2414_v62 = vadd.f32 %v6980_v55, %v6979_v12  ;;  %v6981_v53 = vld [vmem:[#allocation67_spill] sm:$0xff]  ;;  %v6988_v55 = vld [vmem:[#allocation93_spill] sm:$0xff] }
 0x688   :  { %v4400_v20 = vpop.eup %4399  ;;  %v2730_v54 = vadd.f32 %v6475_v8, %v2698_v50  ;;  %4419 = vpow2.f32 %v3560_v4  ;;  %v3561_v8 = vmul.f32 -1.442695, %v2575_v28  ;;  %v2411_v0 = vadd.f32 %v6978_v34, %v6977_v7  ;;  %v6983_v28 = vld [vmem:[#allocation50_spill] sm:$0xff] }
 0x689   :  { %v6505_v59 = vpop.eup %4401  ;;  %v2824_v42 = vadd.f32 1.0, %v4400_v20  ;;  %4421 = vrcp.f32 %v2509_v46  ;;  %3793 = vmatprep.mubr.bf16.mxu1 %v2915_v48  ;;  %v2903_v47 = vmax.f32 %v6500_v43, 0.0  ;;  %v6987_v12 = vld [vmem:[#allocation46_spill] sm:$0xff] }
 0x68a   :  { %v4404_v61 = vpop.eup %4403  ;;  %4423 = vtanh.f32 %v6473_v38  ;;  %v2746_v16 = vmul.f32 %v6294_v24, %v2730_v54  ;;  %3322 = vst [vmem:[#allocation16 + $0x48] sm:$0xff] %v2730_v54  ;;  %3814 = vmatpush3.bf16.msra.mxu1 %v3983_v18  ;;  %v2560_v18 = vmul.f32 %v6348_v40, %v6969_v63 }
 0x68b   :  { %v4406_v25 = vpop.eup %4405  ;;  %4425 = vrcp.f32 %v2824_v42  ;;  %v2715_v17 = vmul.f32 %v4404_v61, %v4390_v31  ;;  %3815 = vmatprep.subr.bf16.mxu1 %v3984_v45 }
 0x68c   :  { %v4408_v44 = vpop.eup %4407  ;;  %v2762_v15 = vadd.f32 %v2746_v16, %v2392_v29  ;;  %v2699_v52 = vmul.f32 %v4406_v25, %v6028_v22  ;;  %4427 = vpow2.f32 %v3545_v26  ;;  %v2576_v42 = vadd.f32 %v2560_v18, %v2414_v62 }
 0x68d   :  { %v4410_v49 = vpop.eup %4409  ;;  %v2716_v38 = vmul.f32 %v4408_v44, %v4398_v14  ;;  %4429 = vtanh.f32 %v2407_v23  ;;  %v6984_v14 = vld [vmem:[#allocation96_spill] sm:$0xff]  ;;  %v2408_v62 = vadd.f32 %v6988_v55, %v6987_v12  ;;  %v3986_v12 = vld [vmem:[#allocation11 + $0x38] sm:$0xff]  }
 0x68e   :  { %v4412_v1 = vpop.eup %4411  ;;  %v3572_v37 = vmul.f32 -1.442695, %v2762_v15  ;;  %v6514_v33 = vadd.f32 %v2715_v17, %v2699_v52  ;;  %4431 = vpow2.f32 %v3561_v8  ;;  %3816 = vmatpush3.bf16.msra.mxu1 %v3984_v45  ;;  %v2637_v60 = vadd.f32 1.0, %v4410_v49 }
 0x68f   :  { %v4414_v57 = vpop.eup %4413  ;;  %v2825_v10 = vadd.f32 1.0, %v4412_v1  ;;  %4433 = vpow2.f32 %v3546_v39  ;;  %v2415_v46 = vadd.f32 %v6984_v14, %v6983_v28  ;;  %v3562_v39 = vmul.f32 -1.442695, %v2576_v42 }
 0x690   :  { %v4416_v6 = vpop.eup %4415  ;;  %4435 = vpow2.f32 %v3572_v37  ;;  %v2747_v22 = vmul.f32 %v6294_v24, %v6514_v33  ;;  %3323 = vst [vmem:[#allocation16 + $0x50] sm:$0xff] %v6514_v33  ;;  %v2700_v31 = vmul.f32 %v4414_v57, %v6044_v32  ;;  %v6982_v32 = vld [vmem:[#allocation58_spill] sm:$0xff] }
 0x691   :  { %v4418_v21 = vpop.eup %4417  ;;  %4437 = vrcp.f32 %v2825_v10  ;;  %v2510_v5 = vadd.f32 1.0, %v4416_v6  ;;  %v2400_v56 = vadd.f32 %v6982_v32, %v6981_v53  ;;  %v6985_v6 = vld [vmem:[#allocation68_spill] sm:$0xff] }
 0x692   :  { %v4420_v11 = vpop.eup %4419  ;;  %4439 = vtanh.f32 %v2730_v54  ;;  %v2763_v4 = vadd.f32 %v2747_v22, %v2396_v51  ;;  %v6526_v58 = vadd.f32 %v2716_v38, %v2700_v31  ;;  %v6986_v22 = vld [vmem:[#allocation95_spill] sm:$0xff] }
 0x693   :  { %v4422_v2 = vpop.eup %4421  ;;  %4441 = vrcp.f32 %v2637_v60  ;;  %v2638_v50 = vadd.f32 1.0, %v4420_v11  ;;  %v2404_v31 = vadd.f32 %v6986_v22, %v6985_v6 }
 0x694   :  { %v4424_v27 = vpop.eup %4423  ;;  %v3573_v48 = vmul.f32 -1.442695, %v2763_v4  ;;  %v2748_v40 = vmul.f32 %v6294_v24, %v6526_v58  ;;  %3324 = vst [vmem:[#allocation16 + $0x58] sm:$0xff] %v6526_v58  ;;  %v2717_v45 = vmul.f32 %v4422_v2, %v4418_v21  ;;  %4443 = vtanh.f32 %v2411_v0 }
 0x695   :  { %v4426_v20 = vpop.eup %4425  ;;  %4445 = vrcp.f32 %v2510_v5 }
 0x696   :  { %v4428_v54 = vpop.eup %4427  ;;  %4447 = vpow2.f32 %v3573_v48  ;;  %v2764_v26 = vadd.f32 %v2748_v40, %v2400_v56  ;;  %v2888_v41 = vmul.f32 %v4426_v20, %v6505_v59  ;;  %v6990_v48 = vld [vmem:[#allocation59_spill] sm:$0xff] }
 0x697   :  { %v4430_v3 = vpop.eup %4429  ;;  %4449 = vrcp.f32 %v2638_v50  ;;  %v2511_v23 = vadd.f32 1.0, %v4428_v54 }
 0x698   :  { %v4432_v61 = vpop.eup %4431  ;;  %v3574_v13 = vmul.f32 -1.442695, %v2764_v26  ;;  %4451 = vtanh.f32 %v2415_v46  ;;  %v2904_v29 = vmax.f32 %v2888_v41, 0.0  ;;  %3304 = vst [vmem:[#allocation14 + $0x38] sm:$0xff] %v2888_v41 }
 0x699   :  { %v4434_v16 = vpop.eup %4433  ;;  %4453 = vrcp.f32 %v2511_v23  ;;  %v2639_v8 = vadd.f32 1.0, %v4432_v61 }
 0x69a   :  { %v4436_v25 = vpop.eup %4435  ;;  %4455 = vpow2.f32 %v3574_v13  ;;  %v2512_v17 = vadd.f32 1.0, %v4434_v16  ;;  %v2916_v44 = vpack.c.bf16 %v2904_v29, %v2903_v47 }
 0x69b   :  { %v4438_v15 = vpop.eup %4437  ;;  %v2826_v59 = vadd.f32 1.0, %v4436_v25  ;;  %4457 = vrcp.f32 %v2639_v8 }
 0x69c   :  { %v4440_v52 = vpop.eup %4439  ;;  %4459 = vrcp.f32 %v2512_v17  ;;  %3794 = vmatmul.mubr.bf16.gmra.mrb[116].mxu1 %v2916_v44  ;;  %v2889_v49 = vmul.f32 %v4438_v15, %v4424_v27  ;;  %v6989_v27 = vld [vmem:[#allocation69_spill] sm:$0xff] }
 0x69d   :  { %v4442_v38 = vpop.eup %4441  ;;  %4461 = vrcp.f32 %v2826_v59  ;;  %v2412_v40 = vadd.f32 %v6990_v48, %v6989_v27 }
 0x69e   :  { %v4444_v43 = vpop.eup %4443  ;;  %v2701_v1 = vmul.f32 %v4442_v38, %v6057_v9  ;;  %4463 = vpow2.f32 %v3562_v39  ;;  %3305 = vst [vmem:[#allocation14 + $0x40] sm:$0xff] %v2889_v49  ;;  %v2905_v54 = vmax.f32 %v2889_v49, 0.0  ;;  %v6991_v38 = vld [vmem:[#allocation71_spill] sm:$0xff] }
 0x69f   :  { %v4446_v37 = vpop.eup %4445  ;;  %4465 = vtanh.f32 %v6514_v33 }
 0x6a0   :  { %v4448_v57 = vpop.eup %4447  ;;  %v2733_v10 = vadd.f32 %v2717_v45, %v2701_v1  ;;  %v2718_v30 = vmul.f32 %v4446_v37, %v4430_v3  ;;  %v4543_v37 = vld [vmem:[%s6617_s7 + $0x2] ss:$0 sm:$0xff] }
 0x6a1   :  { %v4450_v35 = vpop.eup %4449  ;;  %v2827_v51 = vadd.f32 1.0, %v4448_v57 }
 0x6a2   :  { %v4452_v60 = vpop.eup %4451  ;;  %v2749_v7 = vmul.f32 %v6294_v24, %v2733_v10  ;;  %3325 = vst [vmem:[#allocation16 + $0x60] sm:$0xff] %v2733_v10  ;;  %v2702_v34 = vmul.f32 %v4450_v35, %v6073_v36 }
 0x6a3   :  { %v4454_v9 = vpop.eup %4453  ;;  %4467 = vrcp.f32 %v2827_v51 }
 0x6a4   :  { %v4456_v0 = vpop.eup %4455  ;;  %v2765_v21 = vadd.f32 %v2749_v7, %v2404_v31  ;;  %v2734_v5 = vadd.f32 %v2718_v30, %v2702_v34  ;;  %v2719_v18 = vmul.f32 %v4454_v9, %v4444_v43  ;;  %4469 = vtanh.f32 %v6526_v58  ;;  %v6992_v43 = vld [vmem:[#allocation66_spill] sm:$0xff] }
 0x6a5   :  { %v4458_v11 = vpop.eup %4457  ;;  %v2828_v4 = vadd.f32 1.0, %v4456_v0  ;;  %v2416_v1 = vadd.f32 %v6992_v43, %v6991_v38 }
 0x6a6   :  { %v4460_v33 = vpop.eup %4459  ;;  %v3575_v2 = vmul.f32 -1.442695, %v2765_v21  ;;  %v2750_v53 = vmul.f32 %v6294_v24, %v2734_v5  ;;  %3326 = vst [vmem:[#allocation16 + $0x68] sm:$0xff] %v2734_v5  ;;  %v2703_v36 = vmul.f32 %v4458_v11, %v6094_v19 }
 0x6a7   :  { %v4462_v32 = vpop.eup %4461  ;;  %4471 = vrcp.f32 %v2828_v4  ;;  %v2720_v56 = vmul.f32 %v4460_v33, %v4452_v60  ;;  %v3985_v4 = vld [vmem:[#allocation11 + $0x30] sm:$0xff]  }
 0x6a8   :  { %v4464_v50 = vpop.eup %4463  ;;  %4473 = vpow2.f32 %v3575_v2  ;;  %v2766_v28 = vadd.f32 %v2750_v53, %v2408_v62  ;;  %v2735_v14 = vadd.f32 %v2719_v18, %v2703_v36  ;;  %v2890_v46 = vmul.f32 %v4462_v32, %v4440_v52  ;;  %3817 = vmatprep.subr.bf16.mxu1 %v3985_v4  ;;  %v3579_v32 = vld [vmem:[%s6619_s9] ss:$0 sm:$0xff]  ;;  %s4767_s9 = smov [#allocation14]  }
 0x6a9   :  { %v2640_v45 = vadd.f32 1.0, %v4464_v50  ;;  %v4466_v19 = vpop.eup %4465  ;;  %3818 = vmatpush3.bf16.msra.mxu1 %v3985_v4  ;;  %s3346_s1 = sshll.u32 %s4767_s9, 4  ;;  %s3347_s1 = int_to_ptr.vmem [resolvable:$true] %s3346_s1 }
 0x6aa   :  { %v3576_v20 = vmul.f32 -1.442695, %v2766_v28  ;;  %v2751_v58 = vmul.f32 %v6294_v24, %v2735_v14  ;;  %3327 = vst [vmem:[#allocation16 + $0x70] sm:$0xff] %v2735_v14  ;;  %v2906_v26 = vmax.f32 %v2890_v46, 0.0  ;;  %3306 = vst [vmem:[#allocation14 + $0x48] sm:$0xff] %v2890_v46  ;;  %3819 = vmatprep.subr.bf16.mxu1 %v3986_v12  ;;  %s4676_s20 = scalar_lea.vmem %s3347_s1, 2048  ;;  %p4681_p7 = scmp.lt.s32.totalorder %s3347_s1, %s3347_s1 }
 0x6ab   :  { %4475 = vrcp.f32 %v2640_v45  ;;  %p4677_p6 = scmp.ne.s32.totalorder %s3347_s1, %s4676_s20  ;;  %p4682_p8 = scmp.lt.s32.totalorder %s4676_s20, %s4676_s20 }
 0x6ac   :  { %4477 = vpow2.f32 %v3576_v20  ;;  %v2767_v42 = vadd.f32 %v2751_v58, %v2412_v40  ;;  %v2917_v41 = vpack.c.bf16 %v2906_v26, %v2905_v54 }
 0x6ad   :  { %v4468_v3 = vpop.eup %4467  ;;  %3820 = vmatpush3.bf16.msra.mxu1 %v3986_v12  ;;  %p4683_p9 = por %p4682_p8, %p4681_p7 }
 0x6ae   :  { %v3577_v23 = vmul.f32 -1.442695, %v2767_v42  ;;  %3797 = vmatprep.mubr.bf16.mxu1 %v2917_v41  ;;  %v2891_v61 = vmul.f32 %v4468_v3, %v4466_v19  ;;  %v4470_v13 = vpop.eup %4469 }
 0x6af   :  { %p4684_p10 = pnand %p4683_p9, %p4677_p6 }
 0x6b0   :  { %4479 = vpow2.f32 %v3577_v23  ;;  %3307 = vst [vmem:[#allocation14 + $0x50] sm:$0xff] %v2891_v61  ;;  %v2907_v8 = vmax.f32 %v2891_v61, 0.0 }
 0x6b1   :  { %v4472_v47 = vpop.eup %4471  ;;  %4481 = vtanh.f32 %v2733_v10 }
 0x6b2   :  { %v4474_v29 = vpop.eup %4473  ;;  %v2892_v16 = vmul.f32 %v4472_v47, %v4470_v13 }
 0x6b3   :  { %v2829_v24 = vadd.f32 1.0, %v4474_v29 }
 0x6b4   :  { %v2908_v25 = vmax.f32 %v2892_v16, 0.0  ;;  %3308 = vst [vmem:[#allocation14 + $0x58] sm:$0xff] %v2892_v16 }
 0x6b5   :  { %v4476_v17 = vpop.eup %4475  ;;  %4483 = vrcp.f32 %v2829_v24 }
 0x6b6   :  { %v4478_v39 = vpop.eup %4477  ;;  %v2704_v44 = vmul.f32 %v4476_v17, %v6969_v63  ;;  %v2918_v15 = vpack.c.bf16 %v2908_v25, %v2907_v8  ;;  %4485 = vtanh.f32 %v2734_v5 }
 0x6b7   :  { %v2830_v59 = vadd.f32 1.0, %v4478_v39 }
 0x6b8   :  { %v2736_v52 = vadd.f32 %v2720_v56, %v2704_v44  ;;  %3798 = vmatmul.mubr.bf16.gmra.mrb[120].mxu1 %v2918_v15 }
 0x6b9   :  { %4487 = vrcp.f32 %v2830_v59 }
 0x6ba   :  { %v4480_v49 = vpop.eup %4479  ;;  %v2752_v57 = vmul.f32 %v4543_v37, %v2736_v52  ;;  %3328 = vst [vmem:[#allocation16 + $0x78] sm:$0xff] %v2736_v52  ;;  %4489 = vtanh.f32 %v2735_v14 }
 0x6bb   :  { %v2831_v10 = vadd.f32 1.0, %v4480_v49  ;;  %v4482_v63 = vpop.eup %4481 }
 0x6bc   :  { %v2768_v30 = vadd.f32 %v2752_v57, %v2416_v1 }
 0x6bd   :  { %4491 = vrcp.f32 %v2831_v10 }
 0x6be   :  { %v3578_v35 = vmul.f32 -1.442695, %v2768_v30 }
 0x6bf   :  { %v4484_v51 = vpop.eup %4483 }
 0x6c0   :  { %4493 = vpow2.f32 %v3578_v35  ;;  %v2893_v60 = vmul.f32 %v4484_v51, %v4482_v63  ;;  %v4486_v6 = vpop.eup %4485 }
 0x6c1   :  { %4495 = vtanh.f32 %v2736_v52 }
 0x6c2   :  { %3309 = vst [vmem:[#allocation14 + $0x60] sm:$0xff] %v2893_v60  ;;  %v2909_v34 = vmax.f32 %v2893_v60, 0.0 }
 0x6c3   :  { %v4488_v22 = vpop.eup %4487 }
 0x6c4   :  { %v2894_v31 = vmul.f32 %v4488_v22, %v4486_v6  ;;  %v4490_v7 = vpop.eup %4489 }
 0x6c6   :  { %v2910_v9 = vmax.f32 %v2894_v31, 0.0  ;;  %3310 = vst [vmem:[#allocation14 + $0x68] sm:$0xff] %v2894_v31 }
 0x6c7   :  { %v4492_v0 = vpop.eup %4491 }
 0x6c8   :  { %v2919_v21 = vpack.c.bf16 %v2910_v9, %v2909_v34  ;;  %v2895_v5 = vmul.f32 %v4492_v0, %v4490_v7 }
 0x6ca   :  { %v4494_v18 = vpop.eup %4493  ;;  %3801 = vmatprep.mubr.bf16.mxu1 %v2919_v21  ;;  %3311 = vst [vmem:[#allocation14 + $0x70] sm:$0xff] %v2895_v5  ;;  %v2911_v2 = vmax.f32 %v2895_v5, 0.0 }
 0x6cb   :  { %v2832_v11 = vadd.f32 1.0, %v4494_v18  ;;  %v4496_v55 = vpop.eup %4495 }
 0x6cd   :  { %4497 = vrcp.f32 %v2832_v11 }
 0x6d7   :  { %v4498_v62 = vpop.eup %4497 }
 0x6d8   :  { %v2896_v33 = vmul.f32 %v4498_v62, %v4496_v55 }
 0x6da   :  { %v2912_v53 = vmax.f32 %v2896_v33, 0.0  ;;  %3312 = vst [vmem:[#allocation14 + $0x78] sm:$0xff] %v2896_v33 }
 0x6dc   :  { %v2920_v36 = vpack.c.bf16 %v2912_v53, %v2911_v2 }
 0x6de   :  { %3802 = vmatmul.mubr.bf16.gmra.mrb[124].mxu1 %v2920_v36 }
 0x74c   :  { %v3791_v56 = vpop.f32.mrb[112].mxu1 }
 0x74d   :  { %v3035_v50 = vadd.f32 %v3791_v56, %v3579_v32  ;;  %v3026_v28 = vpop.f32.mrb[113].mxu1 }
 0x74e   :  { %v3027_v14 = vadd.f32 %v3579_v32, %v3026_v28  ;;  %v3792_v46 = vpop.f32.mrb[114].mxu1 }
 0x74f   :  { %v3038_v27 = vadd.f32 %v3792_v46, %v3579_v32  ;;  %v3029_v48 = vpop.f32.mrb[115].mxu1  ;;  %v3091_v45 = vmax.f32 %v3035_v50, 0.0 }
 0x750   :  { %v3030_v40 = vadd.f32 %v3579_v32, %v3029_v48  ;;  %v3089_v58 = vmax.f32 %v3027_v14, 0.0 }
 0x751   :  { %v3092_v20 = vmax.f32 %v3038_v27, 0.0 }
 0x752   :  { %v3090_v54 = vmax.f32 %v3030_v40, 0.0 }
 0x753   :  { %v3106_v26 = vpack.c.bf16 %v3092_v20, %v3091_v45 }
 0x754   :  { %v3105_v19 = vpack.c.bf16 %v3090_v54, %v3089_v58 }
 0x756   :  { %3821 = vmatprep.mubr.bf16.mxu1 %v3105_v19 }
 0x757   :  { %3822 = vmatmul.mubr.bf16.vlgmr.msra.gmra.mrb[128].mxu1 %v3106_v26 }
 0x76f   :  { %v3795_v42 = vpop.f32.mrb[116].mxu1 }
 0x770   :  { %v3051_v41 = vadd.f32 %v3795_v42, %v3579_v32  ;;  %v3042_v3 = vpop.f32.mrb[117].mxu1 }
 0x771   :  { %v3043_v23 = vadd.f32 %v3579_v32, %v3042_v3  ;;  %v3796_v61 = vpop.f32.mrb[118].mxu1 }
 0x772   :  { %v3054_v13 = vadd.f32 %v3796_v61, %v3579_v32  ;;  %v3045_v47 = vpop.f32.mrb[119].mxu1  ;;  %v3095_v16 = vmax.f32 %v3051_v41, 0.0 }
 0x773   :  { %v3046_v29 = vadd.f32 %v3579_v32, %v3045_v47  ;;  %v3093_v8 = vmax.f32 %v3043_v23, 0.0 }
 0x774   :  { %v3096_v24 = vmax.f32 %v3054_v13, 0.0 }
 0x775   :  { %v3094_v25 = vmax.f32 %v3046_v29, 0.0 }
 0x776   :  { %v3108_v17 = vpack.c.bf16 %v3096_v24, %v3095_v16 }
 0x777   :  { %v3107_v39 = vpack.c.bf16 %v3094_v25, %v3093_v8 }
 0x779   :  { %3825 = vmatprep.mubr.bf16.mxu1 %v3107_v39 }
 0x77a   :  { %3826 = vmatmul.mubr.bf16.gmra.mrb[132].mxu1 %v3108_v17 }
 0x78b   :  { %v3799_v44 = vpop.f32.mrb[120].mxu1 }
 0x78c   :  { %v3067_v15 = vadd.f32 %v3799_v44, %v3579_v32  ;;  %v3058_v59 = vpop.f32.mrb[121].mxu1 }
 0x78d   :  { %v3059_v52 = vadd.f32 %v3579_v32, %v3058_v59  ;;  %v3800_v49 = vpop.f32.mrb[122].mxu1 }
 0x78e   :  { %v3070_v38 = vadd.f32 %v3800_v49, %v3579_v32  ;;  %v3061_v43 = vpop.f32.mrb[123].mxu1  ;;  %v3099_v37 = vmax.f32 %v3067_v15, 0.0 }
 0x78f   :  { %v3062_v1 = vadd.f32 %v3579_v32, %v3061_v43  ;;  %v3097_v10 = vmax.f32 %v3059_v52, 0.0 }
 0x790   :  { %v3100_v57 = vmax.f32 %v3070_v38, 0.0 }
 0x791   :  { %v3098_v30 = vmax.f32 %v3062_v1, 0.0 }
 0x792   :  { %v3110_v63 = vpack.c.bf16 %v3100_v57, %v3099_v37 }
 0x793   :  { %v3109_v35 = vpack.c.bf16 %v3098_v30, %v3097_v10 }
 0x795   :  { %3829 = vmatprep.mubr.bf16.mxu1 %v3109_v35 }
 0x796   :  { %3830 = vmatmul.mubr.bf16.gmra.mrb[136].mxu1 %v3110_v63 }
 0x7b1   :  { %v3803_v51 = vpop.f32.mrb[124].mxu1 }
 0x7b2   :  { %v3083_v60 = vadd.f32 %v3803_v51, %v3579_v32  ;;  %v3074_v6 = vpop.f32.mrb[125].mxu1 }
 0x7b3   :  { %v3075_v22 = vadd.f32 %v3579_v32, %v3074_v6  ;;  %v3804_v31 = vpop.f32.mrb[126].mxu1 }
 0x7b4   :  { %v3086_v7 = vadd.f32 %v3804_v31, %v3579_v32  ;;  %v3077_v34 = vpop.f32.mrb[127].mxu1  ;;  %v3103_v0 = vmax.f32 %v3083_v60, 0.0 }
 0x7b5   :  { %v3078_v9 = vadd.f32 %v3579_v32, %v3077_v34  ;;  %v3101_v5 = vmax.f32 %v3075_v22, 0.0 }
 0x7b6   :  { %v3104_v21 = vmax.f32 %v3086_v7, 0.0 }
 0x7b7   :  { %v3102_v18 = vmax.f32 %v3078_v9, 0.0 }
 0x7b8   :  { %v3112_v11 = vpack.c.bf16 %v3104_v21, %v3103_v0 }
 0x7b9   :  { %v3111_v4 = vpack.c.bf16 %v3102_v18, %v3101_v5 }
 0x7bb   :  { %3833 = vmatprep.mubr.bf16.mxu1 %v3111_v4 }
 0x7bc   :  { %3834 = vmatmul.mubr.bf16.gmra.mrb[140].mxu1 %v3112_v11 }
 0x7bd   :  { %4687 = shalt.err (!%p4684_p10)
}
 0x7be   :  { %s4688_s4 = scalar_lea.hbm %s6623_s13, 2048 }
 0x7bf   :  { %p4689_p11 = scmp.ne.s32.totalorder %s6623_s13, %s4688_s4  ;;  %p4692_p12 = scmp.lt.u32.totalorder %s4688_s4, %s6623_s13 }
 0x7c1   :  { %p4694_p13 = pnand %p4692_p12, %p4689_p11 }
 0x7c3   :  { %4697 = shalt.err (!%p4694_p13)
}
 0x7c4   :  { %3352 = dma.vmem_to_hbm [thread:$0]  %s3347_s1, 2048, %s6623_s13, [#allocation15], %s4755_s23, %s4755_s23, %s4756_s24  }
 0x7c5   :  { %s4768_s5 = smov [#allocation16]  }
 0x7c6   :  { %s3358_s28 = sshll.u32 %s4768_s5, 4  ;;  %s3359_s28 = int_to_ptr.vmem [resolvable:$true] %s3358_s28 }
 0x7c7   :  { %s4698_s3 = scalar_lea.vmem %s3359_s28, 2048  ;;  %p4703_p1 = scmp.lt.s32.totalorder %s3359_s28, %s3359_s28 }
 0x7c8   :  { %p4699_p0 = scmp.ne.s32.totalorder %s3359_s28, %s4698_s3  ;;  %p4704_p2 = scmp.lt.s32.totalorder %s4698_s3, %s4698_s3 }
 0x7ca   :  { %p4705_p3 = por %p4704_p2, %p4703_p1 }
 0x7cc   :  { %p4706_p4 = pnand %p4705_p3, %p4699_p0 }
 0x7ce   :  { %4709 = shalt.err (!%p4706_p4)
}
 0x7cf   :  { %s4710_s27 = scalar_lea.hbm %s6624_s14, 2048 }
 0x7d0   :  { %p4711_p5 = scmp.ne.s32.totalorder %s6624_s14, %s4710_s27  ;;  %p4714_p6 = scmp.lt.u32.totalorder %s4710_s27, %s6624_s14 }
 0x7d2   :  { %p4716_p7 = pnand %p4714_p6, %p4711_p5 }
 0x7d4   :  { %4719 = shalt.err (!%p4716_p7)
}
 0x7d5   :  { %3364 = dma.vmem_to_hbm [thread:$0]  %s3359_s28, 2048, %s6624_s14, [#allocation15], %s4755_s23, %s4755_s23, %s4756_s24  }
 0x7d6   :  { %v3588_v12 = vld [vmem:[%s6621_s11] ss:$0 sm:$0xff]  ;;  %s4769_s11 = smov [#allocation13]  }
 0x7d7   :  { %s3334_s14 = sshll.u32 %s4769_s11, 4  ;;  %s3335_s14 = int_to_ptr.vmem [resolvable:$true] %s3334_s14 }
 0x7d8   :  { %s4720_s9 = scalar_lea.vmem %s3335_s14, 2048  ;;  %p4725_p9 = scmp.lt.s32.totalorder %s3335_s14, %s3335_s14 }
 0x7d9   :  { %p4721_p8 = scmp.ne.s32.totalorder %s3335_s14, %s4720_s9  ;;  %p4726_p10 = scmp.lt.s32.totalorder %s4720_s9, %s4720_s9 }
 0x7db   :  { %p4727_p11 = por %p4726_p10, %p4725_p9 }
 0x7dd   :  { %p4728_p12 = pnand %p4727_p11, %p4721_p8 }
 0x82a   :  { %v3823_v55 = vpop.f32.mrb[128].mxu1 }
 0x82b   :  { %v3227_v62 = vadd.f32 %v3823_v55, %v3588_v12  ;;  %v3218_v33 = vpop.f32.mrb[129].mxu1 }
 0x82c   :  { %v3219_v2 = vadd.f32 %v3588_v12, %v3218_v33  ;;  %v3824_v53 = vpop.f32.mrb[130].mxu1 }
 0x82d   :  { %3283 = vst [vmem:[#allocation13 + $0x10] sm:$0xff] %v3227_v62  ;;  %v3230_v36 = vadd.f32 %v3824_v53, %v3588_v12  ;;  %v3221_v32 = vpop.f32.mrb[131].mxu1 }
 0x82e   :  { %3281 = vst [vmem:[#allocation13] sm:$0xff] %v3219_v2  ;;  %v3222_v56 = vadd.f32 %v3588_v12, %v3221_v32 }
 0x82f   :  { %3284 = vst [vmem:[#allocation13 + $0x18] sm:$0xff] %v3230_v36 }
 0x830   :  { %3282 = vst [vmem:[#allocation13 + $0x8] sm:$0xff] %v3222_v56 }
 0x84d   :  { %v3827_v50 = vpop.f32.mrb[132].mxu1 }
 0x84e   :  { %v3243_v28 = vadd.f32 %v3827_v50, %v3588_v12  ;;  %v3234_v14 = vpop.f32.mrb[133].mxu1 }
 0x84f   :  { %v3235_v46 = vadd.f32 %v3588_v12, %v3234_v14  ;;  %v3828_v27 = vpop.f32.mrb[134].mxu1 }
 0x850   :  { %3287 = vst [vmem:[#allocation13 + $0x30] sm:$0xff] %v3243_v28  ;;  %v3246_v48 = vadd.f32 %v3828_v27, %v3588_v12  ;;  %v3237_v40 = vpop.f32.mrb[135].mxu1 }
 0x851   :  { %3285 = vst [vmem:[#allocation13 + $0x20] sm:$0xff] %v3235_v46  ;;  %v3238_v45 = vadd.f32 %v3588_v12, %v3237_v40 }
 0x852   :  { %3288 = vst [vmem:[#allocation13 + $0x38] sm:$0xff] %v3246_v48 }
 0x853   :  { %3286 = vst [vmem:[#allocation13 + $0x28] sm:$0xff] %v3238_v45 }
 0x869   :  { %v3831_v20 = vpop.f32.mrb[136].mxu1 }
 0x86a   :  { %v3259_v58 = vadd.f32 %v3831_v20, %v3588_v12  ;;  %v3250_v54 = vpop.f32.mrb[137].mxu1 }
 0x86b   :  { %v3251_v26 = vadd.f32 %v3588_v12, %v3250_v54  ;;  %v3832_v19 = vpop.f32.mrb[138].mxu1 }
 0x86c   :  { %3291 = vst [vmem:[#allocation13 + $0x50] sm:$0xff] %v3259_v58  ;;  %v3262_v42 = vadd.f32 %v3832_v19, %v3588_v12  ;;  %v3253_v41 = vpop.f32.mrb[139].mxu1 }
 0x86d   :  { %3289 = vst [vmem:[#allocation13 + $0x40] sm:$0xff] %v3251_v26  ;;  %v3254_v3 = vadd.f32 %v3588_v12, %v3253_v41 }
 0x86e   :  { %3292 = vst [vmem:[#allocation13 + $0x58] sm:$0xff] %v3262_v42 }
 0x86f   :  { %3290 = vst [vmem:[#allocation13 + $0x48] sm:$0xff] %v3254_v3 }
 0x88f   :  { %v3835_v23 = vpop.f32.mrb[140].mxu1 }
 0x890   :  { %v3275_v61 = vadd.f32 %v3835_v23, %v3588_v12  ;;  %v3266_v13 = vpop.f32.mrb[141].mxu1 }
 0x891   :  { %v3267_v47 = vadd.f32 %v3588_v12, %v3266_v13  ;;  %v3836_v29 = vpop.f32.mrb[142].mxu1 }
 0x892   :  { %3295 = vst [vmem:[#allocation13 + $0x70] sm:$0xff] %v3275_v61  ;;  %v3278_v16 = vadd.f32 %v3836_v29, %v3588_v12  ;;  %v3269_v24 = vpop.f32.mrb[143].mxu1 }
 0x893   :  { %3293 = vst [vmem:[#allocation13 + $0x60] sm:$0xff] %v3267_v47  ;;  %v3270_v8 = vadd.f32 %v3588_v12, %v3269_v24 }
 0x894   :  { %3296 = vst [vmem:[#allocation13 + $0x78] sm:$0xff] %v3278_v16 }
 0x895   :  { %3294 = vst [vmem:[#allocation13 + $0x68] sm:$0xff] %v3270_v8 }
 0x896   :  { %4731 = shalt.err (!%p4728_p12)
}
 0x897   :  { %s4732_s25 = scalar_lea.hbm %s6622_s12, 2048 }
 0x898   :  { %p4733_p13 = scmp.ne.s32.totalorder %s6622_s12, %s4732_s25  ;;  %p4736_p0 = scmp.lt.u32.totalorder %s4732_s25, %s6622_s12 }
 0x89a   :  { %p4738_p1 = pnand %p4736_p0, %p4733_p13 }
 0x89c   :  { %4741 = shalt.err (!%p4738_p1)
}
 0x89d   :  { %3340 = dma.vmem_to_hbm [thread:$0]  %s3335_s14, 2048, %s6622_s12, [#allocation4], %s4755_s23, %s4755_s23, %s4756_s24  }
 0x89e   :  { %4750 = dma.done.wait [#allocation4], 2048  }
 0x89f   :  { %4751 = vsyncadd [#allocation4], 4294965248 }
 0x8a0   :  { %4752 = dma.done.wait [#allocation15], 4096  }
 0x8a1   :  { %4753 = vsyncadd [#allocation15], 4294963200 }
 0x8a2   :  { %3374 = vsyncpa [#allocation3], 1 }
 0x8a3   :  { %3375 = vsyncpa [#allocation6], 1 }
 0x8a4   :  { %3376 = vsyncpa [#allocation9], 1 }
 0x8a5   :  { %3377 = vsyncpa [#allocation12], 1 }
 0x8a6   :  { %3378 = vsyncpa [#allocation4], 1 }
 0x8a7   :  { %3379 = vsyncpa [#allocation15], 1 }

</bundles_post_ra>
